<compile_context>
chip_gen: v7x
topology: tpu7x:2x2x1
jax: 0.10.0
libtpu: 0.0.40
codegen_flags: <defaults>
</compile_context>

<pallas_src>
import functools

import jax
import jax.numpy as jnp
from jax.experimental import pallas as pl
from jax.experimental.pallas import tpu as pltpu

LANES = 128
_VMEM_LIMIT = 48 * 1024 * 1024       # < 64 MiB physical VMEM on v7x
_MAX_STATIC_CHUNKS = 32              # unroll bound for the direct-conv chunk loop
_ACC_ELEMS = 32 * 1024               # ~32 f32 vregs per chunk accumulator


def _round_up(x, m):
    return (x + m - 1) // m * m


def _pick_tq(q, cout_p):
    t = max(8, (_ACC_ELEMS // cout_p) // 8 * 8)
    return min(_round_up(q, 8), t)


def _direct_ok(h, w, cin, cout_p):
    """Use the direct (im2col-free) conv only when unroll / VMEM stay sane."""
    wrs = w + 2
    q = h * wrs
    tq = _pick_tq(q, cout_p)
    if pl.cdiv(q, tq) > _MAX_STATIC_CHUNKS:
        return False
    rows_in = q + 2 * wrs + 2
    est = (2 * (rows_in * _round_up(cin, LANES) * 2     # x block (bf16, dbl-buffered)
                + q * cout_p * 4                        # out block (f32 worst case)
                + q * cout_p * 2)                       # residual block (bf16)
           + 9 * _round_up(cin, 8) * cout_p * 2)        # resident weights
    return est < 36 * 1024 * 1024


# ---------------------------------------------------------------------------
# Fused GEMM (1x1 shortcut conv / im2col fallback): resident weights + shift,
# epilogue = +shift (folded BN/bias) and optional ReLU.  bf16 in, f32 MXU acc.
# ---------------------------------------------------------------------------
def _gemm_kernel(x_ref, w_ref, s_ref, o_ref, *, relu):
    acc = jnp.dot(x_ref[...], w_ref[...], preferred_element_type=jnp.float32)
    y = acc + s_ref[...]
    if relu:
        y = jnp.maximum(y, 0.0)
    o_ref[...] = y.astype(o_ref.dtype)


def _fused_gemm(x, w, shift, *, relu, out_dtype, tm=512):
    m, kd = x.shape
    cout_p = w.shape[1]
    tm_eff = min(tm, _round_up(m, 8))
    grid = (pl.cdiv(m, tm_eff),)
    return pl.pallas_call(
        functools.partial(_gemm_kernel, relu=relu),
        out_shape=jax.ShapeDtypeStruct((m, cout_p), out_dtype),
        grid_spec=pltpu.PrefetchScalarGridSpec(
            num_scalar_prefetch=0,
            grid=grid,
            in_specs=[
                pl.BlockSpec((tm_eff, kd), lambda i: (i, 0)),
                pl.BlockSpec((kd, cout_p), lambda i: (0, 0)),   # VMEM-resident
                pl.BlockSpec((1, cout_p), lambda i: (0, 0)),    # VMEM-resident
            ],
            out_specs=pl.BlockSpec((tm_eff, cout_p), lambda i: (i, 0)),
        ),
        compiler_params=pltpu.CompilerParams(
            dimension_semantics=("parallel",),
            vmem_limit_bytes=_VMEM_LIMIT),
    )(x, w, shift)


# ---------------------------------------------------------------------------
# Direct 3x3 / stride-1 / pad-1 conv: per-tap constant row offsets into the
# flattened padded image, 9 accumulating GEMMs, epilogue = +shift
# (+ residual) (+ ReLU).  No im2col, activation read from HBM exactly once.
# ---------------------------------------------------------------------------
def _direct_conv_kernel(x_ref, w_ref, s_ref, *rest, offsets, chunks, relu,
                        has_residual):
    if has_residual:
        r_ref, o_ref = rest
    else:
        (o_ref,) = rest
    shift = s_ref[...]                                    # (1, Cout_p) f32
    for cs, csz in chunks:                                # static schedule
        acc = None
        for t, off in enumerate(offsets):                 # 9 taps, static offsets
            xw = x_ref[0, cs + off:cs + off + csz, :]     # (csz, Cin) bf16
            p = jnp.dot(xw, w_ref[t], preferred_element_type=jnp.float32)
            acc = p if acc is None else acc + p
        y = acc + shift
        if has_residual:
            y = y + r_ref[0, cs:cs + csz, :].astype(jnp.float32)
        if relu:
            y = jnp.maximum(y, 0.0)
        o_ref[0, cs:cs + csz, :] = y.astype(o_ref.dtype)


def _direct_conv3x3(x_nhwc, w_taps, shift, *, residual=None, relu, out_dtype):
    """Output rows live in the padded row space q = oh*(W+2) + ow; the two
    extra columns per image row are garbage and must be sliced off."""
    n, h, w, cin = x_nhwc.shape
    k = 3
    ho, wo = h, w
    wrs = w + 2                      # row stride of the flattened padded image
    hp = h + 2
    q = ho * wrs                     # rows computed per image
    off_max = (k - 1) * wrs + (k - 1)
    rows_in = q + off_max
    kk, cin_w, cout_p = w_taps.shape
    assert kk == k * k and cin_w == cin, (w_taps.shape, cin)

    tq = _pick_tq(q, cout_p)
    n_chunks = pl.cdiv(q, tq)
    chunks = tuple((i * tq, min(tq, q - i * tq)) for i in range(n_chunks))
    offsets = tuple(kh * wrs + kw for kh in range(k) for kw in range(k))

    xp = jnp.pad(x_nhwc.astype(jnp.bfloat16),
                 ((0, 0), (1, 1), (1, 1), (0, 0)))
    xf = xp.reshape(n, hp * wrs, cin)
    if rows_in > hp * wrs:           # tiny tail pad so the last taps stay in-bounds
        xf = jnp.pad(xf, ((0, 0), (0, rows_in - hp * wrs), (0, 0)))

    in_specs = [
        pl.BlockSpec((1, rows_in, cin), lambda i: (i, 0, 0)),
        pl.BlockSpec((k * k, cin, cout_p), lambda i: (0, 0, 0)),  # resident
        pl.BlockSpec((1, cout_p), lambda i: (0, 0)),              # resident
    ]
    args = [xf, w_taps, shift]
    if residual is not None:
        assert residual.shape == (n, q, cout_p), residual.shape
        in_specs.append(pl.BlockSpec((1, q, cout_p), lambda i: (i, 0, 0)))
        args.append(residual)

    kernel = functools.partial(
        _direct_conv_kernel, offsets=offsets, chunks=chunks, relu=relu,
        has_residual=residual is not None)

    out = pl.pallas_call(
        kernel,
        out_shape=jax.ShapeDtypeStruct((n, q, cout_p), out_dtype),
        grid_spec=pltpu.PrefetchScalarGridSpec(
            num_scalar_prefetch=0,
            grid=(n,),
            in_specs=in_specs,
            out_specs=pl.BlockSpec((1, q, cout_p), lambda i: (i, 0, 0)),
        ),
        compiler_params=pltpu.CompilerParams(
            dimension_semantics=("parallel",),
            vmem_limit_bytes=_VMEM_LIMIT),
    )(*args)
    return out, ho, wo


# ---------------------------------------------------------------------------
# Lane-dense im2col (fallback only): concatenate keeps channels in the lane
# dim (feature = tap*C + c), no [.., C, 9] relayout.
# ---------------------------------------------------------------------------
def _im2col(x, k, stride, padding):
    n, h, w, c = x.shape
    ho = (h + 2 * padding - k) // stride + 1
    wo = (w + 2 * padding - k) // stride + 1
    if k == 1 and padding == 0:
        p = x if stride == 1 else x[:, ::stride, ::stride, :]
        return p.reshape(n * ho * wo, c), ho, wo
    xp = jnp.pad(x, ((0, 0), (padding, padding), (padding, padding), (0, 0)))
    cols = [xp[:, kh:kh + stride * ho:stride, kw:kw + stride * wo:stride, :]
            for kh in range(k) for kw in range(k)]
    p = jnp.concatenate(cols, axis=-1)
    return p.reshape(n * ho * wo, k * k * c), ho, wo


# ---------------------------------------------------------------------------
# Parameter preparation (hoisted off the forward path): fold eval-mode BN +
# bias into bf16 weights / f32 shift, tap-major layout, Cout padded to 128.
# ---------------------------------------------------------------------------
def _fold_bn(weight, bias, bn):
    cout = weight.shape[0]
    b = (bias.astype(jnp.float32) if bias is not None
         else jnp.zeros((cout,), jnp.float32))
    if bn is None:
        return jnp.ones((cout,), jnp.float32), b
    gamma, beta, mean, var, eps = bn
    scale = gamma.astype(jnp.float32) * jax.lax.rsqrt(
        var.astype(jnp.float32) + eps)
    shift = (b - mean.astype(jnp.float32)) * scale + beta.astype(jnp.float32)
    return scale, shift


def _prep_conv3x3(weight, bias, bn):
    cout, cin, k, _ = weight.shape
    cout_p = _round_up(cout, LANES)
    scale, shift = _fold_bn(weight, bias, bn)
    w = weight.astype(jnp.float32) * scale[:, None, None, None]
    w = jnp.transpose(w, (2, 3, 1, 0)).reshape(k * k, cin, cout)   # tap-major
    shift = shift.reshape(1, cout)
    if cout_p != cout:
        w = jnp.pad(w, ((0, 0), (0, 0), (0, cout_p - cout)))
        shift = jnp.pad(shift, ((0, 0), (0, cout_p - cout)))
    return w.astype(jnp.bfloat16), shift.astype(jnp.float32)


def _prep_conv1x1(weight, bias, bn):
    cout, cin, _, _ = weight.shape
    cout_p = _round_up(cout, LANES)
    scale, shift = _fold_bn(weight, bias, bn)
    w = (weight.astype(jnp.float32) * scale[:, None, None, None]
         ).reshape(cout, cin).T
    shift = shift.reshape(1, cout)
    if cout_p != cout:
        w = jnp.pad(w, ((0, 0), (0, cout_p - cout)))
        shift = jnp.pad(shift, ((0, 0), (0, cout_p - cout)))
    return w.astype(jnp.bfloat16), shift.astype(jnp.float32)


def prepare_basic_block_params(params):
    """Call once per parameter set (NOT per forward).  Arrays-only pytree."""
    prep = {
        "conv1": _prep_conv3x3(params["conv1"]["weight"],
                               params["conv1"]["bias"], params["conv1"]["bn"]),
        "conv2": _prep_conv3x3(params["conv2"]["weight"],
                               params["conv2"]["bias"], params["conv2"]["bn"]),
        "shortcut": None,
    }
    if params["shortcut"] is not None:
        s = params["shortcut"]
        prep["shortcut"] = _prep_conv1x1(s["weight"], s["bias"], s["bn"])
    return prep


# ---------------------------------------------------------------------------
# BasicBlock forward.
# ---------------------------------------------------------------------------
def basic_block_forward_nhwc(x_nhwc, prep, *, stride=1, out_dtype=jnp.float32):
    """NHWC in / NHWC out; chained blocks should use this to stay in NHWC/bf16."""
    x = x_nhwc.astype(jnp.bfloat16)
    n, h, w, cin = x.shape
    w1, s1 = prep["conv1"]
    w2, s2 = prep["conv2"]
    cout = w2.shape[1]               # conv2 input channels == block out channels
    cout_p = w2.shape[2]

    # conv1: 3x3 / stride / pad 1 -> BN -> ReLU  (bf16 intermediate).
    if stride == 1 and _direct_ok(h, w, cin, cout_p):
        h_q, ho, wo = _direct_conv3x3(x, w1, s1, relu=True,
                                      out_dtype=jnp.bfloat16)
        hid = h_q.reshape(n, ho, wo + 2, cout_p)[:, :, :wo, :cout]
    else:
        patches, ho, wo = _im2col(x, 3, stride, 1)
        h_flat = _fused_gemm(patches, w1.reshape(-1, cout_p), s1,
                             relu=True, out_dtype=jnp.bfloat16)
        hid = h_flat.reshape(n, ho, wo, cout_p)[..., :cout]

    # Residual, produced directly in conv2's padded row space
    # (rows q = oh*(wo+2) + ow), carried in bf16.
    wrs2 = wo + 2
    xs = x if stride == 1 else x[:, ::stride, ::stride, :]
    if prep["shortcut"] is None:
        # Identity: one fused pad/cast pass (W -> wo+2 row space, C -> cout_p).
        res = jnp.pad(xs, ((0, 0), (0, 0), (0, wrs2 - wo), (0, cout_p - cin)))
        res = res.reshape(n, ho * wrs2, cout_p)
    else:
        ws, ss = prep["shortcut"]
        xs = jnp.pad(xs, ((0, 0), (0, 0), (0, wrs2 - wo), (0, 0)))
        res = _fused_gemm(xs.reshape(n * ho * wrs2, cin), ws, ss,
                          relu=False, out_dtype=jnp.bfloat16)
        res = res.reshape(n, ho * wrs2, cout_p)

    # conv2: 3x3 / 1 / pad 1 -> BN, with residual add + block ReLU fused
    # into the kernel epilogue.
    if _direct_ok(ho, wo, cout, cout_p):
        out_q, _, _ = _direct_conv3x3(hid, w2, s2, residual=res, relu=True,
                                      out_dtype=jnp.float32)
        out = out_q.reshape(n, ho, wrs2, cout_p)[:, :, :wo, :cout]
    else:
        # TODO(synk): fallback path does the residual add / ReLU outside the kernel.
        patches, _, _ = _im2col(hid, 3, 1, 1)
        o_flat = _fused_gemm(patches, w2.reshape(-1, cout_p), s2,
                             relu=False, out_dtype=jnp.float32)
        o = o_flat.reshape(n, ho, wo, cout_p)
        r4 = res.reshape(n, ho, wrs2, cout_p)[:, :, :wo, :].astype(jnp.float32)
        out = jnp.maximum(o + r4, 0.0)[..., :cout]

    return out.astype(out_dtype)


def basic_block_forward(x_nchw, prep, *, stride=1):
    """NCHW in / NCHW f32 out, matching the PyTorch BasicBlock (eval mode)."""
    x = jnp.transpose(x_nchw.astype(jnp.bfloat16), (0, 2, 3, 1))   # one relayout
    y = basic_block_forward_nhwc(x, prep, stride=stride, out_dtype=jnp.float32)
    return jnp.transpose(y, (0, 3, 1, 2))


# ---------------------------------------------------------------------------
# Pure-JAX f32 reference (matches the torch module in eval mode).
# ---------------------------------------------------------------------------
def _ref_conv_bn_act(x, w, b, bn, stride, padding, relu):
    y = jax.lax.conv_general_dilated(
        x, w, (stride, stride), [(padding, padding), (padding, padding)],
        dimension_numbers=("NCHW", "OIHW", "NCHW"))
    y = y + b.reshape(1, -1, 1, 1)
    gamma, beta, mean, var, eps = bn
    y = (y - mean.reshape(1, -1, 1, 1)) * jax.lax.rsqrt(
        var.reshape(1, -1, 1, 1) + eps)
    y = y * gamma.reshape(1, -1, 1, 1) + beta.reshape(1, -1, 1, 1)
    if relu:
        y = jnp.maximum(y, 0.0)
    return y


def _ref_basic_block(x, params, stride):
    h = _ref_conv_bn_act(x, params["conv1"]["weight"], params["conv1"]["bias"],
                         params["conv1"]["bn"], stride, 1, True)
    main = _ref_conv_bn_act(h, params["conv2"]["weight"], params["conv2"]["bias"],
                            params["conv2"]["bn"], 1, 1, False)
    if params["shortcut"] is None:
        sc = x
    else:
        s = params["shortcut"]
        sc = _ref_conv_bn_act(x, s["weight"], s["bias"], s["bn"], stride, 0, False)
    return jnp.maximum(main + sc, 0.0)


if __name__ == "__main__":
    root = jax.random.PRNGKey(0)

    def conv_init(kw, kb, cout, cin, k):
        bound = 1.0 / (cin * k * k) ** 0.5
        w = jax.random.uniform(kw, (cout, cin, k, k), jnp.float32, -bound, bound)
        b = jax.random.uniform(kb, (cout,), jnp.float32, -bound, bound)
        return w, b

    def bn_init(keys, c):
        kg, kb, km, kv = keys
        gamma = jax.random.uniform(kg, (c,), jnp.float32, 0.5, 1.5)
        beta = jax.random.uniform(kb, (c,), jnp.float32, -0.5, 0.5)
        mean = 0.1 * jax.random.normal(km, (c,), jnp.float32)
        var = jax.random.uniform(kv, (c,), jnp.float32, 0.5, 1.5)
        return (gamma, beta, mean, var, 1e-5)

    def make_params(key, cin, cout, need_shortcut):
        ks = jax.random.split(key, 18)
        w1, b1 = conv_init(ks[0], ks[1], cout, cin, 3)
        w2, b2 = conv_init(ks[6], ks[7], cout, cout, 3)
        params = {
            "conv1": {"weight": w1, "bias": b1, "bn": bn_init(ks[2:6], cout)},
            "conv2": {"weight": w2, "bias": b2, "bn": bn_init(ks[8:12], cout)},
            "shortcut": None,
        }
        if need_shortcut:
            ws, bs = conv_init(ks[12], ks[13], cout, cin, 1)
            params["shortcut"] = {"weight": ws, "bias": bs,
                                  "bn": bn_init(ks[14:18], cout)}
        return params

    # Covers: direct-conv path (stride 1), projection + identity shortcuts,
    # fused residual epilogue, im2col fallback (stride 2), ragged GEMM tiles.
    cases = [
        ("projection / stride 1", 4, 8, 1),
        ("identity  / stride 1", 8, 8, 1),
        ("projection / stride 2", 4, 8, 2),
    ]
    kx, kp = jax.random.split(root)
    pkeys = jax.random.split(kp, len(cases))
    for (name, cin, cout, stride), pk in zip(cases, pkeys):
        x = jax.random.normal(kx, (2, cin, 16, 16), jnp.float32)
        need_sc = not (cin == cout and stride == 1)
        params = make_params(pk, cin, cout, need_sc)
        prep = prepare_basic_block_params(params)        # hoisted weight prep
        fwd = jax.jit(functools.partial(basic_block_forward, stride=stride))
        y = jax.block_until_ready(fwd(x, prep))
        ref = _ref_basic_block(x, params, stride)
        assert y.shape == ref.shape, (name, y.shape, ref.shape)
        err = float(jnp.max(jnp.abs(y - ref)))
        tol = 0.1 * max(1.0, float(jnp.max(jnp.abs(ref))))   # bf16-GEMM tolerance
        assert err < tol, (name, err, tol)

    print("KERNEL_OK")
</pallas_src>

<mosaic_0001>
module attributes {stable_mosaic.version = 11 : i64} {
  func.func @_gemm_kernel(%arg0: i32, %arg1: memref<512x4xbf16, #tpu.memory_space<vmem>>, %arg2: memref<4x128xbf16, #tpu.memory_space<vmem>>, %arg3: memref<1x128xf32, #tpu.memory_space<vmem>>, %arg4: memref<512x128xbf16, #tpu.memory_space<vmem>>) attributes {dimension_semantics = [#tpu.dimension_semantics<parallel>], iteration_bounds = array<i64: 2>, scalar_prefetch = 0 : i64, scratch_operands = 0 : i64, tpu.core_type = #tpu.core_type<tc>, window_params = [{transform_indices = @transform_0, window_bounds = array<i64: 512, 4>}, {pipeline_mode = #tpu.pipeline_mode<synchronous>, transform_indices = @transform_1, window_bounds = array<i64: 4, 128>}, {pipeline_mode = #tpu.pipeline_mode<synchronous>, transform_indices = @transform_2, window_bounds = array<i64: 1, 128>}, {transform_indices = @transform_3, window_bounds = array<i64: 512, 128>}]} {
    %c0 = arith.constant 0 : index
    %c0_0 = arith.constant 0 : index
    %0 = vector.load %arg1[%c0, %c0_0] : memref<512x4xbf16, #tpu.memory_space<vmem>>, vector<512x4xbf16>
    %c0_1 = arith.constant 0 : index
    %c0_2 = arith.constant 0 : index
    %1 = vector.load %arg2[%c0_1, %c0_2] : memref<4x128xbf16, #tpu.memory_space<vmem>>, vector<4x128xbf16>
    %cst = arith.constant dense<0.000000e+00> : vector<512x128xf32>
    %2 = tpu.matmul %0, %1, %cst {dimension_numbers = #tpu.dot_dimension_numbers<[1], [0], [0], [1], [0, 0, 1, 1], [], []>} : vector<512x4xbf16>, vector<4x128xbf16>, vector<512x128xf32> -> vector<512x128xf32>
    %c0_3 = arith.constant 0 : index
    %c0_4 = arith.constant 0 : index
    %3 = vector.load %arg3[%c0_3, %c0_4] : memref<1x128xf32, #tpu.memory_space<vmem>>, vector<1x128xf32>
    %4 = vector.broadcast %3 : vector<1x128xf32> to vector<512x128xf32>
    %5 = arith.addf %2, %4 : vector<512x128xf32>
    %6 = arith.truncf %5 : vector<512x128xf32> to vector<512x128xbf16>
    %c0_5 = arith.constant 0 : index
    %c0_6 = arith.constant 0 : index
    %7 = vector.load %arg4[%c0_5, %c0_6] : memref<512x128xbf16, #tpu.memory_space<vmem>>, vector<512x128xbf16>
    tpu.vector_store %arg4[%c0_5, %c0_6], %6 {strides = array<i32>} : memref<512x128xbf16, #tpu.memory_space<vmem>>, vector<512x128xbf16>,
    return
  }
  func.func @transform_0(%arg0: i32) -> (i32, i32) {
    %c0_i32 = arith.constant 0 : i32
    %c0_i32_0 = arith.constant 0 : i32
    return %arg0, %c0_i32 : i32, i32
  }
  func.func @transform_1(%arg0: i32) -> (i32, i32) {
    %c0_i32 = arith.constant 0 : i32
    %c0_i32_0 = arith.constant 0 : i32
    %c0_i32_1 = arith.constant 0 : i32
    return %c0_i32, %c0_i32_0 : i32, i32
  }
  func.func @transform_2(%arg0: i32) -> (i32, i32) {
    %c0_i32 = arith.constant 0 : i32
    %c0_i32_0 = arith.constant 0 : i32
    %c0_i32_1 = arith.constant 0 : i32
    return %c0_i32, %c0_i32_0 : i32, i32
  }
  func.func @transform_3(%arg0: i32) -> (i32, i32) {
    %c0_i32 = arith.constant 0 : i32
    %c0_i32_0 = arith.constant 0 : i32
    return %arg0, %c0_i32 : i32, i32
  }
}

module attributes {stable_mosaic.version = 11 : i64} {
  func.func @_direct_conv_kernel(%arg0: i32, %arg1: memref<1x326x4xbf16, #tpu.memory_space<vmem>>, %arg2: memref<9x4x128xbf16, #tpu.memory_space<vmem>>, %arg3: memref<1x128xf32, #tpu.memory_space<vmem>>, %arg4: memref<1x288x128xbf16, #tpu.memory_space<vmem>>) attributes {dimension_semantics = [#tpu.dimension_semantics<parallel>], iteration_bounds = array<i64: 2>, scalar_prefetch = 0 : i64, scratch_operands = 0 : i64, tpu.core_type = #tpu.core_type<tc>, window_params = [{transform_indices = @transform_0, window_bounds = array<i64: 1, 326, 4>}, {pipeline_mode = #tpu.pipeline_mode<synchronous>, transform_indices = @transform_1, window_bounds = array<i64: 9, 4, 128>}, {pipeline_mode = #tpu.pipeline_mode<synchronous>, transform_indices = @transform_2, window_bounds = array<i64: 1, 128>}, {transform_indices = @transform_3, window_bounds = array<i64: 1, 288, 128>}]} {
    %c0 = arith.constant 0 : index
    %c0_0 = arith.constant 0 : index
    %0 = vector.load %arg3[%c0, %c0_0] : memref<1x128xf32, #tpu.memory_space<vmem>>, vector<1x128xf32>
    %c0_1 = arith.constant 0 : index
    %c0_2 = arith.constant 0 : index
    %c0_3 = arith.constant 0 : index
    %1 = vector.load %arg1[%c0_1, %c0_2, %c0_3] : memref<1x326x4xbf16, #tpu.memory_space<vmem>>, vector<1x256x4xbf16>
    %2 = vector.shape_cast %1 : vector<1x256x4xbf16> to vector<256x4xbf16>
    %c0_4 = arith.constant 0 : index
    %c0_5 = arith.constant 0 : index
    %c0_6 = arith.constant 0 : index
    %3 = vector.load %arg2[%c0_4, %c0_5, %c0_6] : memref<9x4x128xbf16, #tpu.memory_space<vmem>>, vector<1x4x128xbf16>
    %4 = vector.shape_cast %3 : vector<1x4x128xbf16> to vector<4x128xbf16>
    %cst = arith.constant dense<0.000000e+00> : vector<256x128xf32>
    %5 = tpu.matmul %2, %4, %cst {dimension_numbers = #tpu.dot_dimension_numbers<[1], [0], [0], [1], [0, 0, 1, 1], [], []>} : vector<256x4xbf16>, vector<4x128xbf16>, vector<256x128xf32> -> vector<256x128xf32>
    %c0_7 = arith.constant 0 : index
    %c1 = arith.constant 1 : index
    %c0_8 = arith.constant 0 : index
    %6 = vector.load %arg1[%c0_7, %c1, %c0_8] : memref<1x326x4xbf16, #tpu.memory_space<vmem>>, vector<1x256x4xbf16>
    %7 = vector.shape_cast %6 : vector<1x256x4xbf16> to vector<256x4xbf16>
    %c1_9 = arith.constant 1 : index
    %c0_10 = arith.constant 0 : index
    %c0_11 = arith.constant 0 : index
    %8 = vector.load %arg2[%c1_9, %c0_10, %c0_11] : memref<9x4x128xbf16, #tpu.memory_space<vmem>>, vector<1x4x128xbf16>
    %9 = vector.shape_cast %8 : vector<1x4x128xbf16> to vector<4x128xbf16>
    %cst_12 = arith.constant dense<0.000000e+00> : vector<256x128xf32>
    %10 = tpu.matmul %7, %9, %cst_12 {dimension_numbers = #tpu.dot_dimension_numbers<[1], [0], [0], [1], [0, 0, 1, 1], [], []>} : vector<256x4xbf16>, vector<4x128xbf16>, vector<256x128xf32> -> vector<256x128xf32>
    %11 = arith.addf %5, %10 : vector<256x128xf32>
    %c0_13 = arith.constant 0 : index
    %c2 = arith.constant 2 : index
    %c0_14 = arith.constant 0 : index
    %12 = vector.load %arg1[%c0_13, %c2, %c0_14] : memref<1x326x4xbf16, #tpu.memory_space<vmem>>, vector<1x256x4xbf16>
    %13 = vector.shape_cast %12 : vector<1x256x4xbf16> to vector<256x4xbf16>
    %c2_15 = arith.constant 2 : index
    %c0_16 = arith.constant 0 : index
    %c0_17 = arith.constant 0 : index
    %14 = vector.load %arg2[%c2_15, %c0_16, %c0_17] : memref<9x4x128xbf16, #tpu.memory_space<vmem>>, vector<1x4x128xbf16>
    %15 = vector.shape_cast %14 : vector<1x4x128xbf16> to vector<4x128xbf16>
    %cst_18 = arith.constant dense<0.000000e+00> : vector<256x128xf32>
    %16 = tpu.matmul %13, %15, %cst_18 {dimension_numbers = #tpu.dot_dimension_numbers<[1], [0], [0], [1], [0, 0, 1, 1], [], []>} : vector<256x4xbf16>, vector<4x128xbf16>, vector<256x128xf32> -> vector<256x128xf32>
    %17 = arith.addf %11, %16 : vector<256x128xf32>
    %c0_19 = arith.constant 0 : index
    %c18 = arith.constant 18 : index
    %c0_20 = arith.constant 0 : index
    %18 = vector.load %arg1[%c0_19, %c18, %c0_20] : memref<1x326x4xbf16, #tpu.memory_space<vmem>>, vector<1x256x4xbf16>
    %19 = vector.shape_cast %18 : vector<1x256x4xbf16> to vector<256x4xbf16>
    %c3 = arith.constant 3 : index
    %c0_21 = arith.constant 0 : index
    %c0_22 = arith.constant 0 : index
    %20 = vector.load %arg2[%c3, %c0_21, %c0_22] : memref<9x4x128xbf16, #tpu.memory_space<vmem>>, vector<1x4x128xbf16>
    %21 = vector.shape_cast %20 : vector<1x4x128xbf16> to vector<4x128xbf16>
    %cst_23 = arith.constant dense<0.000000e+00> : vector<256x128xf32>
    %22 = tpu.matmul %19, %21, %cst_23 {dimension_numbers = #tpu.dot_dimension_numbers<[1], [0], [0], [1], [0, 0, 1, 1], [], []>} : vector<256x4xbf16>, vector<4x128xbf16>, vector<256x128xf32> -> vector<256x128xf32>
    %23 = arith.addf %17, %22 : vector<256x128xf32>
    %c0_24 = arith.constant 0 : index
    %c19 = arith.constant 19 : index
    %c0_25 = arith.constant 0 : index
    %24 = vector.load %arg1[%c0_24, %c19, %c0_25] : memref<1x326x4xbf16, #tpu.memory_space<vmem>>, vector<1x256x4xbf16>
    %25 = vector.shape_cast %24 : vector<1x256x4xbf16> to vector<256x4xbf16>
    %c4 = arith.constant 4 : index
    %c0_26 = arith.constant 0 : index
    %c0_27 = arith.constant 0 : index
    %26 = vector.load %arg2[%c4, %c0_26, %c0_27] : memref<9x4x128xbf16, #tpu.memory_space<vmem>>, vector<1x4x128xbf16>
    %27 = vector.shape_cast %26 : vector<1x4x128xbf16> to vector<4x128xbf16>
    %cst_28 = arith.constant dense<0.000000e+00> : vector<256x128xf32>
    %28 = tpu.matmul %25, %27, %cst_28 {dimension_numbers = #tpu.dot_dimension_numbers<[1], [0], [0], [1], [0, 0, 1, 1], [], []>} : vector<256x4xbf16>, vector<4x128xbf16>, vector<256x128xf32> -> vector<256x128xf32>
    %29 = arith.addf %23, %28 : vector<256x128xf32>
    %c0_29 = arith.constant 0 : index
    %c20 = arith.constant 20 : index
    %c0_30 = arith.constant 0 : index
    %30 = vector.load %arg1[%c0_29, %c20, %c0_30] : memref<1x326x4xbf16, #tpu.memory_space<vmem>>, vector<1x256x4xbf16>
    %31 = vector.shape_cast %30 : vector<1x256x4xbf16> to vector<256x4xbf16>
    %c5 = arith.constant 5 : index
    %c0_31 = arith.constant 0 : index
    %c0_32 = arith.constant 0 : index
    %32 = vector.load %arg2[%c5, %c0_31, %c0_32] : memref<9x4x128xbf16, #tpu.memory_space<vmem>>, vector<1x4x128xbf16>
    %33 = vector.shape_cast %32 : vector<1x4x128xbf16> to vector<4x128xbf16>
    %cst_33 = arith.constant dense<0.000000e+00> : vector<256x128xf32>
    %34 = tpu.matmul %31, %33, %cst_33 {dimension_numbers = #tpu.dot_dimension_numbers<[1], [0], [0], [1], [0, 0, 1, 1], [], []>} : vector<256x4xbf16>, vector<4x128xbf16>, vector<256x128xf32> -> vector<256x128xf32>
    %35 = arith.addf %29, %34 : vector<256x128xf32>
    %c0_34 = arith.constant 0 : index
    %c36 = arith.constant 36 : index
    %c0_35 = arith.constant 0 : index
    %36 = vector.load %arg1[%c0_34, %c36, %c0_35] : memref<1x326x4xbf16, #tpu.memory_space<vmem>>, vector<1x256x4xbf16>
    %37 = vector.shape_cast %36 : vector<1x256x4xbf16> to vector<256x4xbf16>
    %c6 = arith.constant 6 : index
    %c0_36 = arith.constant 0 : index
    %c0_37 = arith.constant 0 : index
    %38 = vector.load %arg2[%c6, %c0_36, %c0_37] : memref<9x4x128xbf16, #tpu.memory_space<vmem>>, vector<1x4x128xbf16>
    %39 = vector.shape_cast %38 : vector<1x4x128xbf16> to vector<4x128xbf16>
    %cst_38 = arith.constant dense<0.000000e+00> : vector<256x128xf32>
    %40 = tpu.matmul %37, %39, %cst_38 {dimension_numbers = #tpu.dot_dimension_numbers<[1], [0], [0], [1], [0, 0, 1, 1], [], []>} : vector<256x4xbf16>, vector<4x128xbf16>, vector<256x128xf32> -> vector<256x128xf32>
    %41 = arith.addf %35, %40 : vector<256x128xf32>
    %c0_39 = arith.constant 0 : index
    %c37 = arith.constant 37 : index
    %c0_40 = arith.constant 0 : index
    %42 = vector.load %arg1[%c0_39, %c37, %c0_40] : memref<1x326x4xbf16, #tpu.memory_space<vmem>>, vector<1x256x4xbf16>
    %43 = vector.shape_cast %42 : vector<1x256x4xbf16> to vector<256x4xbf16>
    %c7 = arith.constant 7 : index
    %c0_41 = arith.constant 0 : index
    %c0_42 = arith.constant 0 : index
    %44 = vector.load %arg2[%c7, %c0_41, %c0_42] : memref<9x4x128xbf16, #tpu.memory_space<vmem>>, vector<1x4x128xbf16>
    %45 = vector.shape_cast %44 : vector<1x4x128xbf16> to vector<4x128xbf16>
    %cst_43 = arith.constant dense<0.000000e+00> : vector<256x128xf32>
    %46 = tpu.matmul %43, %45, %cst_43 {dimension_numbers = #tpu.dot_dimension_numbers<[1], [0], [0], [1], [0, 0, 1, 1], [], []>} : vector<256x4xbf16>, vector<4x128xbf16>, vector<256x128xf32> -> vector<256x128xf32>
    %47 = arith.addf %41, %46 : vector<256x128xf32>
    %c0_44 = arith.constant 0 : index
    %c38 = arith.constant 38 : index
    %c0_45 = arith.constant 0 : index
    %48 = vector.load %arg1[%c0_44, %c38, %c0_45] : memref<1x326x4xbf16, #tpu.memory_space<vmem>>, vector<1x256x4xbf16>
    %49 = vector.shape_cast %48 : vector<1x256x4xbf16> to vector<256x4xbf16>
    %c8 = arith.constant 8 : index
    %c0_46 = arith.constant 0 : index
    %c0_47 = arith.constant 0 : index
    %50 = vector.load %arg2[%c8, %c0_46, %c0_47] : memref<9x4x128xbf16, #tpu.memory_space<vmem>>, vector<1x4x128xbf16>
    %51 = vector.shape_cast %50 : vector<1x4x128xbf16> to vector<4x128xbf16>
    %cst_48 = arith.constant dense<0.000000e+00> : vector<256x128xf32>
    %52 = tpu.matmul %49, %51, %cst_48 {dimension_numbers = #tpu.dot_dimension_numbers<[1], [0], [0], [1], [0, 0, 1, 1], [], []>} : vector<256x4xbf16>, vector<4x128xbf16>, vector<256x128xf32> -> vector<256x128xf32>
    %53 = arith.addf %47, %52 : vector<256x128xf32>
    %54 = vector.broadcast %0 : vector<1x128xf32> to vector<256x128xf32>
    %55 = arith.addf %53, %54 : vector<256x128xf32>
    %cst_49 = arith.constant 0.000000e+00 : f32
    %56 = vector.broadcast %cst_49 : f32 to vector<256x128xf32>
    %57 = arith.maximumf %55, %56 : vector<256x128xf32>
    %58 = arith.truncf %57 : vector<256x128xf32> to vector<256x128xbf16>
    %c0_50 = arith.constant 0 : index
    %c0_51 = arith.constant 0 : index
    %c0_52 = arith.constant 0 : index
    %59 = vector.load %arg4[%c0_50, %c0_51, %c0_52] : memref<1x288x128xbf16, #tpu.memory_space<vmem>>, vector<1x256x128xbf16>
    %60 = vector.shape_cast %59 : vector<1x256x128xbf16> to vector<256x128xbf16>
    %61 = vector.shape_cast %58 : vector<256x128xbf16> to vector<1x256x128xbf16>
    tpu.vector_store %arg4[%c0_50, %c0_51, %c0_52], %61 {strides = array<i32>} : memref<1x288x128xbf16, #tpu.memory_space<vmem>>, vector<1x256x128xbf16>,
    %c0_53 = arith.constant 0 : index
    %c256 = arith.constant 256 : index
    %c0_54 = arith.constant 0 : index
    %62 = vector.load %arg1[%c0_53, %c256, %c0_54] : memref<1x326x4xbf16, #tpu.memory_space<vmem>>, vector<1x32x4xbf16>
    %63 = vector.shape_cast %62 : vector<1x32x4xbf16> to vector<32x4xbf16>
    %c0_55 = arith.constant 0 : index
    %c0_56 = arith.constant 0 : index
    %c0_57 = arith.constant 0 : index
    %64 = vector.load %arg2[%c0_55, %c0_56, %c0_57] : memref<9x4x128xbf16, #tpu.memory_space<vmem>>, vector<1x4x128xbf16>
    %65 = vector.shape_cast %64 : vector<1x4x128xbf16> to vector<4x128xbf16>
    %cst_58 = arith.constant dense<0.000000e+00> : vector<32x128xf32>
    %66 = tpu.matmul %63, %65, %cst_58 {dimension_numbers = #tpu.dot_dimension_numbers<[1], [0], [0], [1], [0, 0, 1, 1], [], []>} : vector<32x4xbf16>, vector<4x128xbf16>, vector<32x128xf32> -> vector<32x128xf32>
    %c0_59 = arith.constant 0 : index
    %c257 = arith.constant 257 : index
    %c0_60 = arith.constant 0 : index
    %67 = vector.load %arg1[%c0_59, %c257, %c0_60] : memref<1x326x4xbf16, #tpu.memory_space<vmem>>, vector<1x32x4xbf16>
    %68 = vector.shape_cast %67 : vector<1x32x4xbf16> to vector<32x4xbf16>
    %c1_61 = arith.constant 1 : index
    %c0_62 = arith.constant 0 : index
    %c0_63 = arith.constant 0 : index
    %69 = vector.load %arg2[%c1_61, %c0_62, %c0_63] : memref<9x4x128xbf16, #tpu.memory_space<vmem>>, vector<1x4x128xbf16>
    %70 = vector.shape_cast %69 : vector<1x4x128xbf16> to vector<4x128xbf16>
    %cst_64 = arith.constant dense<0.000000e+00> : vector<32x128xf32>
    %71 = tpu.matmul %68, %70, %cst_64 {dimension_numbers = #tpu.dot_dimension_numbers<[1], [0], [0], [1], [0, 0, 1, 1], [], []>} : vector<32x4xbf16>, vector<4x128xbf16>, vector<32x128xf32> -> vector<32x128xf32>
    %72 = arith.addf %66, %71 : vector<32x128xf32>
    %c0_65 = arith.constant 0 : index
    %c258 = arith.constant 258 : index
    %c0_66 = arith.constant 0 : index
    %73 = vector.load %arg1[%c0_65, %c258, %c0_66] : memref<1x326x4xbf16, #tpu.memory_space<vmem>>, vector<1x32x4xbf16>
    %74 = vector.shape_cast %73 : vector<1x32x4xbf16> to vector<32x4xbf16>
    %c2_67 = arith.constant 2 : index
    %c0_68 = arith.constant 0 : index
    %c0_69 = arith.constant 0 : index
    %75 = vector.load %arg2[%c2_67, %c0_68, %c0_69] : memref<9x4x128xbf16, #tpu.memory_space<vmem>>, vector<1x4x128xbf16>
    %76 = vector.shape_cast %75 : vector<1x4x128xbf16> to vector<4x128xbf16>
    %cst_70 = arith.constant dense<0.000000e+00> : vector<32x128xf32>
    %77 = tpu.matmul %74, %76, %cst_70 {dimension_numbers = #tpu.dot_dimension_numbers<[1], [0], [0], [1], [0, 0, 1, 1], [], []>} : vector<32x4xbf16>, vector<4x128xbf16>, vector<32x128xf32> -> vector<32x128xf32>
    %78 = arith.addf %72, %77 : vector<32x128xf32>
    %c0_71 = arith.constant 0 : index
    %c274 = arith.constant 274 : index
    %c0_72 = arith.constant 0 : index
    %79 = vector.load %arg1[%c0_71, %c274, %c0_72] : memref<1x326x4xbf16, #tpu.memory_space<vmem>>, vector<1x32x4xbf16>
    %80 = vector.shape_cast %79 : vector<1x32x4xbf16> to vector<32x4xbf16>
    %c3_73 = arith.constant 3 : index
    %c0_74 = arith.constant 0 : index
    %c0_75 = arith.constant 0 : index
    %81 = vector.load %arg2[%c3_73, %c0_74, %c0_75] : memref<9x4x128xbf16, #tpu.memory_space<vmem>>, vector<1x4x128xbf16>
    %82 = vector.shape_cast %81 : vector<1x4x128xbf16> to vector<4x128xbf16>
    %cst_76 = arith.constant dense<0.000000e+00> : vector<32x128xf32>
    %83 = tpu.matmul %80, %82, %cst_76 {dimension_numbers = #tpu.dot_dimension_numbers<[1], [0], [0], [1], [0, 0, 1, 1], [], []>} : vector<32x4xbf16>, vector<4x128xbf16>, vector<32x128xf32> -> vector<32x128xf32>
    %84 = arith.addf %78, %83 : vector<32x128xf32>
    %c0_77 = arith.constant 0 : index
    %c275 = arith.constant 275 : index
    %c0_78 = arith.constant 0 : index
    %85 = vector.load %arg1[%c0_77, %c275, %c0_78] : memref<1x326x4xbf16, #tpu.memory_space<vmem>>, vector<1x32x4xbf16>
    %86 = vector.shape_cast %85 : vector<1x32x4xbf16> to vector<32x4xbf16>
    %c4_79 = arith.constant 4 : index
    %c0_80 = arith.constant 0 : index
    %c0_81 = arith.constant 0 : index
    %87 = vector.load %arg2[%c4_79, %c0_80, %c0_81] : memref<9x4x128xbf16, #tpu.memory_space<vmem>>, vector<1x4x128xbf16>
    %88 = vector.shape_cast %87 : vector<1x4x128xbf16> to vector<4x128xbf16>
    %cst_82 = arith.constant dense<0.000000e+00> : vector<32x128xf32>
    %89 = tpu.matmul %86, %88, %cst_82 {dimension_numbers = #tpu.dot_dimension_numbers<[1], [0], [0], [1], [0, 0, 1, 1], [], []>} : vector<32x4xbf16>, vector<4x128xbf16>, vector<32x128xf32> -> vector<32x128xf32>
    %90 = arith.addf %84, %89 : vector<32x128xf32>
    %c0_83 = arith.constant 0 : index
    %c276 = arith.constant 276 : index
    %c0_84 = arith.constant 0 : index
    %91 = vector.load %arg1[%c0_83, %c276, %c0_84] : memref<1x326x4xbf16, #tpu.memory_space<vmem>>, vector<1x32x4xbf16>
    %92 = vector.shape_cast %91 : vector<1x32x4xbf16> to vector<32x4xbf16>
    %c5_85 = arith.constant 5 : index
    %c0_86 = arith.constant 0 : index
    %c0_87 = arith.constant 0 : index
    %93 = vector.load %arg2[%c5_85, %c0_86, %c0_87] : memref<9x4x128xbf16, #tpu.memory_space<vmem>>, vector<1x4x128xbf16>
    %94 = vector.shape_cast %93 : vector<1x4x128xbf16> to vector<4x128xbf16>
    %cst_88 = arith.constant dense<0.000000e+00> : vector<32x128xf32>
    %95 = tpu.matmul %92, %94, %cst_88 {dimension_numbers = #tpu.dot_dimension_numbers<[1], [0], [0], [1], [0, 0, 1, 1], [], []>} : vector<32x4xbf16>, vector<4x128xbf16>, vector<32x128xf32> -> vector<32x128xf32>
    %96 = arith.addf %90, %95 : vector<32x128xf32>
    %c0_89 = arith.constant 0 : index
    %c292 = arith.constant 292 : index
    %c0_90 = arith.constant 0 : index
    %97 = vector.load %arg1[%c0_89, %c292, %c0_90] : memref<1x326x4xbf16, #tpu.memory_space<vmem>>, vector<1x32x4xbf16>
    %98 = vector.shape_cast %97 : vector<1x32x4xbf16> to vector<32x4xbf16>
    %c6_91 = arith.constant 6 : index
    %c0_92 = arith.constant 0 : index
    %c0_93 = arith.constant 0 : index
    %99 = vector.load %arg2[%c6_91, %c0_92, %c0_93] : memref<9x4x128xbf16, #tpu.memory_space<vmem>>, vector<1x4x128xbf16>
    %100 = vector.shape_cast %99 : vector<1x4x128xbf16> to vector<4x128xbf16>
    %cst_94 = arith.constant dense<0.000000e+00> : vector<32x128xf32>
    %101 = tpu.matmul %98, %100, %cst_94 {dimension_numbers = #tpu.dot_dimension_numbers<[1], [0], [0], [1], [0, 0, 1, 1], [], []>} : vector<32x4xbf16>, vector<4x128xbf16>, vector<32x128xf32> -> vector<32x128xf32>
    %102 = arith.addf %96, %101 : vector<32x128xf32>
    %c0_95 = arith.constant 0 : index
    %c293 = arith.constant 293 : index
    %c0_96 = arith.constant 0 : index
    %103 = vector.load %arg1[%c0_95, %c293, %c0_96] : memref<1x326x4xbf16, #tpu.memory_space<vmem>>, vector<1x32x4xbf16>
    %104 = vector.shape_cast %103 : vector<1x32x4xbf16> to vector<32x4xbf16>
    %c7_97 = arith.constant 7 : index
    %c0_98 = arith.constant 0 : index
    %c0_99 = arith.constant 0 : index
    %105 = vector.load %arg2[%c7_97, %c0_98, %c0_99] : memref<9x4x128xbf16, #tpu.memory_space<vmem>>, vector<1x4x128xbf16>
    %106 = vector.shape_cast %105 : vector<1x4x128xbf16> to vector<4x128xbf16>
    %cst_100 = arith.constant dense<0.000000e+00> : vector<32x128xf32>
    %107 = tpu.matmul %104, %106, %cst_100 {dimension_numbers = #tpu.dot_dimension_numbers<[1], [0], [0], [1], [0, 0, 1, 1], [], []>} : vector<32x4xbf16>, vector<4x128xbf16>, vector<32x128xf32> -> vector<32x128xf32>
    %108 = arith.addf %102, %107 : vector<32x128xf32>
    %c0_101 = arith.constant 0 : index
    %c294 = arith.constant 294 : index
    %c0_102 = arith.constant 0 : index
    %109 = vector.load %arg1[%c0_101, %c294, %c0_102] : memref<1x326x4xbf16, #tpu.memory_space<vmem>>, vector<1x32x4xbf16>
    %110 = vector.shape_cast %109 : vector<1x32x4xbf16> to vector<32x4xbf16>
    %c8_103 = arith.constant 8 : index
    %c0_104 = arith.constant 0 : index
    %c0_105 = arith.constant 0 : index
    %111 = vector.load %arg2[%c8_103, %c0_104, %c0_105] : memref<9x4x128xbf16, #tpu.memory_space<vmem>>, vector<1x4x128xbf16>
    %112 = vector.shape_cast %111 : vector<1x4x128xbf16> to vector<4x128xbf16>
    %cst_106 = arith.constant dense<0.000000e+00> : vector<32x128xf32>
    %113 = tpu.matmul %110, %112, %cst_106 {dimension_numbers = #tpu.dot_dimension_numbers<[1], [0], [0], [1], [0, 0, 1, 1], [], []>} : vector<32x4xbf16>, vector<4x128xbf16>, vector<32x128xf32> -> vector<32x128xf32>
    %114 = arith.addf %108, %113 : vector<32x128xf32>
    %115 = vector.broadcast %0 : vector<1x128xf32> to vector<32x128xf32>
    %116 = arith.addf %114, %115 : vector<32x128xf32>
    %cst_107 = arith.constant 0.000000e+00 : f32
    %117 = vector.broadcast %cst_107 : f32 to vector<32x128xf32>
    %118 = arith.maximumf %116, %117 : vector<32x128xf32>
    %119 = arith.truncf %118 : vector<32x128xf32> to vector<32x128xbf16>
    %c0_108 = arith.constant 0 : index
    %c256_109 = arith.constant 256 : index
    %c0_110 = arith.constant 0 : index
    %120 = vector.load %arg4[%c0_108, %c256_109, %c0_110] : memref<1x288x128xbf16, #tpu.memory_space<vmem>>, vector<1x32x128xbf16>
    %121 = vector.shape_cast %120 : vector<1x32x128xbf16> to vector<32x128xbf16>
    %122 = vector.shape_cast %119 : vector<32x128xbf16> to vector<1x32x128xbf16>
    tpu.vector_store %arg4[%c0_108, %c256_109, %c0_110], %122 {strides = array<i32>} : memref<1x288x128xbf16, #tpu.memory_space<vmem>>, vector<1x32x128xbf16>,
    return
  }
  func.func @transform_0(%arg0: i32) -> (i32, i32, i32) {
    %c0_i32 = arith.constant 0 : i32
    %c0_i32_0 = arith.constant 0 : i32
    %c0_i32_1 = arith.constant 0 : i32
    return %arg0, %c0_i32, %c0_i32_0 : i32, i32, i32
  }
  func.func @transform_1(%arg0: i32) -> (i32, i32, i32) {
    %c0_i32 = arith.constant 0 : i32
    %c0_i32_0 = arith.constant 0 : i32
    %c0_i32_1 = arith.constant 0 : i32
    %c0_i32_2 = arith.constant 0 : i32
    return %c0_i32, %c0_i32_0, %c0_i32_1 : i32, i32, i32
  }
  func.func @transform_2(%arg0: i32) -> (i32, i32) {
    %c0_i32 = arith.constant 0 : i32
    %c0_i32_0 = arith.constant 0 : i32
    %c0_i32_1 = arith.constant 0 : i32
    return %c0_i32, %c0_i32_0 : i32, i32
  }
  func.func @transform_3(%arg0: i32) -> (i32, i32, i32) {
    %c0_i32 = arith.constant 0 : i32
    %c0_i32_0 = arith.constant 0 : i32
    %c0_i32_1 = arith.constant 0 : i32
    return %arg0, %c0_i32, %c0_i32_0 : i32, i32, i32
  }
}

module attributes {stable_mosaic.version = 11 : i64} {
  func.func @_direct_conv_kernel(%arg0: i32, %arg1: memref<1x326x8xbf16, #tpu.memory_space<vmem>>, %arg2: memref<9x8x128xbf16, #tpu.memory_space<vmem>>, %arg3: memref<1x128xf32, #tpu.memory_space<vmem>>, %arg4: memref<1x288x128xbf16, #tpu.memory_space<vmem>>, %arg5: memref<1x288x128xf32, #tpu.memory_space<vmem>>) attributes {dimension_semantics = [#tpu.dimension_semantics<parallel>], iteration_bounds = array<i64: 2>, scalar_prefetch = 0 : i64, scratch_operands = 0 : i64, tpu.core_type = #tpu.core_type<tc>, window_params = [{transform_indices = @transform_0, window_bounds = array<i64: 1, 326, 8>}, {pipeline_mode = #tpu.pipeline_mode<synchronous>, transform_indices = @transform_1, window_bounds = array<i64: 9, 8, 128>}, {pipeline_mode = #tpu.pipeline_mode<synchronous>, transform_indices = @transform_2, window_bounds = array<i64: 1, 128>}, {transform_indices = @transform_3, window_bounds = array<i64: 1, 288, 128>}, {transform_indices = @transform_4, window_bounds = array<i64: 1, 288, 128>}]} {
    %c0 = arith.constant 0 : index
    %c0_0 = arith.constant 0 : index
    %0 = vector.load %arg3[%c0, %c0_0] : memref<1x128xf32, #tpu.memory_space<vmem>>, vector<1x128xf32>
    %c0_1 = arith.constant 0 : index
    %c0_2 = arith.constant 0 : index
    %c0_3 = arith.constant 0 : index
    %1 = vector.load %arg1[%c0_1, %c0_2, %c0_3] : memref<1x326x8xbf16, #tpu.memory_space<vmem>>, vector<1x256x8xbf16>
    %2 = vector.shape_cast %1 : vector<1x256x8xbf16> to vector<256x8xbf16>
    %c0_4 = arith.constant 0 : index
    %c0_5 = arith.constant 0 : index
    %c0_6 = arith.constant 0 : index
    %3 = vector.load %arg2[%c0_4, %c0_5, %c0_6] : memref<9x8x128xbf16, #tpu.memory_space<vmem>>, vector<1x8x128xbf16>
    %4 = vector.shape_cast %3 : vector<1x8x128xbf16> to vector<8x128xbf16>
    %cst = arith.constant dense<0.000000e+00> : vector<256x128xf32>
    %5 = tpu.matmul %2, %4, %cst {dimension_numbers = #tpu.dot_dimension_numbers<[1], [0], [0], [1], [0, 0, 1, 1], [], []>} : vector<256x8xbf16>, vector<8x128xbf16>, vector<256x128xf32> -> vector<256x128xf32>
    %c0_7 = arith.constant 0 : index
    %c1 = arith.constant 1 : index
    %c0_8 = arith.constant 0 : index
    %6 = vector.load %arg1[%c0_7, %c1, %c0_8] : memref<1x326x8xbf16, #tpu.memory_space<vmem>>, vector<1x256x8xbf16>
    %7 = vector.shape_cast %6 : vector<1x256x8xbf16> to vector<256x8xbf16>
    %c1_9 = arith.constant 1 : index
    %c0_10 = arith.constant 0 : index
    %c0_11 = arith.constant 0 : index
    %8 = vector.load %arg2[%c1_9, %c0_10, %c0_11] : memref<9x8x128xbf16, #tpu.memory_space<vmem>>, vector<1x8x128xbf16>
    %9 = vector.shape_cast %8 : vector<1x8x128xbf16> to vector<8x128xbf16>
    %cst_12 = arith.constant dense<0.000000e+00> : vector<256x128xf32>
    %10 = tpu.matmul %7, %9, %cst_12 {dimension_numbers = #tpu.dot_dimension_numbers<[1], [0], [0], [1], [0, 0, 1, 1], [], []>} : vector<256x8xbf16>, vector<8x128xbf16>, vector<256x128xf32> -> vector<256x128xf32>
    %11 = arith.addf %5, %10 : vector<256x128xf32>
    %c0_13 = arith.constant 0 : index
    %c2 = arith.constant 2 : index
    %c0_14 = arith.constant 0 : index
    %12 = vector.load %arg1[%c0_13, %c2, %c0_14] : memref<1x326x8xbf16, #tpu.memory_space<vmem>>, vector<1x256x8xbf16>
    %13 = vector.shape_cast %12 : vector<1x256x8xbf16> to vector<256x8xbf16>
    %c2_15 = arith.constant 2 : index
    %c0_16 = arith.constant 0 : index
    %c0_17 = arith.constant 0 : index
    %14 = vector.load %arg2[%c2_15, %c0_16, %c0_17] : memref<9x8x128xbf16, #tpu.memory_space<vmem>>, vector<1x8x128xbf16>
    %15 = vector.shape_cast %14 : vector<1x8x128xbf16> to vector<8x128xbf16>
    %cst_18 = arith.constant dense<0.000000e+00> : vector<256x128xf32>
    %16 = tpu.matmul %13, %15, %cst_18 {dimension_numbers = #tpu.dot_dimension_numbers<[1], [0], [0], [1], [0, 0, 1, 1], [], []>} : vector<256x8xbf16>, vector<8x128xbf16>, vector<256x128xf32> -> vector<256x128xf32>
    %17 = arith.addf %11, %16 : vector<256x128xf32>
    %c0_19 = arith.constant 0 : index
    %c18 = arith.constant 18 : index
    %c0_20 = arith.constant 0 : index
    %18 = vector.load %arg1[%c0_19, %c18, %c0_20] : memref<1x326x8xbf16, #tpu.memory_space<vmem>>, vector<1x256x8xbf16>
    %19 = vector.shape_cast %18 : vector<1x256x8xbf16> to vector<256x8xbf16>
    %c3 = arith.constant 3 : index
    %c0_21 = arith.constant 0 : index
    %c0_22 = arith.constant 0 : index
    %20 = vector.load %arg2[%c3, %c0_21, %c0_22] : memref<9x8x128xbf16, #tpu.memory_space<vmem>>, vector<1x8x128xbf16>
    %21 = vector.shape_cast %20 : vector<1x8x128xbf16> to vector<8x128xbf16>
    %cst_23 = arith.constant dense<0.000000e+00> : vector<256x128xf32>
    %22 = tpu.matmul %19, %21, %cst_23 {dimension_numbers = #tpu.dot_dimension_numbers<[1], [0], [0], [1], [0, 0, 1, 1], [], []>} : vector<256x8xbf16>, vector<8x128xbf16>, vector<256x128xf32> -> vector<256x128xf32>
    %23 = arith.addf %17, %22 : vector<256x128xf32>
    %c0_24 = arith.constant 0 : index
    %c19 = arith.constant 19 : index
    %c0_25 = arith.constant 0 : index
    %24 = vector.load %arg1[%c0_24, %c19, %c0_25] : memref<1x326x8xbf16, #tpu.memory_space<vmem>>, vector<1x256x8xbf16>
    %25 = vector.shape_cast %24 : vector<1x256x8xbf16> to vector<256x8xbf16>
    %c4 = arith.constant 4 : index
    %c0_26 = arith.constant 0 : index
    %c0_27 = arith.constant 0 : index
    %26 = vector.load %arg2[%c4, %c0_26, %c0_27] : memref<9x8x128xbf16, #tpu.memory_space<vmem>>, vector<1x8x128xbf16>
    %27 = vector.shape_cast %26 : vector<1x8x128xbf16> to vector<8x128xbf16>
    %cst_28 = arith.constant dense<0.000000e+00> : vector<256x128xf32>
    %28 = tpu.matmul %25, %27, %cst_28 {dimension_numbers = #tpu.dot_dimension_numbers<[1], [0], [0], [1], [0, 0, 1, 1], [], []>} : vector<256x8xbf16>, vector<8x128xbf16>, vector<256x128xf32> -> vector<256x128xf32>
    %29 = arith.addf %23, %28 : vector<256x128xf32>
    %c0_29 = arith.constant 0 : index
    %c20 = arith.constant 20 : index
    %c0_30 = arith.constant 0 : index
    %30 = vector.load %arg1[%c0_29, %c20, %c0_30] : memref<1x326x8xbf16, #tpu.memory_space<vmem>>, vector<1x256x8xbf16>
    %31 = vector.shape_cast %30 : vector<1x256x8xbf16> to vector<256x8xbf16>
    %c5 = arith.constant 5 : index
    %c0_31 = arith.constant 0 : index
    %c0_32 = arith.constant 0 : index
    %32 = vector.load %arg2[%c5, %c0_31, %c0_32] : memref<9x8x128xbf16, #tpu.memory_space<vmem>>, vector<1x8x128xbf16>
    %33 = vector.shape_cast %32 : vector<1x8x128xbf16> to vector<8x128xbf16>
    %cst_33 = arith.constant dense<0.000000e+00> : vector<256x128xf32>
    %34 = tpu.matmul %31, %33, %cst_33 {dimension_numbers = #tpu.dot_dimension_numbers<[1], [0], [0], [1], [0, 0, 1, 1], [], []>} : vector<256x8xbf16>, vector<8x128xbf16>, vector<256x128xf32> -> vector<256x128xf32>
    %35 = arith.addf %29, %34 : vector<256x128xf32>
    %c0_34 = arith.constant 0 : index
    %c36 = arith.constant 36 : index
    %c0_35 = arith.constant 0 : index
    %36 = vector.load %arg1[%c0_34, %c36, %c0_35] : memref<1x326x8xbf16, #tpu.memory_space<vmem>>, vector<1x256x8xbf16>
    %37 = vector.shape_cast %36 : vector<1x256x8xbf16> to vector<256x8xbf16>
    %c6 = arith.constant 6 : index
    %c0_36 = arith.constant 0 : index
    %c0_37 = arith.constant 0 : index
    %38 = vector.load %arg2[%c6, %c0_36, %c0_37] : memref<9x8x128xbf16, #tpu.memory_space<vmem>>, vector<1x8x128xbf16>
    %39 = vector.shape_cast %38 : vector<1x8x128xbf16> to vector<8x128xbf16>
    %cst_38 = arith.constant dense<0.000000e+00> : vector<256x128xf32>
    %40 = tpu.matmul %37, %39, %cst_38 {dimension_numbers = #tpu.dot_dimension_numbers<[1], [0], [0], [1], [0, 0, 1, 1], [], []>} : vector<256x8xbf16>, vector<8x128xbf16>, vector<256x128xf32> -> vector<256x128xf32>
    %41 = arith.addf %35, %40 : vector<256x128xf32>
    %c0_39 = arith.constant 0 : index
    %c37 = arith.constant 37 : index
    %c0_40 = arith.constant 0 : index
    %42 = vector.load %arg1[%c0_39, %c37, %c0_40] : memref<1x326x8xbf16, #tpu.memory_space<vmem>>, vector<1x256x8xbf16>
    %43 = vector.shape_cast %42 : vector<1x256x8xbf16> to vector<256x8xbf16>
    %c7 = arith.constant 7 : index
    %c0_41 = arith.constant 0 : index
    %c0_42 = arith.constant 0 : index
    %44 = vector.load %arg2[%c7, %c0_41, %c0_42] : memref<9x8x128xbf16, #tpu.memory_space<vmem>>, vector<1x8x128xbf16>
    %45 = vector.shape_cast %44 : vector<1x8x128xbf16> to vector<8x128xbf16>
    %cst_43 = arith.constant dense<0.000000e+00> : vector<256x128xf32>
    %46 = tpu.matmul %43, %45, %cst_43 {dimension_numbers = #tpu.dot_dimension_numbers<[1], [0], [0], [1], [0, 0, 1, 1], [], []>} : vector<256x8xbf16>, vector<8x128xbf16>, vector<256x128xf32> -> vector<256x128xf32>
    %47 = arith.addf %41, %46 : vector<256x128xf32>
    %c0_44 = arith.constant 0 : index
    %c38 = arith.constant 38 : index
    %c0_45 = arith.constant 0 : index
    %48 = vector.load %arg1[%c0_44, %c38, %c0_45] : memref<1x326x8xbf16, #tpu.memory_space<vmem>>, vector<1x256x8xbf16>
    %49 = vector.shape_cast %48 : vector<1x256x8xbf16> to vector<256x8xbf16>
    %c8 = arith.constant 8 : index
    %c0_46 = arith.constant 0 : index
    %c0_47 = arith.constant 0 : index
    %50 = vector.load %arg2[%c8, %c0_46, %c0_47] : memref<9x8x128xbf16, #tpu.memory_space<vmem>>, vector<1x8x128xbf16>
    %51 = vector.shape_cast %50 : vector<1x8x128xbf16> to vector<8x128xbf16>
    %cst_48 = arith.constant dense<0.000000e+00> : vector<256x128xf32>
    %52 = tpu.matmul %49, %51, %cst_48 {dimension_numbers = #tpu.dot_dimension_numbers<[1], [0], [0], [1], [0, 0, 1, 1], [], []>} : vector<256x8xbf16>, vector<8x128xbf16>, vector<256x128xf32> -> vector<256x128xf32>
    %53 = arith.addf %47, %52 : vector<256x128xf32>
    %54 = vector.broadcast %0 : vector<1x128xf32> to vector<256x128xf32>
    %55 = arith.addf %53, %54 : vector<256x128xf32>
    %c0_49 = arith.constant 0 : index
    %c0_50 = arith.constant 0 : index
    %c0_51 = arith.constant 0 : index
    %56 = vector.load %arg4[%c0_49, %c0_50, %c0_51] : memref<1x288x128xbf16, #tpu.memory_space<vmem>>, vector<1x256x128xbf16>
    %57 = vector.shape_cast %56 : vector<1x256x128xbf16> to vector<256x128xbf16>
    %58 = arith.extf %57 : vector<256x128xbf16> to vector<256x128xf32>
    %59 = arith.addf %55, %58 : vector<256x128xf32>
    %cst_52 = arith.constant 0.000000e+00 : f32
    %60 = vector.broadcast %cst_52 : f32 to vector<256x128xf32>
    %61 = arith.maximumf %59, %60 : vector<256x128xf32>
    %c0_53 = arith.constant 0 : index
    %c0_54 = arith.constant 0 : index
    %c0_55 = arith.constant 0 : index
    %62 = vector.load %arg5[%c0_53, %c0_54, %c0_55] : memref<1x288x128xf32, #tpu.memory_space<vmem>>, vector<1x256x128xf32>
    %63 = vector.shape_cast %62 : vector<1x256x128xf32> to vector<256x128xf32>
    %64 = vector.shape_cast %61 : vector<256x128xf32> to vector<1x256x128xf32>
    tpu.vector_store %arg5[%c0_53, %c0_54, %c0_55], %64 {strides = array<i32>} : memref<1x288x128xf32, #tpu.memory_space<vmem>>, vector<1x256x128xf32>,
    %c0_56 = arith.constant 0 : index
    %c256 = arith.constant 256 : index
    %c0_57 = arith.constant 0 : index
    %65 = vector.load %arg1[%c0_56, %c256, %c0_57] : memref<1x326x8xbf16, #tpu.memory_space<vmem>>, vector<1x32x8xbf16>
    %66 = vector.shape_cast %65 : vector<1x32x8xbf16> to vector<32x8xbf16>
    %c0_58 = arith.constant 0 : index
    %c0_59 = arith.constant 0 : index
    %c0_60 = arith.constant 0 : index
    %67 = vector.load %arg2[%c0_58, %c0_59, %c0_60] : memref<9x8x128xbf16, #tpu.memory_space<vmem>>, vector<1x8x128xbf16>
    %68 = vector.shape_cast %67 : vector<1x8x128xbf16> to vector<8x128xbf16>
    %cst_61 = arith.constant dense<0.000000e+00> : vector<32x128xf32>
    %69 = tpu.matmul %66, %68, %cst_61 {dimension_numbers = #tpu.dot_dimension_numbers<[1], [0], [0], [1], [0, 0, 1, 1], [], []>} : vector<32x8xbf16>, vector<8x128xbf16>, vector<32x128xf32> -> vector<32x128xf32>
    %c0_62 = arith.constant 0 : index
    %c257 = arith.constant 257 : index
    %c0_63 = arith.constant 0 : index
    %70 = vector.load %arg1[%c0_62, %c257, %c0_63] : memref<1x326x8xbf16, #tpu.memory_space<vmem>>, vector<1x32x8xbf16>
    %71 = vector.shape_cast %70 : vector<1x32x8xbf16> to vector<32x8xbf16>
    %c1_64 = arith.constant 1 : index
    %c0_65 = arith.constant 0 : index
    %c0_66 = arith.constant 0 : index
    %72 = vector.load %arg2[%c1_64, %c0_65, %c0_66] : memref<9x8x128xbf16, #tpu.memory_space<vmem>>, vector<1x8x128xbf16>
    %73 = vector.shape_cast %72 : vector<1x8x128xbf16> to vector<8x128xbf16>
    %cst_67 = arith.constant dense<0.000000e+00> : vector<32x128xf32>
    %74 = tpu.matmul %71, %73, %cst_67 {dimension_numbers = #tpu.dot_dimension_numbers<[1], [0], [0], [1], [0, 0, 1, 1], [], []>} : vector<32x8xbf16>, vector<8x128xbf16>, vector<32x128xf32> -> vector<32x128xf32>
    %75 = arith.addf %69, %74 : vector<32x128xf32>
    %c0_68 = arith.constant 0 : index
    %c258 = arith.constant 258 : index
    %c0_69 = arith.constant 0 : index
    %76 = vector.load %arg1[%c0_68, %c258, %c0_69] : memref<1x326x8xbf16, #tpu.memory_space<vmem>>, vector<1x32x8xbf16>
    %77 = vector.shape_cast %76 : vector<1x32x8xbf16> to vector<32x8xbf16>
    %c2_70 = arith.constant 2 : index
    %c0_71 = arith.constant 0 : index
    %c0_72 = arith.constant 0 : index
    %78 = vector.load %arg2[%c2_70, %c0_71, %c0_72] : memref<9x8x128xbf16, #tpu.memory_space<vmem>>, vector<1x8x128xbf16>
    %79 = vector.shape_cast %78 : vector<1x8x128xbf16> to vector<8x128xbf16>
    %cst_73 = arith.constant dense<0.000000e+00> : vector<32x128xf32>
    %80 = tpu.matmul %77, %79, %cst_73 {dimension_numbers = #tpu.dot_dimension_numbers<[1], [0], [0], [1], [0, 0, 1, 1], [], []>} : vector<32x8xbf16>, vector<8x128xbf16>, vector<32x128xf32> -> vector<32x128xf32>
    %81 = arith.addf %75, %80 : vector<32x128xf32>
    %c0_74 = arith.constant 0 : index
    %c274 = arith.constant 274 : index
    %c0_75 = arith.constant 0 : index
    %82 = vector.load %arg1[%c0_74, %c274, %c0_75] : memref<1x326x8xbf16, #tpu.memory_space<vmem>>, vector<1x32x8xbf16>
    %83 = vector.shape_cast %82 : vector<1x32x8xbf16> to vector<32x8xbf16>
    %c3_76 = arith.constant 3 : index
    %c0_77 = arith.constant 0 : index
    %c0_78 = arith.constant 0 : index
    %84 = vector.load %arg2[%c3_76, %c0_77, %c0_78] : memref<9x8x128xbf16, #tpu.memory_space<vmem>>, vector<1x8x128xbf16>
    %85 = vector.shape_cast %84 : vector<1x8x128xbf16> to vector<8x128xbf16>
    %cst_79 = arith.constant dense<0.000000e+00> : vector<32x128xf32>
    %86 = tpu.matmul %83, %85, %cst_79 {dimension_numbers = #tpu.dot_dimension_numbers<[1], [0], [0], [1], [0, 0, 1, 1], [], []>} : vector<32x8xbf16>, vector<8x128xbf16>, vector<32x128xf32> -> vector<32x128xf32>
    %87 = arith.addf %81, %86 : vector<32x128xf32>
    %c0_80 = arith.constant 0 : index
    %c275 = arith.constant 275 : index
    %c0_81 = arith.constant 0 : index
    %88 = vector.load %arg1[%c0_80, %c275, %c0_81] : memref<1x326x8xbf16, #tpu.memory_space<vmem>>, vector<1x32x8xbf16>
    %89 = vector.shape_cast %88 : vector<1x32x8xbf16> to vector<32x8xbf16>
    %c4_82 = arith.constant 4 : index
    %c0_83 = arith.constant 0 : index
    %c0_84 = arith.constant 0 : index
    %90 = vector.load %arg2[%c4_82, %c0_83, %c0_84] : memref<9x8x128xbf16, #tpu.memory_space<vmem>>, vector<1x8x128xbf16>
    %91 = vector.shape_cast %90 : vector<1x8x128xbf16> to vector<8x128xbf16>
    %cst_85 = arith.constant dense<0.000000e+00> : vector<32x128xf32>
    %92 = tpu.matmul %89, %91, %cst_85 {dimension_numbers = #tpu.dot_dimension_numbers<[1], [0], [0], [1], [0, 0, 1, 1], [], []>} : vector<32x8xbf16>, vector<8x128xbf16>, vector<32x128xf32> -> vector<32x128xf32>
    %93 = arith.addf %87, %92 : vector<32x128xf32>
    %c0_86 = arith.constant 0 : index
    %c276 = arith.constant 276 : index
    %c0_87 = arith.constant 0 : index
    %94 = vector.load %arg1[%c0_86, %c276, %c0_87] : memref<1x326x8xbf16, #tpu.memory_space<vmem>>, vector<1x32x8xbf16>
    %95 = vector.shape_cast %94 : vector<1x32x8xbf16> to vector<32x8xbf16>
    %c5_88 = arith.constant 5 : index
    %c0_89 = arith.constant 0 : index
    %c0_90 = arith.constant 0 : index
    %96 = vector.load %arg2[%c5_88, %c0_89, %c0_90] : memref<9x8x128xbf16, #tpu.memory_space<vmem>>, vector<1x8x128xbf16>
    %97 = vector.shape_cast %96 : vector<1x8x128xbf16> to vector<8x128xbf16>
    %cst_91 = arith.constant dense<0.000000e+00> : vector<32x128xf32>
    %98 = tpu.matmul %95, %97, %cst_91 {dimension_numbers = #tpu.dot_dimension_numbers<[1], [0], [0], [1], [0, 0, 1, 1], [], []>} : vector<32x8xbf16>, vector<8x128xbf16>, vector<32x128xf32> -> vector<32x128xf32>
    %99 = arith.addf %93, %98 : vector<32x128xf32>
    %c0_92 = arith.constant 0 : index
    %c292 = arith.constant 292 : index
    %c0_93 = arith.constant 0 : index
    %100 = vector.load %arg1[%c0_92, %c292, %c0_93] : memref<1x326x8xbf16, #tpu.memory_space<vmem>>, vector<1x32x8xbf16>
    %101 = vector.shape_cast %100 : vector<1x32x8xbf16> to vector<32x8xbf16>
    %c6_94 = arith.constant 6 : index
    %c0_95 = arith.constant 0 : index
    %c0_96 = arith.constant 0 : index
    %102 = vector.load %arg2[%c6_94, %c0_95, %c0_96] : memref<9x8x128xbf16, #tpu.memory_space<vmem>>, vector<1x8x128xbf16>
    %103 = vector.shape_cast %102 : vector<1x8x128xbf16> to vector<8x128xbf16>
    %cst_97 = arith.constant dense<0.000000e+00> : vector<32x128xf32>
    %104 = tpu.matmul %101, %103, %cst_97 {dimension_numbers = #tpu.dot_dimension_numbers<[1], [0], [0], [1], [0, 0, 1, 1], [], []>} : vector<32x8xbf16>, vector<8x128xbf16>, vector<32x128xf32> -> vector<32x128xf32>
    %105 = arith.addf %99, %104 : vector<32x128xf32>
    %c0_98 = arith.constant 0 : index
    %c293 = arith.constant 293 : index
    %c0_99 = arith.constant 0 : index
    %106 = vector.load %arg1[%c0_98, %c293, %c0_99] : memref<1x326x8xbf16, #tpu.memory_space<vmem>>, vector<1x32x8xbf16>
    %107 = vector.shape_cast %106 : vector<1x32x8xbf16> to vector<32x8xbf16>
    %c7_100 = arith.constant 7 : index
    %c0_101 = arith.constant 0 : index
    %c0_102 = arith.constant 0 : index
    %108 = vector.load %arg2[%c7_100, %c0_101, %c0_102] : memref<9x8x128xbf16, #tpu.memory_space<vmem>>, vector<1x8x128xbf16>
    %109 = vector.shape_cast %108 : vector<1x8x128xbf16> to vector<8x128xbf16>
    %cst_103 = arith.constant dense<0.000000e+00> : vector<32x128xf32>
    %110 = tpu.matmul %107, %109, %cst_103 {dimension_numbers = #tpu.dot_dimension_numbers<[1], [0], [0], [1], [0, 0, 1, 1], [], []>} : vector<32x8xbf16>, vector<8x128xbf16>, vector<32x128xf32> -> vector<32x128xf32>
    %111 = arith.addf %105, %110 : vector<32x128xf32>
    %c0_104 = arith.constant 0 : index
    %c294 = arith.constant 294 : index
    %c0_105 = arith.constant 0 : index
    %112 = vector.load %arg1[%c0_104, %c294, %c0_105] : memref<1x326x8xbf16, #tpu.memory_space<vmem>>, vector<1x32x8xbf16>
    %113 = vector.shape_cast %112 : vector<1x32x8xbf16> to vector<32x8xbf16>
    %c8_106 = arith.constant 8 : index
    %c0_107 = arith.constant 0 : index
    %c0_108 = arith.constant 0 : index
    %114 = vector.load %arg2[%c8_106, %c0_107, %c0_108] : memref<9x8x128xbf16, #tpu.memory_space<vmem>>, vector<1x8x128xbf16>
    %115 = vector.shape_cast %114 : vector<1x8x128xbf16> to vector<8x128xbf16>
    %cst_109 = arith.constant dense<0.000000e+00> : vector<32x128xf32>
    %116 = tpu.matmul %113, %115, %cst_109 {dimension_numbers = #tpu.dot_dimension_numbers<[1], [0], [0], [1], [0, 0, 1, 1], [], []>} : vector<32x8xbf16>, vector<8x128xbf16>, vector<32x128xf32> -> vector<32x128xf32>
    %117 = arith.addf %111, %116 : vector<32x128xf32>
    %118 = vector.broadcast %0 : vector<1x128xf32> to vector<32x128xf32>
    %119 = arith.addf %117, %118 : vector<32x128xf32>
    %c0_110 = arith.constant 0 : index
    %c256_111 = arith.constant 256 : index
    %c0_112 = arith.constant 0 : index
    %120 = vector.load %arg4[%c0_110, %c256_111, %c0_112] : memref<1x288x128xbf16, #tpu.memory_space<vmem>>, vector<1x32x128xbf16>
    %121 = vector.shape_cast %120 : vector<1x32x128xbf16> to vector<32x128xbf16>
    %122 = arith.extf %121 : vector<32x128xbf16> to vector<32x128xf32>
    %123 = arith.addf %119, %122 : vector<32x128xf32>
    %cst_113 = arith.constant 0.000000e+00 : f32
    %124 = vector.broadcast %cst_113 : f32 to vector<32x128xf32>
    %125 = arith.maximumf %123, %124 : vector<32x128xf32>
    %c0_114 = arith.constant 0 : index
    %c256_115 = arith.constant 256 : index
    %c0_116 = arith.constant 0 : index
    %126 = vector.load %arg5[%c0_114, %c256_115, %c0_116] : memref<1x288x128xf32, #tpu.memory_space<vmem>>, vector<1x32x128xf32>
    %127 = vector.shape_cast %126 : vector<1x32x128xf32> to vector<32x128xf32>
    %128 = vector.shape_cast %125 : vector<32x128xf32> to vector<1x32x128xf32>
    tpu.vector_store %arg5[%c0_114, %c256_115, %c0_116], %128 {strides = array<i32>} : memref<1x288x128xf32, #tpu.memory_space<vmem>>, vector<1x32x128xf32>,
    return
  }
  func.func @transform_0(%arg0: i32) -> (i32, i32, i32) {
    %c0_i32 = arith.constant 0 : i32
    %c0_i32_0 = arith.constant 0 : i32
    %c0_i32_1 = arith.constant 0 : i32
    return %arg0, %c0_i32, %c0_i32_0 : i32, i32, i32
  }
  func.func @transform_1(%arg0: i32) -> (i32, i32, i32) {
    %c0_i32 = arith.constant 0 : i32
    %c0_i32_0 = arith.constant 0 : i32
    %c0_i32_1 = arith.constant 0 : i32
    %c0_i32_2 = arith.constant 0 : i32
    return %c0_i32, %c0_i32_0, %c0_i32_1 : i32, i32, i32
  }
  func.func @transform_2(%arg0: i32) -> (i32, i32) {
    %c0_i32 = arith.constant 0 : i32
    %c0_i32_0 = arith.constant 0 : i32
    %c0_i32_1 = arith.constant 0 : i32
    return %c0_i32, %c0_i32_0 : i32, i32
  }
  func.func @transform_3(%arg0: i32) -> (i32, i32, i32) {
    %c0_i32 = arith.constant 0 : i32
    %c0_i32_0 = arith.constant 0 : i32
    %c0_i32_1 = arith.constant 0 : i32
    return %arg0, %c0_i32, %c0_i32_0 : i32, i32, i32
  }
  func.func @transform_4(%arg0: i32) -> (i32, i32, i32) {
    %c0_i32 = arith.constant 0 : i32
    %c0_i32_0 = arith.constant 0 : i32
    %c0_i32_1 = arith.constant 0 : i32
    return %arg0, %c0_i32, %c0_i32_0 : i32, i32, i32
  }
}

</mosaic_0001>

<bundles_post_ra>
// kernel: basic_block_forward.4
= control target key start
LH: loop header
LB: loop body
LE: loop exit
PB: predicated region body
PF: predicated region fallthrough
CT: control target
= control target key end

     0   :  { %s2343_s12 = smov 0   ;;  %s2345_s13 = smov 0   ;;  %s2752_s0 = inlined_call_operand.vmem [shape: bf16[576,4], index: 0, kind: input, shape index: {}]   ;;  %s2753_s1 = inlined_call_operand.vmem [shape: bf16[4,128], index: 1, kind: input, shape index: {}]   ;;  %s2754_s2 = inlined_call_operand.vmem [shape: f32[1,128], index: 2, kind: input, shape index: {}]   ;;  %s2755_s3 = inlined_call_operand.vmem [shape: bf16[576,128], index: 3, kind: output, shape index: {}]  }
   0x1   :  { %s2347_s14 = smov 0  }
   0x2 LB: > { %s2356_s15 = sadd.s32 4294967295, %s2289_s14   ;;  %s2358_s16 = sadd.s32 1, %s2289_s14   ;;  %s2289_s14 = sphi %s2347_s14, %s2762_s14   ;;  %s2285_s13 = sphi %s2345_s13, %s2761_s13   ;;  %s2281_s12 = sphi %s2343_s12, %s2760_s12  }
   0x3   : > { %s85_s17 = ssub.s32 %s2289_s14, %s2358_s16  ;;  %s88_s18 = sadd.s32 1, %s2285_s13 }
   0x4   : > { %p86_p0 = scmp.eq.s32.totalorder %s85_s17, 0  ;;  %p98_p1 = scmp.ne.s32.totalorder %s2285_s13, %s2281_s12 }
   0x5   : > { %p99_p2 = scmp.eq.s32.totalorder %s2356_s15, 1  ;;  %p1604_p3 = scmp.ge.s32.totalorder %s2289_s14, 1 }
   0x6   : > { %s2366_s19 = scalar_select %p86_p0, %s2285_s13, %s88_s18  }
   0x7   : > { %p2368_p4 = por %p99_p2, %p98_p1  ;;  %p146_p5 = scmp.lt.s32.totalorder %s2289_s14, 3 }
   0x9   : > { %p147_p6 = pnand %p1604_p3, %p146_p5 }
   0xa   : > { %v257_v0 = vld [vmem:[%s2753_s1] sm:$0x3] (!%p147_p6)  ;;  %vm522_vm0 = vcmask (!%p147_p6), 1041408   ;;  %s2376_s23 = sshll.u32 (!%p147_p6), %s2356_s15, 6  ;;  %vm425_vm1 = vcmask (!%p147_p6), 31744   ;;  %s170_s29 = sand.u32 (!%p147_p6), 1, %s2281_s12  }
   0xb   : > { %150 = sbr.rel (%p147_p6) target bundleno = 392 (0x188), region = 32  ;;  %2113 = vmatprep.subr.msk.bf16.mxu0 (!%p147_p6), %vm522_vm0, %v257_v0  ;;  %2114 = vmatprep.subr.msk.bf16.mxu1 (!%p147_p6), %vm522_vm0, %v257_v0  ;;  %v524_v1 = vsel (!%p147_p6), %vm522_vm0, %v257_v0, 0  ;;  %p178_p7 = scmp.lt.s32.totalorder (!%p147_p6), %s2376_s23, 71  ;;  %v2453_v35 = vld [vmem:[%s2754_s2] ss:$0 sm:$0xff] (!%p147_p6) }
   0xc   : > { %2046 = vmatpush3.bf16.msra.mxu0 (!%p147_p6), %v524_v1  ;;  %2112 = vmatpush3.bf16.msra.mxu1 (!%p147_p6), %v524_v1  ;;  %s1605_s5 = sshll.u32 (!%p147_p6), %s170_s29, 8 }
   0xd   : > { %s2463_s6 = scalar_lea.vmem (!%p147_p6), [#allocation2], %s1605_s5  }
  0x12   : > { %s179_s24 = scalar_select %p178_p7, %s2376_s23, 71 }
  0x13   : > { %s1143_s7 = ssub.s32 (%p2368_p4), 72, %s2376_s23  ;;  %s1818_s8 = sshll.u32 (%p2368_p4), %s2356_s15, 8 }
  0x14   : > { %s1607_s25 = sshll.u32 %s179_s24, 2  ;;  %p1144_p8 = scmp.lt.s32.totalorder (%p2368_p4), %s1143_s7, 64 }
  0x15   : > { %s2383_s28 = scalar_lea.vmem %s2752_s0, %s1607_s25  ;;  %s2560_s11 = scalar_lea.vmem (%p2368_p4), %s2755_s3, %s1818_s8  }
  0x16   : > { %v2203_v2 = vld [vmem:[%s2383_s28] sm:$0xff]   ;;  %v2205_v4 = vld [vmem:[%s2383_s28 + $0x8] sm:$0xff]   ;;  %v2207_v6 = vld [vmem:[%s2383_s28 + $0x10] sm:$0xff]  }
  0x17   : > { %v2204_v3 = vld [vmem:[%s2383_s28 + $0x80] sm:$0xff]   ;;  %2047 = vmatprep.mubr.msk.bf16.mxu0 %vm425_vm1, %v2203_v2  ;;  %v2206_v5 = vld [vmem:[%s2383_s28 + $0x88] sm:$0xff]   ;;  %v2208_v7 = vld [vmem:[%s2383_s28 + $0x90] sm:$0xff]  }
  0x18   : > { %2079 = vmatprep.mubr.msk.bf16.mxu1 %vm425_vm1, %v2204_v3  ;;  %2048 = vmatmul.mubr.msk.bf16.vlgmr.msra.gmra.mrb[0].mxu0 %vm425_vm1, %v2205_v4  ;;  %v2209_v8 = vld [vmem:[%s2383_s28 + $0x18] sm:$0xff]   ;;  %v2211_v10 = vld [vmem:[%s2383_s28 + $0x20] sm:$0xff]   ;;  %v2213_v12 = vld [vmem:[%s2383_s28 + $0x28] sm:$0xff]  }
  0x19   : > { %2080 = vmatmul.mubr.msk.bf16.vlgmr.msra.gmra.mrb[0].mxu1 %vm425_vm1, %v2206_v5  ;;  %2051 = vmatprep.mubr.msk.bf16.mxu0 %vm425_vm1, %v2207_v6  ;;  %v2210_v9 = vld [vmem:[%s2383_s28 + $0x98] sm:$0xff]   ;;  %v2212_v11 = vld [vmem:[%s2383_s28 + $0xa0] sm:$0xff]   ;;  %v2214_v13 = vld [vmem:[%s2383_s28 + $0xa8] sm:$0xff]  }
  0x1a   : > { %2083 = vmatprep.mubr.msk.bf16.mxu1 %vm425_vm1, %v2208_v7  ;;  %v2215_v14 = vld [vmem:[%s2383_s28 + $0x30] sm:$0xff]   ;;  %v2217_v16 = vld [vmem:[%s2383_s28 + $0x38] sm:$0xff]   ;;  %v2219_v18 = vld [vmem:[%s2383_s28 + $0x40] sm:$0xff]  }
  0x1b   : > { %v2216_v15 = vld [vmem:[%s2383_s28 + $0xb0] sm:$0xff]   ;;  %v2218_v17 = vld [vmem:[%s2383_s28 + $0xb8] sm:$0xff]   ;;  %v2220_v19 = vld [vmem:[%s2383_s28 + $0xc0] sm:$0xff]  }
  0x1c   : > { %v2221_v20 = vld [vmem:[%s2383_s28 + $0x48] sm:$0xff]   ;;  %v2223_v22 = vld [vmem:[%s2383_s28 + $0x50] sm:$0xff]   ;;  %v2225_v24 = vld [vmem:[%s2383_s28 + $0x58] sm:$0xff]  }
  0x1d   : > { %v2222_v21 = vld [vmem:[%s2383_s28 + $0xc8] sm:$0xff]   ;;  %v2224_v23 = vld [vmem:[%s2383_s28 + $0xd0] sm:$0xff]   ;;  %v2226_v25 = vld [vmem:[%s2383_s28 + $0xd8] sm:$0xff]  }
  0x1e   : > { %v2227_v26 = vld [vmem:[%s2383_s28 + $0x60] sm:$0xff]   ;;  %v2229_v28 = vld [vmem:[%s2383_s28 + $0x68] sm:$0xff]   ;;  %v2231_v30 = vld [vmem:[%s2383_s28 + $0x70] sm:$0xff]  }
  0x1f   : > { %v2228_v27 = vld [vmem:[%s2383_s28 + $0xe0] sm:$0xff]   ;;  %v2230_v29 = vld [vmem:[%s2383_s28 + $0xe8] sm:$0xff]   ;;  %v2232_v31 = vld [vmem:[%s2383_s28 + $0xf0] sm:$0xff]  }
  0x20   : > { %2052 = vmatmul.mubr.msk.bf16.gmra.mrb[4].mxu0 %vm425_vm1, %v2209_v8  ;;  %v2233_v32 = vld [vmem:[%s2383_s28 + $0x78] sm:$0xff]  }
  0x21   : > { %2084 = vmatmul.mubr.msk.bf16.gmra.mrb[4].mxu1 %vm425_vm1, %v2210_v9  ;;  %2055 = vmatprep.mubr.msk.bf16.mxu0 %vm425_vm1, %v2211_v10  ;;  %v2234_v33 = vld [vmem:[%s2383_s28 + $0xf8] sm:$0xff]  }
  0x22   : > { %2087 = vmatprep.mubr.msk.bf16.mxu1 %vm425_vm1, %v2212_v11 }
  0x28   : > { %2056 = vmatmul.mubr.msk.bf16.gmra.mrb[8].mxu0 %vm425_vm1, %v2213_v12 }
  0x29   : > { %2088 = vmatmul.mubr.msk.bf16.gmra.mrb[8].mxu1 %vm425_vm1, %v2214_v13  ;;  %2059 = vmatprep.mubr.msk.bf16.mxu0 %vm425_vm1, %v2215_v14 }
  0x2a   : > { %2091 = vmatprep.mubr.msk.bf16.mxu1 %vm425_vm1, %v2216_v15 }
  0x30   : > { %2060 = vmatmul.mubr.msk.bf16.gmra.mrb[12].mxu0 %vm425_vm1, %v2217_v16 }
  0x31   : > { %2092 = vmatmul.mubr.msk.bf16.gmra.mrb[12].mxu1 %vm425_vm1, %v2218_v17  ;;  %2063 = vmatprep.mubr.msk.bf16.mxu0 %vm425_vm1, %v2219_v18 }
  0x32   : > { %2095 = vmatprep.mubr.msk.bf16.mxu1 %vm425_vm1, %v2220_v19 }
  0x38   : > { %2064 = vmatmul.mubr.msk.bf16.gmra.mrb[16].mxu0 %vm425_vm1, %v2221_v20 }
  0x39   : > { %2096 = vmatmul.mubr.msk.bf16.gmra.mrb[16].mxu1 %vm425_vm1, %v2222_v21  ;;  %2067 = vmatprep.mubr.msk.bf16.mxu0 %vm425_vm1, %v2223_v22 }
  0x3a   : > { %2099 = vmatprep.mubr.msk.bf16.mxu1 %vm425_vm1, %v2224_v23 }
  0x40   : > { %2068 = vmatmul.mubr.msk.bf16.gmra.mrb[20].mxu0 %vm425_vm1, %v2225_v24 }
  0x41   : > { %2100 = vmatmul.mubr.msk.bf16.gmra.mrb[20].mxu1 %vm425_vm1, %v2226_v25  ;;  %2071 = vmatprep.mubr.msk.bf16.mxu0 %vm425_vm1, %v2227_v26 }
  0x42   : > { %2103 = vmatprep.mubr.msk.bf16.mxu1 %vm425_vm1, %v2228_v27 }
  0x48   : > { %2072 = vmatmul.mubr.msk.bf16.gmra.mrb[24].mxu0 %vm425_vm1, %v2229_v28 }
  0x49   : > { %2104 = vmatmul.mubr.msk.bf16.gmra.mrb[24].mxu1 %vm425_vm1, %v2230_v29  ;;  %2075 = vmatprep.mubr.msk.bf16.mxu0 %vm425_vm1, %v2231_v30 }
  0x4a   : > { %2107 = vmatprep.mubr.msk.bf16.mxu1 %vm425_vm1, %v2232_v31 }
  0x50   : > { %2076 = vmatmul.mubr.msk.bf16.gmra.mrb[28].mxu0 %vm425_vm1, %v2233_v32 }
  0x51   : > { %2108 = vmatmul.mubr.msk.bf16.gmra.mrb[28].mxu1 %vm425_vm1, %v2234_v33 }
  0xeb   : > { %v2049_v34 = vpop.f32.mrb[0].mxu0 }
  0xec   : > { %v2081_v36 = vpop.f32.mrb[0].mxu1  ;;  %v560_v37 = vpop.f32.mrb[1].mxu0  ;;  %v569_v40 = vadd.f32 %v2049_v34, %v2453_v35 }
  0xed   : > { %v688_v38 = vpop.f32.mrb[1].mxu1  ;;  %v2050_v39 = vpop.f32.mrb[2].mxu0  ;;  %v697_v44 = vadd.f32 %v2081_v36, %v2453_v35  ;;  %v561_v45 = vadd.f32 %v2453_v35, %v560_v37 }
  0xee   : > { %v572_v41 = vadd.f32 %v2050_v39, %v2453_v35  ;;  %v2082_v42 = vpop.f32.mrb[2].mxu1  ;;  %v563_v43 = vpop.f32.mrb[3].mxu0  ;;  %v689_v49 = vadd.f32 %v2453_v35, %v688_v38 }
  0xef   : > { %v700_v46 = vadd.f32 %v2082_v42, %v2453_v35  ;;  %v564_v47 = vadd.f32 %v2453_v35, %v563_v43  ;;  %v691_v48 = vpop.f32.mrb[3].mxu1 }
  0xf0   : > { %v1829_v50 = vpack.c.bf16 %v572_v41, %v569_v40  ;;  %v692_v51 = vadd.f32 %v2453_v35, %v691_v48 }
  0xf1   : > { %v1909_v52 = vpack.c.bf16 %v700_v46, %v697_v44  ;;  %v1824_v53 = vpack.c.bf16 %v564_v47, %v561_v45 }
  0xf2   : > { %1981 = vst [vmem:[%s2463_s6 + $0x8] sm:$0xff] %v1829_v50   ;;  %v1904_v54 = vpack.c.bf16 %v692_v51, %v689_v49 }
  0xf3   : > { %1997 = vst [vmem:[%s2463_s6 + $0x88] sm:$0xff] %v1909_v52   ;;  %1825 = vst [vmem:[%s2463_s6] sm:$0xff] %v1824_v53   ;;  %v2053_v55 = vpop.f32.mrb[4].mxu0 }
  0xf4   : > { %1996 = vst [vmem:[%s2463_s6 + $0x80] sm:$0xff] %v1904_v54   ;;  %v2085_v56 = vpop.f32.mrb[4].mxu1  ;;  %v576_v57 = vpop.f32.mrb[5].mxu0  ;;  %v585_v60 = vadd.f32 %v2053_v55, %v2453_v35 }
  0xf5   : > { %v704_v58 = vpop.f32.mrb[5].mxu1  ;;  %v2054_v59 = vpop.f32.mrb[6].mxu0  ;;  %v713_v0 = vadd.f32 %v2085_v56, %v2453_v35  ;;  %v577_v1 = vadd.f32 %v2453_v35, %v576_v57 }
  0xf6   : > { %v588_v61 = vadd.f32 %v2054_v59, %v2453_v35  ;;  %v2086_v62 = vpop.f32.mrb[6].mxu1  ;;  %v579_v63 = vpop.f32.mrb[7].mxu0  ;;  %v705_v5 = vadd.f32 %v2453_v35, %v704_v58 }
  0xf7   : > { %v716_v2 = vadd.f32 %v2086_v62, %v2453_v35  ;;  %v580_v3 = vadd.f32 %v2453_v35, %v579_v63  ;;  %v707_v4 = vpop.f32.mrb[7].mxu1 }
  0xf8   : > { %v1839_v6 = vpack.c.bf16 %v588_v61, %v585_v60  ;;  %v708_v7 = vadd.f32 %v2453_v35, %v707_v4 }
  0xf9   : > { %v1919_v8 = vpack.c.bf16 %v716_v2, %v713_v0  ;;  %v1834_v9 = vpack.c.bf16 %v580_v3, %v577_v1 }
  0xfa   : > { %1983 = vst [vmem:[%s2463_s6 + $0x18] sm:$0xff] %v1839_v6   ;;  %v1914_v10 = vpack.c.bf16 %v708_v7, %v705_v5 }
  0xfb   : > { %1999 = vst [vmem:[%s2463_s6 + $0x98] sm:$0xff] %v1919_v8   ;;  %1982 = vst [vmem:[%s2463_s6 + $0x10] sm:$0xff] %v1834_v9   ;;  %v2057_v11 = vpop.f32.mrb[8].mxu0 }
  0xfc   : > { %1998 = vst [vmem:[%s2463_s6 + $0x90] sm:$0xff] %v1914_v10   ;;  %v2089_v12 = vpop.f32.mrb[8].mxu1  ;;  %v592_v13 = vpop.f32.mrb[9].mxu0  ;;  %v601_v16 = vadd.f32 %v2057_v11, %v2453_v35 }
  0xfd   : > { %v720_v14 = vpop.f32.mrb[9].mxu1  ;;  %v2058_v15 = vpop.f32.mrb[10].mxu0  ;;  %v729_v20 = vadd.f32 %v2089_v12, %v2453_v35  ;;  %v593_v21 = vadd.f32 %v2453_v35, %v592_v13 }
  0xfe   : > { %v604_v17 = vadd.f32 %v2058_v15, %v2453_v35  ;;  %v2090_v18 = vpop.f32.mrb[10].mxu1  ;;  %v595_v19 = vpop.f32.mrb[11].mxu0  ;;  %v721_v25 = vadd.f32 %v2453_v35, %v720_v14 }
  0xff   : > { %v732_v22 = vadd.f32 %v2090_v18, %v2453_v35  ;;  %v596_v23 = vadd.f32 %v2453_v35, %v595_v19  ;;  %v723_v24 = vpop.f32.mrb[11].mxu1 }
 0x100   : > { %v1849_v26 = vpack.c.bf16 %v604_v17, %v601_v16  ;;  %v724_v27 = vadd.f32 %v2453_v35, %v723_v24 }
 0x101   : > { %v1929_v28 = vpack.c.bf16 %v732_v22, %v729_v20  ;;  %v1844_v29 = vpack.c.bf16 %v596_v23, %v593_v21 }
 0x102   : > { %1985 = vst [vmem:[%s2463_s6 + $0x28] sm:$0xff] %v1849_v26   ;;  %v1924_v30 = vpack.c.bf16 %v724_v27, %v721_v25 }
 0x103   : > { %2001 = vst [vmem:[%s2463_s6 + $0xa8] sm:$0xff] %v1929_v28   ;;  %1984 = vst [vmem:[%s2463_s6 + $0x20] sm:$0xff] %v1844_v29   ;;  %v2061_v31 = vpop.f32.mrb[12].mxu0 }
 0x104   : > { %2000 = vst [vmem:[%s2463_s6 + $0xa0] sm:$0xff] %v1924_v30   ;;  %v2093_v32 = vpop.f32.mrb[12].mxu1  ;;  %v608_v33 = vpop.f32.mrb[13].mxu0  ;;  %v617_v37 = vadd.f32 %v2061_v31, %v2453_v35 }
 0x105   : > { %v736_v34 = vpop.f32.mrb[13].mxu1  ;;  %v2062_v36 = vpop.f32.mrb[14].mxu0  ;;  %v745_v41 = vadd.f32 %v2093_v32, %v2453_v35  ;;  %v609_v42 = vadd.f32 %v2453_v35, %v608_v33 }
 0x106   : > { %v620_v38 = vadd.f32 %v2062_v36, %v2453_v35  ;;  %v2094_v39 = vpop.f32.mrb[14].mxu1  ;;  %v611_v40 = vpop.f32.mrb[15].mxu0  ;;  %v737_v46 = vadd.f32 %v2453_v35, %v736_v34 }
 0x107   : > { %v748_v43 = vadd.f32 %v2094_v39, %v2453_v35  ;;  %v612_v44 = vadd.f32 %v2453_v35, %v611_v40  ;;  %v739_v45 = vpop.f32.mrb[15].mxu1 }
 0x108   : > { %v1859_v47 = vpack.c.bf16 %v620_v38, %v617_v37  ;;  %v740_v48 = vadd.f32 %v2453_v35, %v739_v45 }
 0x109   : > { %v1939_v49 = vpack.c.bf16 %v748_v43, %v745_v41  ;;  %v1854_v50 = vpack.c.bf16 %v612_v44, %v609_v42 }
 0x10a   : > { %1987 = vst [vmem:[%s2463_s6 + $0x38] sm:$0xff] %v1859_v47   ;;  %v1934_v51 = vpack.c.bf16 %v740_v48, %v737_v46 }
 0x10b   : > { %2003 = vst [vmem:[%s2463_s6 + $0xb8] sm:$0xff] %v1939_v49   ;;  %1986 = vst [vmem:[%s2463_s6 + $0x30] sm:$0xff] %v1854_v50   ;;  %v2065_v52 = vpop.f32.mrb[16].mxu0 }
 0x10c   : > { %2002 = vst [vmem:[%s2463_s6 + $0xb0] sm:$0xff] %v1934_v51   ;;  %v2097_v53 = vpop.f32.mrb[16].mxu1  ;;  %v624_v54 = vpop.f32.mrb[17].mxu0  ;;  %v633_v57 = vadd.f32 %v2065_v52, %v2453_v35 }
 0x10d   : > { %v752_v55 = vpop.f32.mrb[17].mxu1  ;;  %v2066_v56 = vpop.f32.mrb[18].mxu0  ;;  %v761_v61 = vadd.f32 %v2097_v53, %v2453_v35  ;;  %v625_v62 = vadd.f32 %v2453_v35, %v624_v54 }
 0x10e   : > { %v636_v58 = vadd.f32 %v2066_v56, %v2453_v35  ;;  %v2098_v59 = vpop.f32.mrb[18].mxu1  ;;  %v627_v60 = vpop.f32.mrb[19].mxu0  ;;  %v753_v2 = vadd.f32 %v2453_v35, %v752_v55 }
 0x10f   : > { %v764_v63 = vadd.f32 %v2098_v59, %v2453_v35  ;;  %v628_v0 = vadd.f32 %v2453_v35, %v627_v60  ;;  %v755_v1 = vpop.f32.mrb[19].mxu1 }
 0x110   : > { %v1869_v3 = vpack.c.bf16 %v636_v58, %v633_v57  ;;  %v756_v4 = vadd.f32 %v2453_v35, %v755_v1 }
 0x111   : > { %v1949_v5 = vpack.c.bf16 %v764_v63, %v761_v61  ;;  %v1864_v6 = vpack.c.bf16 %v628_v0, %v625_v62 }
 0x112   : > { %1989 = vst [vmem:[%s2463_s6 + $0x48] sm:$0xff] %v1869_v3   ;;  %v1944_v7 = vpack.c.bf16 %v756_v4, %v753_v2 }
 0x113   : > { %2005 = vst [vmem:[%s2463_s6 + $0xc8] sm:$0xff] %v1949_v5   ;;  %1988 = vst [vmem:[%s2463_s6 + $0x40] sm:$0xff] %v1864_v6   ;;  %v2069_v8 = vpop.f32.mrb[20].mxu0 }
 0x114   : > { %2004 = vst [vmem:[%s2463_s6 + $0xc0] sm:$0xff] %v1944_v7   ;;  %v2101_v9 = vpop.f32.mrb[20].mxu1  ;;  %v640_v10 = vpop.f32.mrb[21].mxu0  ;;  %v649_v13 = vadd.f32 %v2069_v8, %v2453_v35 }
 0x115   : > { %v768_v11 = vpop.f32.mrb[21].mxu1  ;;  %v2070_v12 = vpop.f32.mrb[22].mxu0  ;;  %v777_v17 = vadd.f32 %v2101_v9, %v2453_v35  ;;  %v641_v18 = vadd.f32 %v2453_v35, %v640_v10 }
 0x116   : > { %v652_v14 = vadd.f32 %v2070_v12, %v2453_v35  ;;  %v2102_v15 = vpop.f32.mrb[22].mxu1  ;;  %v643_v16 = vpop.f32.mrb[23].mxu0  ;;  %v769_v22 = vadd.f32 %v2453_v35, %v768_v11 }
 0x117   : > { %v780_v19 = vadd.f32 %v2102_v15, %v2453_v35  ;;  %v644_v20 = vadd.f32 %v2453_v35, %v643_v16  ;;  %v771_v21 = vpop.f32.mrb[23].mxu1 }
 0x118   : > { %v1879_v23 = vpack.c.bf16 %v652_v14, %v649_v13  ;;  %v772_v24 = vadd.f32 %v2453_v35, %v771_v21 }
 0x119   : > { %v1959_v25 = vpack.c.bf16 %v780_v19, %v777_v17  ;;  %v1874_v26 = vpack.c.bf16 %v644_v20, %v641_v18 }
 0x11a   : > { %1991 = vst [vmem:[%s2463_s6 + $0x58] sm:$0xff] %v1879_v23   ;;  %v1954_v27 = vpack.c.bf16 %v772_v24, %v769_v22 }
 0x11b   : > { %2007 = vst [vmem:[%s2463_s6 + $0xd8] sm:$0xff] %v1959_v25   ;;  %1990 = vst [vmem:[%s2463_s6 + $0x50] sm:$0xff] %v1874_v26   ;;  %v2073_v28 = vpop.f32.mrb[24].mxu0 }
 0x11c   : > { %2006 = vst [vmem:[%s2463_s6 + $0xd0] sm:$0xff] %v1954_v27   ;;  %v2105_v29 = vpop.f32.mrb[24].mxu1  ;;  %v656_v30 = vpop.f32.mrb[25].mxu0  ;;  %v665_v33 = vadd.f32 %v2073_v28, %v2453_v35 }
 0x11d   : > { %v784_v31 = vpop.f32.mrb[25].mxu1  ;;  %v2074_v32 = vpop.f32.mrb[26].mxu0  ;;  %v793_v38 = vadd.f32 %v2105_v29, %v2453_v35  ;;  %v657_v39 = vadd.f32 %v2453_v35, %v656_v30 }
 0x11e   : > { %v668_v34 = vadd.f32 %v2074_v32, %v2453_v35  ;;  %v2106_v36 = vpop.f32.mrb[26].mxu1  ;;  %v659_v37 = vpop.f32.mrb[27].mxu0  ;;  %v785_v43 = vadd.f32 %v2453_v35, %v784_v31 }
 0x11f   : > { %v796_v40 = vadd.f32 %v2106_v36, %v2453_v35  ;;  %v660_v41 = vadd.f32 %v2453_v35, %v659_v37  ;;  %v787_v42 = vpop.f32.mrb[27].mxu1 }
 0x120   : > { %v1889_v44 = vpack.c.bf16 %v668_v34, %v665_v33  ;;  %v788_v45 = vadd.f32 %v2453_v35, %v787_v42 }
 0x121   : > { %v1969_v46 = vpack.c.bf16 %v796_v40, %v793_v38  ;;  %v1884_v47 = vpack.c.bf16 %v660_v41, %v657_v39 }
 0x122   : > { %1993 = vst [vmem:[%s2463_s6 + $0x68] sm:$0xff] %v1889_v44   ;;  %v1964_v48 = vpack.c.bf16 %v788_v45, %v785_v43 }
 0x123   : > { %2009 = vst [vmem:[%s2463_s6 + $0xe8] sm:$0xff] %v1969_v46   ;;  %1992 = vst [vmem:[%s2463_s6 + $0x60] sm:$0xff] %v1884_v47   ;;  %v2077_v49 = vpop.f32.mrb[28].mxu0 }
 0x124   : > { %2008 = vst [vmem:[%s2463_s6 + $0xe0] sm:$0xff] %v1964_v48   ;;  %v2109_v50 = vpop.f32.mrb[28].mxu1  ;;  %v672_v51 = vpop.f32.mrb[29].mxu0  ;;  %v681_v54 = vadd.f32 %v2077_v49, %v2453_v35 }
 0x125   : > { %v800_v52 = vpop.f32.mrb[29].mxu1  ;;  %v2078_v53 = vpop.f32.mrb[30].mxu0  ;;  %v809_v58 = vadd.f32 %v2109_v50, %v2453_v35  ;;  %v673_v59 = vadd.f32 %v2453_v35, %v672_v51 }
 0x126   : > { %v684_v55 = vadd.f32 %v2078_v53, %v2453_v35  ;;  %v2110_v56 = vpop.f32.mrb[30].mxu1  ;;  %v675_v57 = vpop.f32.mrb[31].mxu0  ;;  %v801_v63 = vadd.f32 %v2453_v35, %v800_v52  ;;  %1141 = sbr.rel (!%p2368_p4) target bundleno = 392 (0x188), region = 36 }
 0x127   : > { %v812_v60 = vadd.f32 %v2110_v56, %v2453_v35  ;;  %v676_v61 = vadd.f32 %v2453_v35, %v675_v57  ;;  %v803_v62 = vpop.f32.mrb[31].mxu1 }
 0x128   : > { %v1899_v0 = vpack.c.bf16 %v684_v55, %v681_v54  ;;  %v804_v1 = vadd.f32 %v2453_v35, %v803_v62 }
 0x129   : > { %v1979_v2 = vpack.c.bf16 %v812_v60, %v809_v58  ;;  %v1894_v3 = vpack.c.bf16 %v676_v61, %v673_v59 }
 0x12a   : > { %1995 = vst [vmem:[%s2463_s6 + $0x78] sm:$0xff] %v1899_v0   ;;  %v1974_v4 = vpack.c.bf16 %v804_v1, %v801_v63 }
 0x12b   : > { %2011 = vst [vmem:[%s2463_s6 + $0xf8] sm:$0xff] %v1979_v2   ;;  %1994 = vst [vmem:[%s2463_s6 + $0x70] sm:$0xff] %v1894_v3  }
 0x12c   : > { %2010 = vst [vmem:[%s2463_s6 + $0xf0] sm:$0xff] %v1974_v4  }
 0x12d   : > { %s2764_s7 = smov (!%p1144_p8, %s1143_s7), 64 }
 0x12e   : > { %s1739_s12 = sshll.u32 %s2764_s7, 6 }
 0x12f   : > { %p1742_p9 = scmp.eq.s32.totalorder %s1739_s12, 0 }
 0x130   : > { %s2566_s14 = sshrl.u32 (!%p1742_p9), %s2764_s7, 6 }
 0x131   : > { %1152 = sbr.rel (%p1742_p9) target bundleno = 392 (0x188), region = 40  ;;  %p1743_p10 = scmp.le.s32.totalorder (!%p1742_p9), %s2566_s14, 0 }
 0x138   : > { %1557 = sbr.rel (%p1743_p10) target bundleno = 371 (0x173), region = 112  ;;  %s2757_s15 = smov (!%p1743_p10), %s2560_s11 }
 0x139   : > { %s2758_s17 = smov (!%p1743_p10), %s2463_s6  ;;  %s2575_s18 = smov (!%p1743_p10), 0  }
 0x13a   : > { %s2577_s20 = smov (!%p1743_p10), 0  }
 0x13f LB: >> { %v1168_v35 = vld [vmem:[%s2297_s17] sm:$0xf]  ;;  %v1170_v5 = vld [vmem:[%s2297_s17 + $0x4] sm:$0xf]  ;;  %v1172_v6 = vld [vmem:[%s2297_s17 + $0x8] sm:$0xf]  ;;  %s2305_s20 = sphi %s2577_s20, %s1162_s20   ;;  %s2301_s18 = sphi %s2575_s18, %s2759_s18   ;;  %s2297_s17 = sphi %s2758_s17, %s1301_s17   ;;  %s2293_s15 = sphi %s2757_s15, %s1302_s15  }
 0x140   : >> { %1169 = vst [vmem:[%s2293_s15] sm:$0xf] %v1168_v35  ;;  %1171 = vst [vmem:[%s2293_s15 + $0x4] sm:$0xf] %v1170_v5  ;;  %v1174_v7 = vld [vmem:[%s2297_s17 + $0xc] sm:$0xf]  ;;  %s1296_s21 = sadd.s32 1, %s2301_s18 }
 0x141   : >> { %1173 = vst [vmem:[%s2293_s15 + $0x8] sm:$0xf] %v1172_v6  ;;  %v1176_v8 = vld [vmem:[%s2297_s17 + $0x10] sm:$0xf]  ;;  %v1178_v9 = vld [vmem:[%s2297_s17 + $0x14] sm:$0xf]  ;;  %p1297_p11 = scmp.ge.s32.totalorder %s1296_s21, %s2566_s14 }
 0x142   : >> { %1175 = vst [vmem:[%s2293_s15 + $0xc] sm:$0xf] %v1174_v7  ;;  %1177 = vst [vmem:[%s2293_s15 + $0x10] sm:$0xf] %v1176_v8  ;;  %v1180_v10 = vld [vmem:[%s2297_s17 + $0x18] sm:$0xf] }
 0x143   : >> { %1179 = vst [vmem:[%s2293_s15 + $0x14] sm:$0xf] %v1178_v9  ;;  %v1182_v11 = vld [vmem:[%s2297_s17 + $0x1c] sm:$0xf]  ;;  %v1184_v12 = vld [vmem:[%s2297_s17 + $0x20] sm:$0xf] }
 0x144   : >> { %1181 = vst [vmem:[%s2293_s15 + $0x18] sm:$0xf] %v1180_v10  ;;  %1183 = vst [vmem:[%s2293_s15 + $0x1c] sm:$0xf] %v1182_v11  ;;  %v1186_v13 = vld [vmem:[%s2297_s17 + $0x24] sm:$0xf] }
 0x145   : >> { %1185 = vst [vmem:[%s2293_s15 + $0x20] sm:$0xf] %v1184_v12  ;;  %v1188_v14 = vld [vmem:[%s2297_s17 + $0x28] sm:$0xf]  ;;  %v1190_v15 = vld [vmem:[%s2297_s17 + $0x2c] sm:$0xf] }
 0x146   : >> { %1187 = vst [vmem:[%s2293_s15 + $0x24] sm:$0xf] %v1186_v13  ;;  %1189 = vst [vmem:[%s2293_s15 + $0x28] sm:$0xf] %v1188_v14  ;;  %v1192_v16 = vld [vmem:[%s2297_s17 + $0x30] sm:$0xf] }
 0x147   : >> { %1191 = vst [vmem:[%s2293_s15 + $0x2c] sm:$0xf] %v1190_v15  ;;  %v1194_v17 = vld [vmem:[%s2297_s17 + $0x34] sm:$0xf]  ;;  %v1196_v18 = vld [vmem:[%s2297_s17 + $0x38] sm:$0xf] }
 0x148   : >> { %1193 = vst [vmem:[%s2293_s15 + $0x30] sm:$0xf] %v1192_v16  ;;  %1195 = vst [vmem:[%s2293_s15 + $0x34] sm:$0xf] %v1194_v17  ;;  %v1198_v19 = vld [vmem:[%s2297_s17 + $0x3c] sm:$0xf] }
 0x149   : >> { %1197 = vst [vmem:[%s2293_s15 + $0x38] sm:$0xf] %v1196_v18  ;;  %v1200_v20 = vld [vmem:[%s2297_s17 + $0x40] sm:$0xf]  ;;  %v1202_v21 = vld [vmem:[%s2297_s17 + $0x44] sm:$0xf] }
 0x14a   : >> { %1199 = vst [vmem:[%s2293_s15 + $0x3c] sm:$0xf] %v1198_v19  ;;  %1201 = vst [vmem:[%s2293_s15 + $0x40] sm:$0xf] %v1200_v20  ;;  %v1204_v22 = vld [vmem:[%s2297_s17 + $0x48] sm:$0xf] }
 0x14b   : >> { %1203 = vst [vmem:[%s2293_s15 + $0x44] sm:$0xf] %v1202_v21  ;;  %v1206_v23 = vld [vmem:[%s2297_s17 + $0x4c] sm:$0xf]  ;;  %v1208_v24 = vld [vmem:[%s2297_s17 + $0x50] sm:$0xf] }
 0x14c   : >> { %1205 = vst [vmem:[%s2293_s15 + $0x48] sm:$0xf] %v1204_v22  ;;  %1207 = vst [vmem:[%s2293_s15 + $0x4c] sm:$0xf] %v1206_v23  ;;  %v1210_v25 = vld [vmem:[%s2297_s17 + $0x54] sm:$0xf] }
 0x14d   : >> { %1209 = vst [vmem:[%s2293_s15 + $0x50] sm:$0xf] %v1208_v24  ;;  %v1212_v26 = vld [vmem:[%s2297_s17 + $0x58] sm:$0xf]  ;;  %v1214_v27 = vld [vmem:[%s2297_s17 + $0x5c] sm:$0xf] }
 0x14e   : >> { %1211 = vst [vmem:[%s2293_s15 + $0x54] sm:$0xf] %v1210_v25  ;;  %1213 = vst [vmem:[%s2293_s15 + $0x58] sm:$0xf] %v1212_v26  ;;  %v1216_v28 = vld [vmem:[%s2297_s17 + $0x60] sm:$0xf] }
 0x14f   : >> { %1215 = vst [vmem:[%s2293_s15 + $0x5c] sm:$0xf] %v1214_v27  ;;  %v1218_v29 = vld [vmem:[%s2297_s17 + $0x64] sm:$0xf]  ;;  %v1220_v30 = vld [vmem:[%s2297_s17 + $0x68] sm:$0xf] }
 0x150   : >> { %1217 = vst [vmem:[%s2293_s15 + $0x60] sm:$0xf] %v1216_v28  ;;  %1219 = vst [vmem:[%s2293_s15 + $0x64] sm:$0xf] %v1218_v29  ;;  %v1222_v31 = vld [vmem:[%s2297_s17 + $0x6c] sm:$0xf] }
 0x151   : >> { %1221 = vst [vmem:[%s2293_s15 + $0x68] sm:$0xf] %v1220_v30  ;;  %v1224_v32 = vld [vmem:[%s2297_s17 + $0x70] sm:$0xf]  ;;  %v1226_v33 = vld [vmem:[%s2297_s17 + $0x74] sm:$0xf] }
 0x152   : >> { %1223 = vst [vmem:[%s2293_s15 + $0x6c] sm:$0xf] %v1222_v31  ;;  %1225 = vst [vmem:[%s2293_s15 + $0x70] sm:$0xf] %v1224_v32  ;;  %v1228_v34 = vld [vmem:[%s2297_s17 + $0x78] sm:$0xf] }
 0x153   : >> { %1227 = vst [vmem:[%s2293_s15 + $0x74] sm:$0xf] %v1226_v33  ;;  %v1230_v36 = vld [vmem:[%s2297_s17 + $0x7c] sm:$0xf]  ;;  %v1232_v37 = vld [vmem:[%s2297_s17 + $0x80] sm:$0xf] }
 0x154   : >> { %1229 = vst [vmem:[%s2293_s15 + $0x78] sm:$0xf] %v1228_v34  ;;  %1231 = vst [vmem:[%s2293_s15 + $0x7c] sm:$0xf] %v1230_v36  ;;  %v1234_v38 = vld [vmem:[%s2297_s17 + $0x84] sm:$0xf] }
 0x155   : >> { %1233 = vst [vmem:[%s2293_s15 + $0x80] sm:$0xf] %v1232_v37  ;;  %v1236_v39 = vld [vmem:[%s2297_s17 + $0x88] sm:$0xf]  ;;  %v1238_v40 = vld [vmem:[%s2297_s17 + $0x8c] sm:$0xf] }
 0x156   : >> { %1235 = vst [vmem:[%s2293_s15 + $0x84] sm:$0xf] %v1234_v38  ;;  %1237 = vst [vmem:[%s2293_s15 + $0x88] sm:$0xf] %v1236_v39  ;;  %v1240_v41 = vld [vmem:[%s2297_s17 + $0x90] sm:$0xf] }
 0x157   : >> { %1239 = vst [vmem:[%s2293_s15 + $0x8c] sm:$0xf] %v1238_v40  ;;  %v1242_v42 = vld [vmem:[%s2297_s17 + $0x94] sm:$0xf]  ;;  %v1244_v43 = vld [vmem:[%s2297_s17 + $0x98] sm:$0xf] }
 0x158   : >> { %1241 = vst [vmem:[%s2293_s15 + $0x90] sm:$0xf] %v1240_v41  ;;  %1243 = vst [vmem:[%s2293_s15 + $0x94] sm:$0xf] %v1242_v42  ;;  %v1246_v44 = vld [vmem:[%s2297_s17 + $0x9c] sm:$0xf] }
 0x159   : >> { %1245 = vst [vmem:[%s2293_s15 + $0x98] sm:$0xf] %v1244_v43  ;;  %v1248_v45 = vld [vmem:[%s2297_s17 + $0xa0] sm:$0xf]  ;;  %v1250_v46 = vld [vmem:[%s2297_s17 + $0xa4] sm:$0xf] }
 0x15a   : >> { %1247 = vst [vmem:[%s2293_s15 + $0x9c] sm:$0xf] %v1246_v44  ;;  %1249 = vst [vmem:[%s2293_s15 + $0xa0] sm:$0xf] %v1248_v45  ;;  %v1252_v47 = vld [vmem:[%s2297_s17 + $0xa8] sm:$0xf] }
 0x15b   : >> { %1251 = vst [vmem:[%s2293_s15 + $0xa4] sm:$0xf] %v1250_v46  ;;  %v1254_v48 = vld [vmem:[%s2297_s17 + $0xac] sm:$0xf]  ;;  %v1256_v49 = vld [vmem:[%s2297_s17 + $0xb0] sm:$0xf] }
 0x15c   : >> { %1253 = vst [vmem:[%s2293_s15 + $0xa8] sm:$0xf] %v1252_v47  ;;  %1255 = vst [vmem:[%s2293_s15 + $0xac] sm:$0xf] %v1254_v48  ;;  %v1258_v50 = vld [vmem:[%s2297_s17 + $0xb4] sm:$0xf] }
 0x15d   : >> { %1257 = vst [vmem:[%s2293_s15 + $0xb0] sm:$0xf] %v1256_v49  ;;  %v1260_v51 = vld [vmem:[%s2297_s17 + $0xb8] sm:$0xf]  ;;  %v1262_v52 = vld [vmem:[%s2297_s17 + $0xbc] sm:$0xf] }
 0x15e   : >> { %1259 = vst [vmem:[%s2293_s15 + $0xb4] sm:$0xf] %v1258_v50  ;;  %1261 = vst [vmem:[%s2293_s15 + $0xb8] sm:$0xf] %v1260_v51  ;;  %v1264_v53 = vld [vmem:[%s2297_s17 + $0xc0] sm:$0xf] }
 0x15f   : >> { %1263 = vst [vmem:[%s2293_s15 + $0xbc] sm:$0xf] %v1262_v52  ;;  %v1266_v54 = vld [vmem:[%s2297_s17 + $0xc4] sm:$0xf]  ;;  %v1268_v55 = vld [vmem:[%s2297_s17 + $0xc8] sm:$0xf] }
 0x160   : >> { %1265 = vst [vmem:[%s2293_s15 + $0xc0] sm:$0xf] %v1264_v53  ;;  %1267 = vst [vmem:[%s2293_s15 + $0xc4] sm:$0xf] %v1266_v54  ;;  %v1270_v56 = vld [vmem:[%s2297_s17 + $0xcc] sm:$0xf] }
 0x161   : >> { %1269 = vst [vmem:[%s2293_s15 + $0xc8] sm:$0xf] %v1268_v55  ;;  %v1272_v57 = vld [vmem:[%s2297_s17 + $0xd0] sm:$0xf]  ;;  %v1274_v58 = vld [vmem:[%s2297_s17 + $0xd4] sm:$0xf] }
 0x162   : >> { %1271 = vst [vmem:[%s2293_s15 + $0xcc] sm:$0xf] %v1270_v56  ;;  %1273 = vst [vmem:[%s2293_s15 + $0xd0] sm:$0xf] %v1272_v57  ;;  %v1276_v59 = vld [vmem:[%s2297_s17 + $0xd8] sm:$0xf] }
 0x163   : >> { %1275 = vst [vmem:[%s2293_s15 + $0xd4] sm:$0xf] %v1274_v58  ;;  %v1278_v60 = vld [vmem:[%s2297_s17 + $0xdc] sm:$0xf]  ;;  %v1280_v61 = vld [vmem:[%s2297_s17 + $0xe0] sm:$0xf] }
 0x164   : >> { %1277 = vst [vmem:[%s2293_s15 + $0xd8] sm:$0xf] %v1276_v59  ;;  %1279 = vst [vmem:[%s2293_s15 + $0xdc] sm:$0xf] %v1278_v60  ;;  %v1282_v62 = vld [vmem:[%s2297_s17 + $0xe4] sm:$0xf] }
 0x165   : >> { %1281 = vst [vmem:[%s2293_s15 + $0xe0] sm:$0xf] %v1280_v61  ;;  %v1284_v63 = vld [vmem:[%s2297_s17 + $0xe8] sm:$0xf]  ;;  %v1286_v0 = vld [vmem:[%s2297_s17 + $0xec] sm:$0xf] }
 0x166   : >> { %1283 = vst [vmem:[%s2293_s15 + $0xe4] sm:$0xf] %v1282_v62  ;;  %1285 = vst [vmem:[%s2293_s15 + $0xe8] sm:$0xf] %v1284_v63  ;;  %v1288_v1 = vld [vmem:[%s2297_s17 + $0xf0] sm:$0xf] }
 0x167   : >> { %1287 = vst [vmem:[%s2293_s15 + $0xec] sm:$0xf] %v1286_v0  ;;  %v1290_v2 = vld [vmem:[%s2297_s17 + $0xf4] sm:$0xf]  ;;  %v1292_v3 = vld [vmem:[%s2297_s17 + $0xf8] sm:$0xf] }
 0x168   : >> { %1289 = vst [vmem:[%s2293_s15 + $0xf0] sm:$0xf] %v1288_v1  ;;  %1291 = vst [vmem:[%s2293_s15 + $0xf4] sm:$0xf] %v1290_v2  ;;  %v1294_v4 = vld [vmem:[%s2297_s17 + $0xfc] sm:$0xf] }
 0x169   : >> { %1293 = vst [vmem:[%s2293_s15 + $0xf8] sm:$0xf] %v1292_v3  ;;  %1295 = vst [vmem:[%s2293_s15 + $0xfc] sm:$0xf] %v1294_v4  ;;  %s2766_s21 = smov (%p1297_p11, %s1296_s21), 0  ;;  %s1162_s20 = sadd.s32 1, %s2305_s20  }
 0x16a   : >> { %s1744_s22 = sshll.u32 %s2766_s21, 8  ;;  %p1161_p12 = scmp.ge.s32.totalorder %s1162_s20, %s2566_s14 }
 0x16b   : >> { %s1301_s17 = scalar_lea.vmem %s2463_s6, %s1744_s22 [#allocation2]   ;;  %s1302_s15 = scalar_lea.vmem %s2560_s11, %s1744_s22  }
 0x16c   : >> { %s2759_s18 = smov %s2766_s21  ;;  %1164 = sbr.rel (!%p1161_p12) target bundleno = 319 (0x13f), region = 118 }
 0x173 PF: > { %s2734_s23 = sand.u32 63, %s2764_s7   ;;  %s1819_s24 = sshll.u32 %s2566_s14, 8 }
 0x174   : > { %s1307_s25 = scalar_lea.vmem %s2463_s6, %s1819_s24 [#allocation2]   ;;  %s1309_s26 = scalar_lea.vmem %s2560_s11, %s1819_s24  }
 0x175   : > { %p1749_p13 = scmp.le.s32.totalorder %s2734_s23, 0 }
 0x176   : > { %s2307_s27 = smov (!%p1749_p13), %s1309_s26   ;;  %s2311_s28 = smov (!%p1749_p13), %s1307_s25  }
 0x177   : > { %1571 = sbr.rel (%p1749_p13) target bundleno = 392 (0x188), region = 123  ;;  %s2315_s29 = smov (!%p1749_p13), 0  }
 0x178   : > { %s2319_s30 = smov (!%p1749_p13), 0  }
 0x17e LB: >> { %v1319_v35 = vld [vmem:[%s2313_s28] sm:$0xf]  ;;  %s1321_s4 = sadd.s32 1, %s2317_s29  ;;  %s1313_s30 = sadd.s32 1, %s2321_s30   ;;  %s2321_s30 = sphi %s2319_s30, %s1313_s30   ;;  %s2317_s29 = sphi %s2315_s29, %s2316_s29   ;;  %s2313_s28 = sphi %s2311_s28, %s1326_s28   ;;  %s2309_s27 = sphi %s2307_s27, %s1327_s27  }
 0x17f   : >> { %1320 = vst [vmem:[%s2309_s27] sm:$0xf] %v1319_v35  ;;  %p1322_p0 = scmp.ge.s32.totalorder %s1321_s4, %s2734_s23  ;;  %p1312_p1 = scmp.ge.s32.totalorder %s1313_s30, %s2734_s23 }
 0x181   : >> { %s2768_s4 = smov (%p1322_p0, %s1321_s4), 0  ;;  %1315 = sbr.rel (!%p1312_p1) target bundleno = 382 (0x17e), region = 129 }
 0x182   : >> { %s1750_s5 = sshll.u32 %s2768_s4, 2  ;;  %s2316_s29 = smov %s2768_s4  }
 0x183   : >> { %s1326_s28 = scalar_lea.vmem %s1307_s25, %s1750_s5 [#allocation2]   ;;  %s1327_s27 = scalar_lea.vmem %s1309_s26, %s1750_s5  }
 0x188 PF: > { %p10_p2 = scmp.ge.s32.totalorder %s2358_s16, 4   ;;  %s2760_s12 = smov %s2285_s13 }
 0x189   : > { %s2761_s13 = smov %s2366_s19  ;;  %s2762_s14 = smov %s2358_s16 }
 0x18a   :  { %12 = sbr.rel (!%p10_p2) target bundleno = 2 (0x2), region = 140 }

// kernel: basic_block_forward.3
= control target key start
LH: loop header
LB: loop body
LE: loop exit
PB: predicated region body
PF: predicated region fallthrough
CT: control target
= control target key end

     0   :  { %s5721_s12 = smov 0   ;;  %s6720_s0 = inlined_call_operand.vmem [shape: bf16[2,326,4], index: 0, kind: input, shape index: {}]   ;;  %s6721_s1 = inlined_call_operand.vmem [shape: bf16[9,4,128], index: 1, kind: input, shape index: {}]   ;;  %s6722_s2 = inlined_call_operand.vmem [shape: f32[1,128], index: 2, kind: input, shape index: {}]   ;;  %s6723_s3 = inlined_call_operand.vmem [shape: bf16[2,288,128], index: 3, kind: output, shape index: {}]  }
   0x1 LB: > { %s4324_s13 = sadd.s32 4294967295, %s5699_s12   ;;  %p4328_p0 = scmp.ge.s32.totalorder %s5699_s12, 1  ;;  %s5699_s12 = sphi %s5721_s12, %s13_s12  }
   0x2   : > { %p137_p1 = scmp.lt.s32.totalorder %s5699_s12, 3 }
   0x4   : > { %p138_p2 = pnand %p4328_p0, %p137_p1 }
   0x5   : > { %v4331_v0 = vld [vmem:[%s6721_s1 + $0x2] sm:$0x3] (!%p138_p2)  ;;  %vm474_vm0 = vcmask (!%p138_p2), 1041408   ;;  %v4433_v1 = vld [vmem:[%s6721_s1 + $0x8] sm:$0x3] (!%p138_p2)  ;;  %p161_p3 = scmp.lt.s32.totalorder (!%p138_p2), %s4324_s13, 1 }
   0x6   : > { %141 = sbr.rel (%p138_p2) target bundleno = 602 (0x25a), region = 32  ;;  %5589 = vmatprep.subr.msk.bf16.mxu1 (!%p138_p2), %vm474_vm0, %v4331_v0  ;;  %v476_v2 = vsel (!%p138_p2), %vm474_vm0, %v4331_v0, 0  ;;  %5593 = vmatprep.subr.msk.bf16.mxu0 (!%p138_p2), %vm474_vm0, %v4433_v1  ;;  %v1722_v3 = vsel (!%p138_p2), %vm474_vm0, %v4433_v1, 0  ;;  %v205_v4 = vld [vmem:[%s6721_s1] sm:$0x3] (!%p138_p2)  ;;  %vm425_vm2 = vcmask (!%p138_p2), 31744  }
   0x7   : > { %4942 = vmatpush3.bf16.msra.mxu1 (!%p138_p2), %v476_v2  ;;  %5078 = vmatpush3.bf16.msra.mxu0 (!%p138_p2), %v1722_v3  ;;  %v4451_v5 = vld [vmem:[%s6721_s1 + $0xa] sm:$0x3] (!%p138_p2)  ;;  %vm292_vm1 = vsmask.f32 (!%p138_p2), 7424  ;;  %v672_v6 = vsel (!%p138_p2), %vm474_vm0, %v205_v4, 0  ;;  %vm1923_vm4 = vcmask (!%p138_p2), 1045504  }
   0x8   : > { %5590 = vmatprep.subr.msk.bf16.mxu1 (!%p138_p2), %vm474_vm0, %v205_v4  ;;  %5594 = vmatprep.subr.msk.bf16.mxu0 (!%p138_p2), %vm474_vm0, %v4451_v5  ;;  %vm1520_vm3 = vsmask.f32 (!%p138_p2), 6400  ;;  %v5768_v12 = vsel (!%p138_p2), %vm474_vm0, %v4451_v5, 0  ;;  %v5804_v39 = vld [vmem:[%s6721_s1 + $0x4] sm:$0x3] (!%p138_p2)  ;;  %vm841_vm5 = vcmask (!%p138_p2), 1046528  }
   0x9   : > { %v5840_v1 = vld [vmem:[%s6721_s1 + $0xc] sm:$0x3] (!%p138_p2)  ;;  %vm2602_vm6 = vsmask.f32 (!%p138_p2), 5376  ;;  %vm3005_vm7 = vcmask (!%p138_p2), 1044480  }
   0xd   : > { %s6725_s13 = smov (!%p161_p3, %s4324_s13), 1 }
   0xe   : > { %s5607_s22 = smul.u32 164, %s6725_s13 }
   0xf   : > { %s5608_s4 = smul.u32 144, %s6725_s13 }
  0x10   : > { %s5753_s25 = scalar_lea.vmem %s6720_s0, %s5607_s22 }
  0x11   : > { %v173_v7 = vld [vmem:[%s5753_s25] sm:$0xf]  ;;  %v5758_v8 = vld [vmem:[%s5753_s25 + $0x4] sm:$0xf]  ;;  %v5764_v10 = vld [vmem:[%s5753_s25 + $0x8] sm:$0xff]   ;;  %s6641_s7 = scalar_lea.vmem %s6723_s3, %s5608_s4 }
  0x12   : > { %v5761_v9 = vcombine.low %v173_v7, %v5758_v8  ;;  %v1119_v11 = vld [vmem:[%s5753_s25 + $0x8] sm:$0xe]  ;;  %v5771_v13 = vld [vmem:[%s5753_s25 + $0xc] sm:$0xf]  ;;  %v301_v16 = vshll.u32 %v5764_v10, 16  ;;  %v305_v17 = vshrl.u32 %v5764_v10, 16 }
  0x13   : > { %v5778_v18 = vld [vmem:[%s5753_s25 + $0x10] sm:$0xff]   ;;  %v5784_v20 = vcombine.low %v1119_v11, %v5771_v13  ;;  %v5792_v28 = vld [vmem:[%s5753_s25 + $0x18] sm:$0xff]   ;;  %v5798_v34 = vld [vmem:[%s5753_s25 + $0x20] sm:$0xff]  }
  0x14   : > { %v294_v14 = vshrl.u32 %v5761_v9, 16  ;;  %v296_v15 = vshll.u32 %v5761_v9, 16  ;;  %v5781_v19 = vld [vmem:[%s5753_s25 + $0x10] sm:$0xff]   ;;  %v303_v22 = vrot.slane %v301_v16, 1  ;;  %v1530_v23 = vshrl.u32 %v5778_v18, 16  ;;  %v5795_v33 = vld [vmem:[%s5753_s25 + $0x18] sm:$0xff]  }
  0x15   : > { %v1533_v24 = vshll.u32 %v5778_v18, 16  ;;  %v1522_v25 = vshrl.u32 %v5784_v20, 16  ;;  %v1525_v26 = vshll.u32 %v5784_v20, 16  ;;  %v309_v27 = vshll.u32 %v5781_v19, 16  ;;  %v5813_v48 = vld [vmem:[%s5753_s25 + $0x20] sm:$0xff]   ;;  %v5816_v49 = vld [vmem:[%s5753_s25 + $0x28] sm:$0xff]  }
  0x16   : > { %v298_v21 = vrot.slane %v296_v15, 1  ;;  %v307_v30 = vor.u32 %v305_v17, %v303_v22  ;;  %v1532_v31 = vrot.slane %v1530_v23, 1  ;;  %v1539_v38 = vshrl.u32 %v5792_v28, 16  ;;  %v5822_v54 = vld [vmem:[%s5753_s25 + $0x28] sm:$0xff]   ;;  %v5828_v59 = vld [vmem:[%s5753_s25 + $0x30] sm:$0xff]  }
  0x17   : > { %v1535_v32 = vrot.slane %v1533_v24, 2  ;;  %v1524_v35 = vrot.slane %v1522_v25, 1  ;;  %v1527_v36 = vrot.slane %v1525_v26, 2  ;;  %v311_v37 = vrot.slane %v309_v27, 1  ;;  %v5833_v0 = vld [vmem:[%s5753_s25 + $0x30] sm:$0xff]  }
  0x18   : > { %v299_v29 = vor.u32 %v298_v21, %v294_v14  ;;  %v1542_v42 = vshll.u32 %v5792_v28, 16  ;;  %v313_v43 = vshrl.u32 %v5781_v19, 16  ;;  %v1541_v46 = vrot.slane %v1539_v38, 1 }
  0x19   : > { %v1536_v41 = vor.u32 %v1535_v32, %v1532_v31  ;;  %v1528_v44 = vor.u32 %v1527_v36, %v1524_v35  ;;  %v312_v45 = vsel %vm292_vm1, %v307_v30, %v311_v37  ;;  %v317_v47 = vshll.u32 %v5795_v33, 16  ;;  %v5861_v32 = vld [vmem:[%s5753_s25 + $0x38] sm:$0xff]  }
  0x1a   : > { %v304_v40 = vsel %vm292_vm1, %v299_v29, %v303_v22  ;;  %v1544_v50 = vrot.slane %v1542_v42, 2  ;;  %v315_v51 = vor.u32 %v313_v43, %v311_v37  ;;  %v1548_v52 = vshrl.u32 %v5798_v34, 16  ;;  %v5852_v22 = vld [vmem:[%s5753_s25 + $0x38] sm:$0xff]   ;;  %v5872_v43 = vld [vmem:[%s5753_s25 + $0x40] sm:$0xff]  }
  0x1b   : > { %4943 = vmatprep.mubr.msk.bf16.mxu1 %vm425_vm2, %v304_v40  ;;  %v1551_v53 = vshll.u32 %v5798_v34, 16  ;;  %v1537_v55 = vsel %vm1520_vm3, %v1528_v44, %v1536_v41  ;;  %v319_v56 = vrot.slane %v317_v47, 1  ;;  %v321_v57 = vshrl.u32 %v5795_v33, 16 }
  0x1c   : > { %4944 = vmatmul.mubr.msk.bf16.vlgmr.msra.gmra.mrb[0].mxu1 %vm425_vm2, %v312_v45  ;;  %v325_v58 = vshll.u32 %v5813_v48, 16  ;;  %5079 = vmatprep.mubr.msk.bf16.mxu0 %vm425_vm2, %v1537_v55  ;;  %v1545_v60 = vor.u32 %v1544_v50, %v1541_v46  ;;  %v1550_v61 = vrot.slane %v1548_v52, 1  ;;  %v1557_v63 = vshrl.u32 %v5816_v49, 16  ;;  %v5877_v50 = vld [vmem:[%s5753_s25 + $0x40] sm:$0xff]  }
  0x1d   : > { %4976 = vmatpush3.bf16.msra.mxu1 %v672_v6  ;;  %v1553_v62 = vrot.slane %v1551_v53, 2  ;;  %v320_v2 = vsel %vm292_vm1, %v315_v51, %v319_v56  ;;  %v323_v3 = vor.u32 %v321_v57, %v319_v56  ;;  %v1560_v5 = vshll.u32 %v5816_v49, 16 }
  0x1e   : > { %5591 = vmatprep.subr.msk.bf16.mxu1 %vm474_vm0, %v5804_v39  ;;  %v327_v4 = vrot.slane %v325_v58, 1  ;;  %v1546_v6 = vsel %vm1520_vm3, %v1536_v41, %v1545_v60  ;;  %4947 = vmatprep.mubr.msk.bf16.mxu1 %vm425_vm2, %v320_v2  ;;  %v1559_v11 = vrot.slane %v1557_v63, 1  ;;  %v329_v14 = vshrl.u32 %v5813_v48, 16 }
  0x1f   : > { %v1554_v7 = vor.u32 %v1553_v62, %v1550_v61  ;;  %5080 = vmatmul.mubr.msk.bf16.vlgmr.msra.gmra.mrb[0].mxu0 %vm425_vm2, %v1546_v6  ;;  %v1562_v16 = vrot.slane %v1560_v5, 2  ;;  %v333_v17 = vshll.u32 %v5822_v54, 16  ;;  %v1566_v21 = vshrl.u32 %v5828_v59, 16  ;;  %v5885_v61 = vld [vmem:[%s5753_s25 + $0x48] sm:$0xff]  }
  0x20   : > { %v328_v15 = vsel %vm292_vm1, %v323_v3, %v327_v4  ;;  %v331_v24 = vor.u32 %v329_v14, %v327_v4  ;;  %v1569_v25 = vshll.u32 %v5828_v59, 16  ;;  %v337_v26 = vshrl.u32 %v5822_v54, 16  ;;  %5112 = vmatpush3.bf16.msra.mxu0 %v5768_v12  ;;  %v5888_v62 = vld [vmem:[%s5753_s25 + $0x48] sm:$0xff]  }
  0x21   : > { %v1555_v23 = vsel %vm1520_vm3, %v1545_v60, %v1554_v7  ;;  %v1563_v27 = vor.u32 %v1562_v16, %v1559_v11  ;;  %v335_v29 = vrot.slane %v333_v17, 1  ;;  %v1568_v30 = vrot.slane %v1566_v21, 1  ;;  %5595 = vmatprep.subr.msk.bf16.mxu0 %vm474_vm0, %v5840_v1 }
  0x22   : > { %5083 = vmatprep.mubr.msk.bf16.mxu0 %vm425_vm2, %v1555_v23  ;;  %v341_v31 = vshll.u32 %v5833_v0, 16  ;;  %v1571_v35 = vrot.slane %v1569_v25, 2  ;;  %v1575_v36 = vshrl.u32 %v5852_v22, 16  ;;  %v1578_v12 = vshll.u32 %v5852_v22, 16  ;;  %v5905_v23 = vld [vmem:[%s5753_s25 + $0x50] sm:$0xff]  }
  0x23   : > { %v345_v37 = vshrl.u32 %v5833_v0, 16  ;;  %v1564_v38 = vsel %vm1520_vm3, %v1554_v7, %v1563_v27  ;;  %v336_v40 = vsel %vm292_vm1, %v331_v24, %v335_v29  ;;  %v339_v41 = vor.u32 %v337_v26, %v335_v29  ;;  %v5897_v7 = vld [vmem:[%s5753_s25 + $0x50] sm:$0xff]   ;;  %v5910_v26 = vld [vmem:[%s5753_s25 + $0x58] sm:$0xff]  }
  0x24   : > { %4948 = vmatmul.mubr.msk.bf16.gmra.mrb[4].mxu1 %vm425_vm2, %v328_v15  ;;  %v343_v42 = vrot.slane %v341_v31, 1  ;;  %v1572_v44 = vor.u32 %v1571_v35, %v1568_v30  ;;  %v1577_v45 = vrot.slane %v1575_v36, 1  ;;  %v1580_v46 = vrot.slane %v1578_v12, 2 }
  0x25   : > { %4951 = vmatprep.mubr.msk.bf16.mxu1 %vm425_vm2, %v336_v40  ;;  %v349_v47 = vshll.u32 %v5861_v32, 16  ;;  %v1584_v53 = vshrl.u32 %v5872_v43, 16  ;;  %v1587_v55 = vshll.u32 %v5872_v43, 16  ;;  %v353_v60 = vshrl.u32 %v5861_v32, 16 }
  0x26   : > { %v344_v51 = vsel %vm292_vm1, %v339_v41, %v343_v42  ;;  %v347_v52 = vor.u32 %v345_v37, %v343_v42  ;;  %v1573_v56 = vsel %vm1520_vm3, %v1563_v27, %v1572_v44  ;;  %v1581_v57 = vor.u32 %v1580_v46, %v1577_v45  ;;  %v5923_v45 = vld [vmem:[%s5753_s25 + $0x60] sm:$0xff]  }
  0x27   : > { %v351_v58 = vrot.slane %v349_v47, 1  ;;  %5084 = vmatmul.mubr.msk.bf16.gmra.mrb[4].mxu0 %vm425_vm2, %v1564_v38  ;;  %v1586_v63 = vrot.slane %v1584_v53, 1  ;;  %v1589_v2 = vrot.slane %v1587_v55, 2  ;;  %v357_v3 = vshll.u32 %v5877_v50, 16  ;;  %v5915_v38 = vld [vmem:[%s5753_s25 + $0x58] sm:$0xff]  }
  0x28   : > { %v361_v4 = vshrl.u32 %v5877_v50, 16  ;;  %5087 = vmatprep.mubr.msk.bf16.mxu0 %vm425_vm2, %v1573_v56  ;;  %v1593_v6 = vshrl.u32 %v5885_v61, 16  ;;  %v1596_v14 = vshll.u32 %v5885_v61, 16  ;;  %v365_v15 = vshll.u32 %v5888_v62, 16 }
  0x29   : > { %v352_v5 = vsel %vm292_vm1, %v347_v52, %v351_v58  ;;  %v1590_v11 = vor.u32 %v1589_v2, %v1586_v63  ;;  %v359_v16 = vrot.slane %v357_v3, 1  ;;  %v1602_v17 = vshrl.u32 %v5897_v7, 16  ;;  %v5937_v3 = vld [vmem:[%s5753_s25 + $0x68] sm:$0xff]  }
  0x2a   : > { %v1605_v21 = vshll.u32 %v5897_v7, 16  ;;  %v1582_v24 = vsel %vm1520_vm3, %v1572_v44, %v1581_v57  ;;  %v355_v25 = vor.u32 %v353_v60, %v351_v58  ;;  %v1595_v27 = vrot.slane %v1593_v6, 1  ;;  %v5933_v58 = vld [vmem:[%s5753_s25 + $0x60] sm:$0xff]  }
  0x2b   : > { %v1598_v29 = vrot.slane %v1596_v14, 2  ;;  %v363_v30 = vor.u32 %v361_v4, %v359_v16  ;;  %v367_v31 = vrot.slane %v365_v15, 1  ;;  %v1591_v35 = vsel %vm1520_vm3, %v1581_v57, %v1590_v11  ;;  %v5941_v14 = vld [vmem:[%s5753_s25 + $0x68] sm:$0xff]  }
  0x2c   : > { %4952 = vmatmul.mubr.msk.bf16.gmra.mrb[8].mxu1 %vm425_vm2, %v344_v51  ;;  %v1604_v36 = vrot.slane %v1602_v17, 1  ;;  %v1607_v12 = vrot.slane %v1605_v21, 2  ;;  %v373_v37 = vshll.u32 %v5905_v23, 16  ;;  %v360_v40 = vsel %vm292_vm1, %v355_v25, %v359_v16  ;;  %v5945_v21 = vld [vmem:[%s5753_s25 + $0x70] sm:$0xff]  }
  0x2d   : > { %4955 = vmatprep.mubr.msk.bf16.mxu1 %vm425_vm2, %v352_v5  ;;  %v369_v41 = vshrl.u32 %v5888_v62, 16  ;;  %v1611_v42 = vshrl.u32 %v5910_v26, 16  ;;  %v1614_v44 = vshll.u32 %v5910_v26, 16  ;;  %v1599_v46 = vor.u32 %v1598_v29, %v1595_v27 }
  0x2e   : > { %v368_v47 = vsel %vm292_vm1, %v363_v30, %v367_v31  ;;  %v377_v51 = vshrl.u32 %v5905_v23, 16  ;;  %v381_v52 = vshll.u32 %v5915_v38, 16  ;;  %v1608_v53 = vor.u32 %v1607_v12, %v1604_v36 }
  0x2f   : > { %5088 = vmatmul.mubr.msk.bf16.gmra.mrb[8].mxu0 %vm425_vm2, %v1582_v24  ;;  %v1620_v55 = vshrl.u32 %v5923_v45, 16  ;;  %v1623_v56 = vshll.u32 %v5923_v45, 16  ;;  %v375_v57 = vrot.slane %v373_v37, 1  ;;  %v371_v60 = vor.u32 %v369_v41, %v367_v31 }
  0x30   : > { %5091 = vmatprep.mubr.msk.bf16.mxu0 %vm425_vm2, %v1591_v35  ;;  %v1613_v63 = vrot.slane %v1611_v42, 1  ;;  %v1616_v2 = vrot.slane %v1614_v44, 2  ;;  %v1600_v4 = vsel %vm1520_vm3, %v1590_v11, %v1599_v46  ;;  %v383_v6 = vrot.slane %v381_v52, 1  ;;  %v5961_v44 = vld [vmem:[%s5753_s25 + $0x70] sm:$0xff]  }
  0x31   : > { %v379_v5 = vor.u32 %v377_v51, %v375_v57  ;;  %v1609_v15 = vsel %vm1520_vm3, %v1599_v46, %v1608_v53  ;;  %v1622_v16 = vrot.slane %v1620_v55, 1  ;;  %v1625_v17 = vrot.slane %v1623_v56, 2  ;;  %v5965_v51 = vld [vmem:[%s5753_s25 + $0x78] sm:$0xff]  }
  0x32   : > { %v385_v24 = vshrl.u32 %v5915_v38, 16  ;;  %v389_v25 = vshll.u32 %v5933_v58, 16  ;;  %v376_v27 = vsel %vm292_vm1, %v371_v60, %v375_v57  ;;  %v1629_v11 = vshrl.u32 %v5937_v3, 16  ;;  %v5969_v57 = vld [vmem:[%s5753_s25 + $0x78] sm:$0xff]   ;;  %v5972_v60 = vld [vmem:[%s5753_s25 + $0x80] sm:$0xff]  }
  0x33   : > { %v1632_v29 = vshll.u32 %v5937_v3, 16  ;;  %v1617_v30 = vor.u32 %v1616_v2, %v1613_v63  ;;  %v384_v31 = vsel %vm292_vm1, %v379_v5, %v383_v6  ;;  %v393_v35 = vshrl.u32 %v5933_v58, 16 }
  0x34   : > { %4956 = vmatmul.mubr.msk.bf16.gmra.mrb[12].mxu1 %vm425_vm2, %v360_v40  ;;  %v397_v36 = vshll.u32 %v5941_v14, 16  ;;  %v1626_v12 = vor.u32 %v1625_v17, %v1622_v16  ;;  %v1638_v37 = vshrl.u32 %v5945_v21, 16  ;;  %v1641_v40 = vshll.u32 %v5945_v21, 16 }
  0x35   : > { %4959 = vmatprep.mubr.msk.bf16.mxu1 %vm425_vm2, %v368_v47  ;;  %v387_v41 = vor.u32 %v385_v24, %v383_v6  ;;  %v391_v42 = vrot.slane %v389_v25, 1  ;;  %v1631_v46 = vrot.slane %v1629_v11, 1  ;;  %v1634_v47 = vrot.slane %v1632_v29, 2 }
  0x36   : > { %v1618_v52 = vsel %vm1520_vm3, %v1608_v53, %v1617_v30  ;;  %v399_v56 = vrot.slane %v397_v36, 1  ;;  %v1627_v63 = vsel %vm1520_vm3, %v1617_v30, %v1626_v12  ;;  %v1640_v2 = vrot.slane %v1638_v37, 1  ;;  %v5992_v36 = vld [vmem:[%s5753_s25 + $0x88] ss:$0 sps:$4 sm:$0x33]  }
  0x37   : > { %5092 = vmatmul.mubr.msk.bf16.gmra.mrb[12].mxu0 %vm425_vm2, %v1600_v4  ;;  %v395_v55 = vor.u32 %v393_v35, %v391_v42  ;;  %v1643_v4 = vrot.slane %v1641_v40, 2  ;;  %v392_v5 = vsel %vm292_vm1, %v387_v41, %v391_v42  ;;  %v405_v6 = vshll.u32 %v5961_v44, 16 }
  0x38   : > { %5095 = vmatprep.mubr.msk.bf16.mxu0 %vm425_vm2, %v1609_v15  ;;  %v1635_v15 = vor.u32 %v1634_v47, %v1631_v46  ;;  %v401_v53 = vshrl.u32 %v5941_v14, 16  ;;  %v1647_v16 = vshrl.u32 %v5965_v51, 16  ;;  %v1650_v17 = vshll.u32 %v5965_v51, 16 }
  0x39   : > { %v400_v24 = vsel %vm292_vm1, %v395_v55, %v399_v56  ;;  %v409_v25 = vshrl.u32 %v5961_v44, 16  ;;  %v1656_v11 = vshrl.u32 %v5972_v60, 16  ;;  %v1644_v29 = vor.u32 %v1643_v4, %v1640_v2 }
  0x3a   : > { %v1659_v30 = vshll.u32 %v5972_v60, 16  ;;  %v407_v35 = vrot.slane %v405_v6, 1  ;;  %v403_v37 = vor.u32 %v401_v53, %v399_v56  ;;  %v1649_v40 = vrot.slane %v1647_v16, 1  ;;  %v1917_v16 = vld [vmem:[%s5753_s25 + $0x8] sm:$0xc] }
  0x3b   : > { %v1636_v41 = vsel %vm1520_vm3, %v1626_v12, %v1635_v15  ;;  %v1652_v42 = vrot.slane %v1650_v17, 2  ;;  %v1658_v55 = vrot.slane %v1656_v11, 1  ;;  %v417_v4 = vshrl.u32 %v5969_v57, 16 }
  0x3c   : > { %4960 = vmatmul.mubr.msk.bf16.gmra.mrb[16].mxu1 %vm425_vm2, %v376_v27  ;;  %v413_v27 = vshll.u32 %v5969_v57, 16  ;;  %v411_v46 = vor.u32 %v409_v25, %v407_v35  ;;  %v408_v2 = vsel %vm292_vm1, %v403_v37, %v407_v35  ;;  %v1665_v6 = vshrl.u32 %v5992_v36, 16 }
  0x3d   : > { %4963 = vmatprep.mubr.msk.bf16.mxu1 %vm425_vm2, %v384_v31  ;;  %v5988_v31 = vld [vmem:[%s5753_s25 + $0x80] ss:$0 sps:$4 sm:$0x11]   ;;  %v1653_v56 = vor.u32 %v1652_v42, %v1649_v40  ;;  %v1668_v53 = vshll.u32 %v5992_v36, 16  ;;  %v4452_v35 = vcombine.low %v1917_v16, %v5771_v13  ;;  %v1925_v42 = vrot.slane %v5778_v18, 2 }
  0x3e   : > { %v415_v47 = vrot.slane %v413_v27, 1  ;;  %v1667_v27 = vrot.slane %v1665_v6, 1  ;;  %v6028_v18 = vld [vmem:[%s6721_s1 + $0x6] sm:$0x3] }
  0x3f   : > { %5096 = vmatmul.mubr.msk.bf16.gmra.mrb[16].mxu0 %vm425_vm2, %v1618_v52  ;;  %v1645_v52 = vsel %vm1520_vm3, %v1635_v15, %v1644_v29  ;;  %v1654_v25 = vsel %vm1520_vm3, %v1644_v29, %v1653_v56  ;;  %v1670_v11 = vrot.slane %v1668_v53, 2  ;;  %v1943_v53 = vrot.slane %v5910_v26, 2 }
  0x40   : > { %5099 = vmatprep.mubr.msk.bf16.mxu0 %vm425_vm2, %v1627_v63  ;;  %v1661_v63 = vrot.slane %v1659_v30, 2  ;;  %v416_v12 = vsel %vm292_vm1, %v411_v46, %v415_v47  ;;  %v419_v17 = vor.u32 %v417_v4, %v415_v47  ;;  %v924_v46 = vsel %vm474_vm0, %v5804_v39, 0 }
  0x41   : > { %v1671_v40 = vor.u32 %v1670_v11, %v1667_v27  ;;  %v1927_v47 = vrot.slane %v5792_v28, 2  ;;  %v2401_v39 = vsel %vm474_vm0, %v5840_v1, 0 }
  0x42   : > { %v1662_v15 = vor.u32 %v1661_v63, %v1658_v55  ;;  %v1931_v55 = vrot.slane %v5816_v49, 2  ;;  %v1933_v63 = vrot.slane %v5828_v59, 2  ;;  %v1935_v49 = vrot.slane %v5852_v22, 2 }
  0x43   : > { %v1937_v59 = vrot.slane %v5872_v43, 2  ;;  %v1941_v22 = vrot.slane %v5897_v7, 2 }
  0x44   : > { %4964 = vmatmul.mubr.msk.bf16.gmra.mrb[20].mxu1 %vm425_vm2, %v392_v5  ;;  %v421_v5 = vshll.u32 %v5988_v31, 16  ;;  %v1663_v30 = vsel %vm1520_vm3, %v1653_v56, %v1662_v15  ;;  %v1672_v29 = vsel %vm1520_vm3, %v1662_v15, %v1671_v40  ;;  %v1936_v4 = vsel %vm1923_vm4, %v1933_v63, %v1935_v49 }
  0x45   : > { %4967 = vmatprep.mubr.msk.bf16.mxu1 %vm425_vm2, %v400_v24  ;;  %v1939_v56 = vrot.slane %v5885_v61, 2  ;;  %v1945_v15 = vrot.slane %v5923_v45, 2  ;;  %v1944_v16 = vsel %vm1923_vm4, %v1941_v22, %v1943_v53  ;;  %v1953_v40 = vrot.slane %v5972_v60, 2 }
  0x46   : > { %v423_v24 = vrot.slane %v421_v5, 1  ;;  %v1938_v5 = vsel %vm1923_vm4, %v1935_v49, %v1937_v59  ;;  %v6138_v49 = vld [vmem:[%s5753_s25 + $0x28] sm:$0xff]  }
  0x47   : > { %5100 = vmatmul.mubr.msk.bf16.gmra.mrb[20].mxu0 %vm425_vm2, %v1636_v41  ;;  %v1924_v41 = vrot.slane %v4452_v35, 2  ;;  %v1942_v6 = vsel %vm1923_vm4, %v1939_v56, %v1941_v22  ;;  %v1951_v35 = vrot.slane %v5965_v51, 2  ;;  %v849_v22 = vrot.slane %v5813_v48, 1 }
  0x48   : > { %5103 = vmatprep.mubr.msk.bf16.mxu0 %vm425_vm2, %v1645_v52  ;;  %v424_v37 = vsel %vm292_vm1, %v419_v17, %v423_v24  ;;  %v1928_v52 = vsel %vm1923_vm4, %v1925_v42, %v1927_v47  ;;  %v1946_v17 = vsel %vm1923_vm4, %v1943_v53, %v1945_v15  ;;  %v1947_v24 = vrot.slane %v5937_v3, 2 }
  0x49   : > { %v1926_v13 = vsel %vm1923_vm4, %v1924_v41, %v1925_v42  ;;  %v2201_v41 = vld [vmem:[%s5753_s25 + $0x10] sm:$0xc]  ;;  %v6108_v42 = vld [vmem:[%s5753_s25 + $0x14] sm:$0xf] }
  0x4a   : > { %v1948_v27 = vsel %vm1923_vm4, %v1945_v15, %v1947_v24  ;;  %v6165_v15 = vld [vmem:[%s5753_s25 + $0x38] sm:$0xff]  }
  0x4c   : > { %4968 = vmatmul.mubr.msk.bf16.gmra.mrb[24].mxu1 %vm425_vm2, %v408_v2  ;;  %v1934_v2 = vsel %vm1923_vm4, %v1931_v55, %v1933_v63 }
  0x4d   : > { %4971 = vmatprep.mubr.msk.bf16.mxu1 %vm425_vm2, %v416_v12  ;;  %v1940_v12 = vsel %vm1923_vm4, %v1937_v59, %v1939_v56  ;;  %v6151_v56 = vld [vmem:[%s6721_s1 + $0x2] sm:$0x3] }
  0x4f   : > { %5104 = vmatmul.mubr.msk.bf16.gmra.mrb[24].mxu0 %vm425_vm2, %v1654_v25  ;;  %v1949_v25 = vrot.slane %v5945_v21, 2 }
  0x50   : > { %5107 = vmatprep.mubr.msk.bf16.mxu0 %vm425_vm2, %v1663_v30  ;;  %v835_v30 = vld [vmem:[%s5753_s25] sm:$0xe] }
  0x51   : > { %v1950_v11 = vsel %vm1923_vm4, %v1947_v24, %v1949_v25 }
  0x54   : > { %4972 = vmatmul.mubr.msk.bf16.gmra.mrb[28].mxu1 %vm425_vm2, %v424_v37  ;;  %v4382_v37 = vcombine.low %v835_v30, %v5758_v8  ;;  %v6116_v8 = vcombine.low %v2201_v41, %v6108_v42  ;;  %v855_v30 = vrot.slane %v5861_v32, 1 }
  0x55   : > { %4977 = vmatprep.mubr.msk.bf16.mxu1 %vm425_vm2, %v5761_v9  ;;  %v1929_v9 = vrot.slane %v5798_v34, 2  ;;  %v6044_v34 = vld [vmem:[%s6721_s1 + $0xe] sm:$0x3] }
  0x57   : > { %5108 = vmatmul.mubr.msk.bf16.gmra.mrb[28].mxu0 %vm425_vm2, %v1672_v29  ;;  %v1930_v28 = vsel %vm1923_vm4, %v1927_v47, %v1929_v9  ;;  %v1932_v1 = vsel %vm1923_vm4, %v1929_v9, %v1931_v55  ;;  %v1952_v29 = vsel %vm1923_vm4, %v1949_v25, %v1951_v35  ;;  %v1954_v47 = vsel %vm1923_vm4, %v1951_v35, %v1953_v40  ;;  %v6119_v9 = vld [vmem:[%s5753_s25 + $0x18] sm:$0xff]  }
  0x58   : > { %5113 = vmatprep.mubr.msk.bf16.mxu0 %vm425_vm2, %v1926_v13  ;;  %v842_v13 = vrot.slane %v4382_v37, 1  ;;  %v845_v55 = vrot.slane %v5781_v19, 1  ;;  %v2328_v25 = vrot.slane %v6165_v15, 2  ;;  %v6192_v37 = vld [vmem:[%s5753_s25 + $0x48] sm:$0xff]  }
  0x5c   : > { %4978 = vmatmul.mubr.msk.bf16.vlgmr.msra.gmra.mrb[0].mxu1 %vm425_vm2, %v5764_v10 }
  0x5d   : > { %5010 = vmatpush3.bf16.msra.mxu1 %v924_v46  ;;  %4981 = vmatprep.mubr.msk.bf16.mxu1 %vm425_vm2, %v5781_v19  ;;  %v843_v46 = vrot.slane %v5764_v10, 1  ;;  %v2320_v10 = vrot.slane %v6119_v9, 2  ;;  %v1319_v19 = vsel %vm474_vm0, %v6028_v18, 0 }
  0x5e   : > { %5592 = vmatprep.subr.msk.bf16.mxu1 %vm474_vm0, %v6028_v18 }
  0x5f   : > { %5114 = vmatmul.mubr.msk.bf16.vlgmr.msra.gmra.mrb[0].mxu0 %vm425_vm2, %v1928_v52  ;;  %v1955_v52 = vrot.slane %v5992_v36, 2  ;;  %v846_v59 = vsel %vm841_vm5, %v843_v46, %v845_v55 }
  0x60   : > { %5117 = vmatprep.mubr.msk.bf16.mxu0 %vm425_vm2, %v1930_v28  ;;  %5146 = vmatpush3.bf16.msra.mxu0 %v2401_v39  ;;  %v844_v28 = vsel %vm841_vm5, %v842_v13, %v843_v46  ;;  %v2319_v39 = vrot.slane %v6116_v8, 2  ;;  %v6205_v46 = vld [vmem:[%s5753_s25 + $0x50] sm:$0xff]  }
  0x61   : > { %5596 = vmatprep.subr.msk.bf16.mxu0 %vm474_vm0, %v6044_v34  ;;  %v1956_v63 = vsel %vm1923_vm4, %v1953_v40, %v1955_v52 }
  0x62   : > { %v2321_v36 = vsel %vm1923_vm4, %v2319_v39, %v2320_v10 }
  0x64   : > { %4982 = vmatmul.mubr.msk.bf16.gmra.mrb[4].mxu1 %vm425_vm2, %v5795_v33 }
  0x65   : > { %4985 = vmatprep.mubr.msk.bf16.mxu1 %vm425_vm2, %v5813_v48  ;;  %v6172_v48 = vld [vmem:[%s6721_s1 + $0x10] sm:$0x3] }
  0x67   : > { %5118 = vmatmul.mubr.msk.bf16.gmra.mrb[4].mxu0 %vm425_vm2, %v1932_v1  ;;  %v6133_v1 = vld [vmem:[%s5753_s25 + $0x20] sm:$0xff]  }
  0x68   : > { %5121 = vmatprep.mubr.msk.bf16.mxu0 %vm425_vm2, %v1934_v2  ;;  %v847_v2 = vrot.slane %v5795_v33, 1  ;;  %v2324_v33 = vrot.slane %v6138_v49, 2 }
  0x6c   : > { %4986 = vmatmul.mubr.msk.bf16.gmra.mrb[8].mxu1 %vm425_vm2, %v5822_v54 }
  0x6d   : > { %4989 = vmatprep.mubr.msk.bf16.mxu1 %vm425_vm2, %v5833_v0 }
  0x6f   : > { %5122 = vmatmul.mubr.msk.bf16.gmra.mrb[8].mxu0 %vm425_vm2, %v1936_v4  ;;  %v2322_v4 = vrot.slane %v6133_v1, 2 }
  0x70   : > { %5125 = vmatprep.mubr.msk.bf16.mxu0 %vm425_vm2, %v1938_v5  ;;  %v848_v5 = vsel %vm841_vm5, %v845_v55, %v847_v2 }
  0x71   : > { %v2323_v18 = vsel %vm1923_vm4, %v2320_v10, %v2322_v4  ;;  %v2325_v53 = vsel %vm1923_vm4, %v2322_v4, %v2324_v33 }
  0x74   : > { %4990 = vmatmul.mubr.msk.bf16.gmra.mrb[12].mxu1 %vm425_vm2, %v5861_v32  ;;  %v857_v32 = vrot.slane %v5877_v50, 1 }
  0x75   : > { %4993 = vmatprep.mubr.msk.bf16.mxu1 %vm425_vm2, %v5877_v50  ;;  %v2334_v50 = vrot.slane %v6205_v46, 2 }
  0x76   : > { %v858_v39 = vsel %vm841_vm5, %v855_v30, %v857_v32 }
  0x77   : > { %5126 = vmatmul.mubr.msk.bf16.gmra.mrb[12].mxu0 %vm425_vm2, %v1940_v12  ;;  %v6158_v12 = vld [vmem:[%s5753_s25 + $0x30] sm:$0xff]  }
  0x78   : > { %5129 = vmatprep.mubr.msk.bf16.mxu0 %vm425_vm2, %v1942_v6  ;;  %v851_v6 = vrot.slane %v5822_v54, 1  ;;  %v850_v54 = vsel %vm841_vm5, %v847_v2, %v849_v22  ;;  %v6223_v2 = vld [vmem:[%s5753_s25 + $0x60] sm:$0xff]  }
  0x7a   : > { %v852_v24 = vsel %vm841_vm5, %v849_v22, %v851_v6 }
  0x7c   : > { %4994 = vmatmul.mubr.msk.bf16.gmra.mrb[16].mxu1 %vm425_vm2, %v5888_v62 }
  0x7d   : > { %4997 = vmatprep.mubr.msk.bf16.mxu1 %vm425_vm2, %v5905_v23 }
  0x7f   : > { %5130 = vmatmul.mubr.msk.bf16.gmra.mrb[16].mxu0 %vm425_vm2, %v1944_v16  ;;  %v2804_v16 = vsel %vm474_vm0, %v6044_v34, 0  ;;  %v853_v34 = vrot.slane %v5833_v0, 1 }
  0x80   : > { %5133 = vmatprep.mubr.msk.bf16.mxu0 %vm425_vm2, %v1946_v17  ;;  %v2326_v17 = vrot.slane %v6158_v12, 2 }
  0x81   : > { %v854_v40 = vsel %vm841_vm5, %v851_v6, %v853_v34  ;;  %v856_v41 = vsel %vm841_vm5, %v853_v34, %v855_v30  ;;  %v867_v6 = vrot.slane %v5941_v14, 1  ;;  %v6259_v34 = vld [vmem:[%s5753_s25 + $0x80] sm:$0xff]   ;;  %v6263_v30 = vld [vmem:[%s5753_s25 + $0x88] sm:$0xff]  }
  0x82   : > { %v2329_v35 = vsel %vm1923_vm4, %v2326_v17, %v2328_v25 }
  0x84   : > { %4998 = vmatmul.mubr.msk.bf16.gmra.mrb[20].mxu1 %vm425_vm2, %v5915_v38 }
  0x85   : > { %5001 = vmatprep.mubr.msk.bf16.mxu1 %vm425_vm2, %v5933_v58 }
  0x87   : > { %5134 = vmatmul.mubr.msk.bf16.gmra.mrb[20].mxu0 %vm425_vm2, %v1948_v27  ;;  %v2327_v27 = vsel %vm1923_vm4, %v2324_v33, %v2326_v17 }
  0x88   : > { %5137 = vmatprep.mubr.msk.bf16.mxu0 %vm425_vm2, %v1950_v11  ;;  %v6187_v11 = vld [vmem:[%s5753_s25 + $0x40] sm:$0xff]  }
  0x89   : > { %v2330_v0 = vrot.slane %v6187_v11, 2 }
  0x8b   : > { %v2331_v13 = vsel %vm1923_vm4, %v2328_v25, %v2330_v0 }
  0x8c   : > { %5002 = vmatmul.mubr.msk.bf16.gmra.mrb[24].mxu1 %vm425_vm2, %v5941_v14  ;;  %v869_v14 = vrot.slane %v5961_v44, 1 }
  0x8d   : > { %5005 = vmatprep.mubr.msk.bf16.mxu1 %vm425_vm2, %v5961_v44  ;;  %v2346_v44 = vrot.slane %v6259_v34, 2 }
  0x8f   : > { %5138 = vmatmul.mubr.msk.bf16.gmra.mrb[24].mxu0 %vm425_vm2, %v1952_v29  ;;  %v2332_v29 = vrot.slane %v6192_v37, 2 }
  0x90   : > { %5141 = vmatprep.mubr.msk.bf16.mxu0 %vm425_vm2, %v1954_v47  ;;  %v859_v47 = vrot.slane %v5888_v62, 1  ;;  %v861_v62 = vrot.slane %v5905_v23, 1  ;;  %v2338_v23 = vrot.slane %v6223_v2, 2 }
  0x91   : > { %v2333_v52 = vsel %vm1923_vm4, %v2330_v0, %v2332_v29 }
  0x92   : > { %v860_v10 = vsel %vm841_vm5, %v857_v32, %v859_v47  ;;  %v862_v4 = vsel %vm841_vm5, %v859_v47, %v861_v62  ;;  %v2612_v32 = vshrl.u32 %v6119_v9, 16  ;;  %v873_v47 = vrot.slane %v5988_v31, 1 }
  0x94   : > { %5006 = vmatmul.mubr.msk.bf16.gmra.mrb[28].mxu1 %vm425_vm2, %v5969_v57 }
  0x95   : > { %5011 = vmatprep.mubr.msk.bf16.mxu1 %vm425_vm2, %v844_v28  ;;  %v6210_v28 = vld [vmem:[%s5753_s25 + $0x58] sm:$0xff]  }
  0x96   : > { %v2336_v55 = vrot.slane %v6210_v28, 2 }
  0x97   : > { %5142 = vmatmul.mubr.msk.bf16.gmra.mrb[28].mxu0 %vm425_vm2, %v1956_v63  ;;  %v2335_v63 = vsel %vm1923_vm4, %v2332_v29, %v2334_v50  ;;  %v2607_v29 = vshll.u32 %v6116_v8, 16 }
  0x98   : > { %5147 = vmatprep.mubr.msk.bf16.mxu0 %vm425_vm2, %v2321_v36  ;;  %v863_v36 = vrot.slane %v5915_v38, 1  ;;  %v865_v38 = vrot.slane %v5933_v58, 1  ;;  %v2339_v22 = vsel %vm1923_vm4, %v2336_v55, %v2338_v23 }
  0x9a   : > { %v868_v17 = vsel %vm841_vm5, %v865_v38, %v867_v6 }
  0x9c   : > { %5012 = vmatmul.mubr.msk.bf16.vlgmr.msra.gmra.mrb[0].mxu1 %vm425_vm2, %v846_v59  ;;  %v2337_v59 = vsel %vm1923_vm4, %v2334_v50, %v2336_v55  ;;  %v5669_v50 = vld [vmem:[%s5753_s25 + $0x90] ss:$0 sps:$4 sm:$0x33]  }
  0x9d   : > { %5044 = vmatpush3.bf16.msra.mxu1 %v1319_v19  ;;  %5015 = vmatprep.mubr.msk.bf16.mxu1 %vm425_vm2, %v848_v5  ;;  %v6228_v19 = vld [vmem:[%s5753_s25 + $0x68] sm:$0xff]   ;;  %v864_v5 = vsel %vm841_vm5, %v861_v62, %v863_v36  ;;  %v5687_v55 = vld [vmem:[%s5753_s25 + $0x10] sm:$0xff]   ;;  %v2350_v31 = vrot.slane %v5669_v50, 2 }
  0x9e   : > { %5598 = vmatprep.subr.msk.bf16.mxu1 %vm474_vm0, %v6151_v56  ;;  %v2340_v33 = vrot.slane %v6228_v19, 2  ;;  %v1238_v62 = vrot.slane %v5687_v55, 1 }
  0x9f   : > { %5148 = vmatmul.mubr.msk.bf16.vlgmr.msra.gmra.mrb[0].mxu0 %vm425_vm2, %v2323_v18  ;;  %v6241_v18 = vld [vmem:[%s5753_s25 + $0x70] sm:$0xff]  }
  0xa0   : > { %5151 = vmatprep.mubr.msk.bf16.mxu0 %vm425_vm2, %v2325_v53  ;;  %5180 = vmatpush3.bf16.msra.mxu0 %v2804_v16  ;;  %v2341_v53 = vsel %vm1923_vm4, %v2338_v23, %v2340_v33  ;;  %v6246_v16 = vld [vmem:[%s5753_s25 + $0x78] sm:$0xff]   ;;  %v2342_v58 = vrot.slane %v6241_v18, 2 }
  0xa1   : > { %5597 = vmatprep.subr.msk.bf16.mxu0 %vm474_vm0, %v6172_v48 }
  0xa2   : > { %v2343_v25 = vsel %vm1923_vm4, %v2340_v33, %v2342_v58 }
  0xa4   : > { %5016 = vmatmul.mubr.msk.bf16.gmra.mrb[4].mxu1 %vm425_vm2, %v850_v54  ;;  %v866_v54 = vsel %vm841_vm5, %v863_v36, %v865_v38  ;;  %v2614_v36 = vrot.slane %v2612_v32, 2  ;;  %v2642_v32 = vshll.u32 %v6158_v12, 16 }
  0xa5   : > { %5019 = vmatprep.mubr.msk.bf16.mxu1 %vm425_vm2, %v852_v24  ;;  %v2344_v24 = vrot.slane %v6246_v16, 2 }
  0xa7   : > { %5152 = vmatmul.mubr.msk.bf16.gmra.mrb[4].mxu0 %vm425_vm2, %v2327_v27  ;;  %v871_v27 = vrot.slane %v5969_v57, 1  ;;  %v2604_v57 = vshrl.u32 %v6116_v8, 16 }
  0xa8   : > { %5155 = vmatprep.mubr.msk.bf16.mxu0 %vm425_vm2, %v2329_v35  ;;  %v2345_v35 = vsel %vm1923_vm4, %v2342_v58, %v2344_v24 }
  0xa9   : > { %v872_v0 = vsel %vm841_vm5, %v869_v14, %v871_v27  ;;  %v2606_v8 = vrot.slane %v2604_v57, 2 }
  0xac   : > { %5020 = vmatmul.mubr.msk.bf16.gmra.mrb[8].mxu1 %vm425_vm2, %v854_v40  ;;  %v870_v40 = vsel %vm841_vm5, %v867_v6, %v869_v14  ;;  %v2633_v6 = vshll.u32 %v6138_v49, 16  ;;  %v5689_v14 = vld [vmem:[%s5753_s25 + $0x20] sm:$0xff]  }
  0xad   : > { %5023 = vmatprep.mubr.msk.bf16.mxu1 %vm425_vm2, %v856_v41  ;;  %v2348_v41 = vrot.slane %v6263_v30, 2 }
  0xaf   : > { %5156 = vmatmul.mubr.msk.bf16.gmra.mrb[8].mxu0 %vm425_vm2, %v2331_v13  ;;  %v2615_v13 = vshll.u32 %v6119_v9, 16  ;;  %v2351_v58 = vsel %vm1923_vm4, %v2348_v41, %v2350_v31  ;;  %v3088_v31 = vsel %vm474_vm0, %v6172_v48, 0  ;;  %v5692_v48 = vld [vmem:[%s5753_s25 + $0x38] sm:$0xff]  }
  0xb0   : > { %5159 = vmatprep.mubr.msk.bf16.mxu0 %vm425_vm2, %v2333_v52  ;;  %v2347_v52 = vsel %vm1923_vm4, %v2344_v24, %v2346_v44 }
  0xb4   : > { %5024 = vmatmul.mubr.msk.bf16.gmra.mrb[12].mxu1 %vm425_vm2, %v858_v39  ;;  %v2349_v39 = vsel %vm1923_vm4, %v2346_v44, %v2348_v41 }
  0xb5   : > { %5027 = vmatprep.mubr.msk.bf16.mxu1 %vm425_vm2, %v860_v10  ;;  %v1237_v10 = vrot.slane %v5784_v20, 1  ;;  %v2624_v20 = vshll.u32 %v6133_v1, 16 }
  0xb7   : > { %5160 = vmatmul.mubr.msk.bf16.gmra.mrb[12].mxu0 %vm425_vm2, %v2335_v63  ;;  %v2609_v63 = vrot.slane %v2607_v29, 3  ;;  %v1239_v23 = vsel %vm841_vm5, %v1237_v10, %v1238_v62  ;;  %v2626_v24 = vrot.slane %v2624_v20, 3  ;;  %v2639_v29 = vshrl.u32 %v6158_v12, 16 }
  0xb8   : > { %5163 = vmatprep.mubr.msk.bf16.mxu0 %vm425_vm2, %v2337_v59  ;;  %v2617_v59 = vrot.slane %v2615_v13, 3 }
  0xb9   : > { %v2610_v33 = vor.u32 %v2609_v63, %v2606_v8  ;;  %v2641_v55 = vrot.slane %v2639_v29, 2  ;;  %v5691_v8 = vld [vmem:[%s5753_s25 + $0x30] sm:$0xff]  }
  0xba   : > { %v2618_v38 = vor.u32 %v2617_v59, %v2614_v36  ;;  %v1246_v63 = vrot.slane %v5691_v8, 1 }
  0xbc   : > { %5028 = vmatmul.mubr.msk.bf16.gmra.mrb[16].mxu1 %vm425_vm2, %v862_v4  ;;  %v874_v4 = vsel %vm841_vm5, %v871_v27, %v873_v47  ;;  %v2619_v27 = vsel %vm2602_vm6, %v2610_v33, %v2618_v38  ;;  %v2648_v47 = vshrl.u32 %v6165_v15, 16  ;;  %v2657_v33 = vshrl.u32 %v6187_v11, 16 }
  0xbd   : > { %5031 = vmatprep.mubr.msk.bf16.mxu1 %vm425_vm2, %v864_v5  ;;  %v2621_v5 = vshrl.u32 %v6133_v1, 16 }
  0xbe   : > { %v2650_v59 = vrot.slane %v2648_v47, 2 }
  0xbf   : > { %5164 = vmatmul.mubr.msk.bf16.gmra.mrb[16].mxu0 %vm425_vm2, %v2339_v22  ;;  %v2630_v22 = vshrl.u32 %v6138_v49, 16 }
  0xc0   : > { %5167 = vmatprep.mubr.msk.bf16.mxu0 %vm425_vm2, %v2341_v53  ;;  %v5688_v53 = vld [vmem:[%s5753_s25 + $0x18] sm:$0xff]  }
  0xc4   : > { %5032 = vmatmul.mubr.msk.bf16.gmra.mrb[20].mxu1 %vm425_vm2, %v866_v54  ;;  %v1240_v54 = vrot.slane %v5688_v53, 1  ;;  %v2669_v53 = vshll.u32 %v6192_v37, 16 }
  0xc5   : > { %5035 = vmatprep.mubr.msk.bf16.mxu1 %vm425_vm2, %v868_v17  ;;  %v2623_v17 = vrot.slane %v2621_v5, 2 }
  0xc6   : > { %v1241_v44 = vsel %vm841_vm5, %v1238_v62, %v1240_v54  ;;  %v2644_v62 = vrot.slane %v2642_v32, 3  ;;  %v2687_v32 = vshll.u32 %v6210_v28, 16 }
  0xc7   : > { %5168 = vmatmul.mubr.msk.bf16.gmra.mrb[20].mxu0 %vm425_vm2, %v2343_v25  ;;  %v1242_v25 = vrot.slane %v5689_v14, 1  ;;  %v2627_v57 = vor.u32 %v2626_v24, %v2623_v17  ;;  %v2659_v17 = vrot.slane %v2657_v33, 2  ;;  %v1250_v14 = vrot.slane %v5872_v43, 1 }
  0xc8   : > { %5171 = vmatprep.mubr.msk.bf16.mxu0 %vm425_vm2, %v2345_v35  ;;  %v2632_v35 = vrot.slane %v2630_v22, 2  ;;  %v2645_v5 = vor.u32 %v2644_v62, %v2641_v55  ;;  %v2684_v43 = vshrl.u32 %v6210_v28, 16  ;;  %v2689_v62 = vrot.slane %v2687_v32, 3 }
  0xc9   : > { %v1243_v41 = vsel %vm841_vm5, %v1240_v54, %v1242_v25  ;;  %v2628_v10 = vsel %vm2602_vm6, %v2618_v38, %v2627_v57  ;;  %v2660_v38 = vshll.u32 %v6187_v11, 16  ;;  %v1248_v54 = vrot.slane %v5692_v48, 1 }
  0xca   : > { %v2686_v55 = vrot.slane %v2684_v43, 2  ;;  %v6381_v43 = vld [vmem:[%s5753_s25 + $0x84] sm:$0xf] }
  0xcb   : > { %v2662_v24 = vrot.slane %v2660_v38, 3  ;;  %v1258_v38 = vrot.slane %v5923_v45, 1 }
  0xcc   : > { %5036 = vmatmul.mubr.msk.bf16.gmra.mrb[24].mxu1 %vm425_vm2, %v870_v40  ;;  %v2635_v40 = vrot.slane %v2633_v6, 3  ;;  %v2666_v6 = vshrl.u32 %v6192_v37, 16 }
  0xcd   : > { %5039 = vmatprep.mubr.msk.bf16.mxu1 %vm425_vm2, %v872_v0  ;;  %v3560_v0 = vsel %vm474_vm0, %v6151_v56, 0  ;;  %v5690_v56 = vld [vmem:[%s5753_s25 + $0x28] sm:$0xff]  }
  0xce   : > { %v2636_v13 = vor.u32 %v2635_v40, %v2632_v35  ;;  %v1244_v50 = vrot.slane %v5690_v56, 1  ;;  %v2671_v35 = vrot.slane %v2669_v53, 3  ;;  %v1249_v40 = vsel %vm841_vm5, %v1246_v63, %v1248_v54 }
  0xcf   : > { %5172 = vmatmul.mubr.msk.bf16.gmra.mrb[24].mxu0 %vm425_vm2, %v2347_v52  ;;  %v2651_v52 = vshll.u32 %v6165_v15, 16 }
  0xd0   : > { %5175 = vmatprep.mubr.msk.bf16.mxu0 %vm425_vm2, %v2349_v39  ;;  %v6311_v39 = vld [vmem:[%s6721_s1] sm:$0x3]  ;;  %v2637_v36 = vsel %vm2602_vm6, %v2627_v57, %v2636_v13  ;;  %v1247_v20 = vsel %vm841_vm5, %v1244_v50, %v1246_v63  ;;  %v2675_v57 = vshrl.u32 %v6205_v46, 16 }
  0xd4   : > { %5040 = vmatmul.mubr.msk.bf16.gmra.mrb[28].mxu1 %vm425_vm2, %v874_v4  ;;  %v2653_v4 = vrot.slane %v2651_v52, 3  ;;  %v2677_v52 = vrot.slane %v2675_v57, 2 }
  0xd5   : > { %5045 = vmatprep.mubr.msk.bf16.mxu1 %vm425_vm2, %v1239_v23  ;;  %v1245_v23 = vsel %vm841_vm5, %v1242_v25, %v1244_v50  ;;  %v1254_v50 = vrot.slane %v5897_v7, 1  ;;  %v2702_v7 = vshrl.u32 %v6228_v19, 16 }
  0xd6   : > { %v2654_v22 = vor.u32 %v2653_v4, %v2650_v59  ;;  %v2696_v59 = vshll.u32 %v6223_v2, 16  ;;  %v2690_v4 = vor.u32 %v2689_v62, %v2686_v55  ;;  %v1264_v55 = vrot.slane %v5965_v51, 1 }
  0xd7   : > { %5176 = vmatmul.mubr.msk.bf16.gmra.mrb[28].mxu0 %vm425_vm2, %v2351_v58  ;;  %v2646_v58 = vsel %vm2602_vm6, %v2636_v13, %v2645_v5  ;;  %v1252_v13 = vrot.slane %v5885_v61, 1  ;;  %v2693_v61 = vshrl.u32 %v6223_v2, 16 }
  0xd8   : > { %5181 = vmatprep.mubr.msk.bf16.mxu0 %vm425_vm2, %v2619_v27  ;;  %v2655_v25 = vsel %vm2602_vm6, %v2645_v5, %v2654_v22  ;;  %v2668_v27 = vrot.slane %v2666_v6, 2  ;;  %v2698_v33 = vrot.slane %v2696_v59, 3  ;;  %v2704_v6 = vrot.slane %v2702_v7, 2  ;;  %v6403_v59 = vld [vmem:[%s5753_s25 + $0x88] sm:$0xff]  }
  0xd9   : > { %v1253_v8 = vsel %vm841_vm5, %v1250_v14, %v1252_v13 }
  0xda   : > { %v2672_v29 = vor.u32 %v2671_v35, %v2668_v27 }
  0xdc   : > { %5046 = vmatmul.mubr.msk.bf16.vlgmr.msra.gmra.mrb[0].mxu1 %vm425_vm2, %v1241_v44  ;;  %v2663_v44 = vor.u32 %v2662_v24, %v2659_v17  ;;  %v2714_v17 = vshll.u32 %v6241_v18, 16  ;;  %v2720_v24 = vshrl.u32 %v6246_v16, 16 }
  0xdd   : > { %5248 = vmatpush3.bf16.msra.mxu1 %v3560_v0  ;;  %5049 = vmatprep.mubr.msk.bf16.mxu1 %vm425_vm2, %v1243_v41  ;;  %v1251_v0 = vsel %vm841_vm5, %v1248_v54, %v1250_v14  ;;  %v2678_v41 = vshll.u32 %v6205_v46, 16  ;;  %v2723_v14 = vshll.u32 %v6246_v16, 16 }
  0xde   : > { %5599 = vmatprep.subr.msk.bf16.mxu1 %vm474_vm0, %v6311_v39  ;;  %v2664_v47 = vsel %vm2602_vm6, %v2654_v22, %v2663_v44  ;;  %v2722_v57 = vrot.slane %v2720_v24, 2 }
  0xdf   : > { %5182 = vmatmul.mubr.msk.bf16.vlgmr.msra.gmra.mrb[0].mxu0 %vm425_vm2, %v2628_v10  ;;  %v2680_v56 = vrot.slane %v2678_v41, 3  ;;  %v2673_v10 = vsel %vm2602_vm6, %v2663_v44, %v2672_v29  ;;  %v1262_v44 = vrot.slane %v5945_v21, 1  ;;  %v2725_v41 = vrot.slane %v2723_v14, 3 }
  0xe0   : > { %5185 = vmatprep.mubr.msk.bf16.mxu0 %vm425_vm2, %v2637_v36  ;;  %5214 = vmatpush3.bf16.msra.mxu0 %v3088_v31  ;;  %v1255_v36 = vsel %vm841_vm5, %v1252_v13, %v1254_v50  ;;  %v2705_v31 = vshll.u32 %v6228_v19, 16  ;;  %v2732_v13 = vshll.u32 %v6259_v34, 16 }
  0xe1   : > { %v2681_v63 = vor.u32 %v2680_v56, %v2677_v52  ;;  %v2726_v56 = vor.u32 %v2725_v41, %v2722_v57  ;;  %v1265_v51 = vsel %vm841_vm5, %v1262_v44, %v1264_v55 }
  0xe2   : > { %v2707_v53 = vrot.slane %v2705_v31, 3 }
  0xe3   : > { %v2682_v5 = vsel %vm2602_vm6, %v2672_v29, %v2681_v63  ;;  %v2691_v22 = vsel %vm2602_vm6, %v2681_v63, %v2690_v4  ;;  %v3513_v29 = vld [vmem:[%s5753_s25 + $0x80] sm:$0xf]  ;;  %v6398_v63 = vld [vmem:[%s5753_s25 + $0x90] ss:$0 sps:$4 sm:$0x77]  }
  0xe4   : > { %5050 = vmatmul.mubr.msk.bf16.gmra.mrb[4].mxu1 %vm425_vm2, %v1245_v23  ;;  %v1256_v23 = vrot.slane %v5910_v26, 1  ;;  %v2711_v26 = vshrl.u32 %v6241_v18, 16  ;;  %v2708_v45 = vor.u32 %v2707_v53, %v2704_v6  ;;  %v6390_v52 = vcombine.low %v3513_v29, %v6381_v43 }
  0xe5   : > { %5053 = vmatprep.mubr.msk.bf16.mxu1 %vm425_vm2, %v1247_v20  ;;  %v2695_v20 = vrot.slane %v2693_v61, 2  ;;  %v1266_v61 = vrot.slane %v5972_v60, 1  ;;  %v2750_v60 = vshll.u32 %v6398_v63, 16  ;;  %v3541_v53 = vshll.u32 %v6403_v59, 16 }
  0xe6   : > { %v1257_v48 = vsel %vm841_vm5, %v1254_v50, %v1256_v23  ;;  %v2713_v35 = vrot.slane %v2711_v26, 2  ;;  %v2738_v50 = vshrl.u32 %v6263_v30, 16 }
  0xe7   : > { %5186 = vmatmul.mubr.msk.bf16.gmra.mrb[4].mxu0 %vm425_vm2, %v2646_v58  ;;  %v2699_v54 = vor.u32 %v2698_v33, %v2695_v20  ;;  %v1259_v58 = vsel %vm841_vm5, %v1256_v23, %v1258_v38  ;;  %v5670_v20 = vld [vmem:[%s5753_s25 + $0x88] ss:$0 sps:$4 sm:$0x11]   ;;  %v2747_v33 = vshrl.u32 %v6398_v63, 16  ;;  %v2752_v24 = vrot.slane %v2750_v60, 3 }
  0xe8   : > { %5189 = vmatprep.mubr.msk.bf16.mxu0 %vm425_vm2, %v2655_v25  ;;  %v1260_v25 = vrot.slane %v5937_v3, 1  ;;  %v2729_v3 = vshrl.u32 %v6259_v34, 16  ;;  %v2740_v31 = vrot.slane %v2738_v50, 2  ;;  %v1268_v26 = vrot.slane %v5670_v20, 1 }
  0xe9   : > { %v2700_v27 = vsel %vm2602_vm6, %v2690_v4, %v2699_v54  ;;  %v3536_v4 = vshll.u32 %v6390_v52, 16  ;;  %v3011_v50 = vrot.slane %v6138_v49, 3  ;;  %v3019_v20 = vrot.slane %v6192_v37, 3 }
  0xea   : > { %v1261_v32 = vsel %vm841_vm5, %v1258_v38, %v1260_v25  ;;  %v2731_v62 = vrot.slane %v2729_v3, 2  ;;  %v1267_v38 = vsel %vm841_vm5, %v1264_v55, %v1266_v61  ;;  %v3667_v55 = vld [vmem:[%s5753_s25 + $0x80] sm:$0xe]  ;;  %v3021_v37 = vrot.slane %v6205_v46, 3 }
  0xeb   : > { %v3538_v6 = vrot.slane %v3536_v4, 1  ;;  %v4581_v49 = vcombine.low %v3667_v55, %v6381_v43  ;;  %v5679_v46 = vld [vmem:[%s5753_s25 + $0x98] ss:$0 sps:$4 sm:$0x11]  }
  0xec   : > { %5054 = vmatmul.mubr.msk.bf16.gmra.mrb[8].mxu1 %vm425_vm2, %v1249_v40  ;;  %v2716_v40 = vrot.slane %v2714_v17, 3  ;;  %v6421_v17 = vld [vmem:[%s5753_s25 + $0x90] ss:$0 sps:$4 sm:$0x11]  }
  0xed   : > { %5057 = vmatprep.mubr.msk.bf16.mxu1 %vm425_vm2, %v1251_v0  ;;  %v2709_v0 = vsel %vm2602_vm6, %v2699_v54, %v2708_v45  ;;  %v2999_v54 = vld [vmem:[%s5753_s25 + $0x10] sm:$0x8] }
  0xee   : > { %v2717_v21 = vor.u32 %v2716_v40, %v2713_v35  ;;  %v4522_v35 = vcombine.low %v2999_v54, %v6108_v42  ;;  %v1269_v40 = vsel %vm841_vm5, %v1266_v61, %v1268_v26  ;;  %v4590_v54 = vld [vmem:[%s6721_s1 + $0x8] sm:$0x3] }
  0xef   : > { %5190 = vmatmul.mubr.msk.bf16.gmra.mrb[8].mxu0 %vm425_vm2, %v2664_v47  ;;  %v1263_v47 = vsel %vm841_vm5, %v1260_v25, %v1262_v44  ;;  %v3543_v25 = vrot.slane %v3541_v53, 1  ;;  %v3545_v44 = vshrl.u32 %v6403_v59, 16  ;;  %v3023_v53 = vrot.slane %v6210_v28, 3 }
  0xf0   : > { %5193 = vmatprep.mubr.msk.bf16.mxu0 %vm425_vm2, %v2673_v10  ;;  %v2741_v10 = vshll.u32 %v6263_v30, 16  ;;  %v2727_v7 = vsel %vm2602_vm6, %v2717_v21, %v2726_v56  ;;  %v3006_v29 = vrot.slane %v4522_v35, 3  ;;  %v3022_v28 = vsel %vm3005_vm7, %v3019_v20, %v3021_v37 }
  0xf1   : > { %v3547_v42 = vor.u32 %v3545_v44, %v3543_v25  ;;  %v5680_v44 = vld [vmem:[%s5753_s25 + $0x98] ss:$0 sps:$4 sm:$0x33]  }
  0xf2   : > { %v2743_v23 = vrot.slane %v2741_v10, 3  ;;  %v4580_v10 = vld [vmem:[%s6721_s1 + $0x4] sm:$0x3] }
  0xf3   : > { %v3684_v4 = vsel %vm474_vm0, %v4580_v10, 0 }
  0xf4   : > { %5058 = vmatmul.mubr.msk.bf16.gmra.mrb[12].mxu1 %vm425_vm2, %v1253_v8  ;;  %v2734_v8 = vrot.slane %v2732_v13, 3 }
  0xf5   : > { %5061 = vmatprep.mubr.msk.bf16.mxu1 %vm425_vm2, %v1255_v36  ;;  %v2718_v36 = vsel %vm2602_vm6, %v2708_v45, %v2717_v21  ;;  %v2749_v45 = vrot.slane %v2747_v33, 2 }
  0xf7   : > { %5194 = vmatmul.mubr.msk.bf16.gmra.mrb[12].mxu0 %vm425_vm2, %v2682_v5  ;;  %v2735_v5 = vor.u32 %v2734_v8, %v2731_v62  ;;  %v2753_v57 = vor.u32 %v2752_v24, %v2749_v45  ;;  %v3013_v62 = vrot.slane %v6158_v12, 3  ;;  %v3015_v8 = vrot.slane %v6165_v15, 3  ;;  %v4584_v12 = vld [vmem:[%s6721_s1 + $0x6] sm:$0x3] }
  0xf8   : > { %5197 = vmatprep.mubr.msk.bf16.mxu0 %vm425_vm2, %v2691_v22  ;;  %v3534_v22 = vshrl.u32 %v6390_v52, 16  ;;  %v3017_v15 = vrot.slane %v6187_v11, 3  ;;  %v3024_v24 = vsel %vm3005_vm7, %v3021_v37, %v3023_v53 }
  0xf9   : > { %v3014_v61 = vsel %vm3005_vm7, %v3011_v50, %v3013_v62 }
  0xfa   : > { %v3539_v14 = vor.u32 %v3538_v6, %v3534_v22  ;;  %v3018_v33 = vsel %vm3005_vm7, %v3015_v8, %v3017_v15  ;;  %v3020_v22 = vsel %vm3005_vm7, %v3017_v15, %v3019_v20  ;;  %v3770_v6 = vsel %vm474_vm0, %v4584_v12, 0  ;;  %v5683_v15 = vld [vmem:[%s5753_s25 + $0x98] sm:$0xff]  }
  0xfb   : > { %v4010_v20 = vrot.slane %v5683_v15, 2  ;;  %v4093_v37 = vshll.u32 %v5683_v15, 16 }
  0xfc   : > { %5062 = vmatmul.mubr.msk.bf16.gmra.mrb[16].mxu1 %vm425_vm2, %v1257_v48  ;;  %v2744_v48 = vor.u32 %v2743_v23, %v2740_v31  ;;  %v3544_v41 = vsel %vm292_vm1, %v3539_v14, %v3543_v25  ;;  %v3739_v31 = vld [vmem:[%s5753_s25 + $0x88] sm:$0xe]  ;;  %v6465_v23 = vld [vmem:[%s5753_s25 + $0x8c] sm:$0xf] }
  0xfd   : > { %5065 = vmatprep.mubr.msk.bf16.mxu1 %vm425_vm2, %v1259_v58  ;;  %v2736_v58 = vsel %vm2602_vm6, %v2726_v56, %v2735_v5  ;;  %v3616_v56 = vsel %vm474_vm0, %v6311_v39, 0 }
  0xfe   : > { %v2754_v13 = vsel %vm2602_vm6, %v2744_v48, %v2753_v57  ;;  %v3027_v57 = vrot.slane %v6228_v19, 3 }
  0xff   : > { %5198 = vmatmul.mubr.msk.bf16.gmra.mrb[16].mxu0 %vm425_vm2, %v2700_v27  ;;  %v2745_v27 = vsel %vm2602_vm6, %v2735_v5, %v2744_v48  ;;  %v6478_v5 = vld [vmem:[%s5753_s25 + $0x90] sm:$0xff]  }
 0x100   : > { %5201 = vmatprep.mubr.msk.bf16.mxu0 %vm425_vm2, %v2709_v0  ;;  %v3549_v0 = vshll.u32 %v6421_v17, 16  ;;  %v3842_v45 = vshll.u32 %v6478_v5, 16 }
 0x102   : > { %v3551_v3 = vrot.slane %v3549_v0, 1  ;;  %v3844_v35 = vrot.slane %v3842_v45, 2  ;;  %v3025_v0 = vrot.slane %v6223_v2, 3  ;;  %v4594_v2 = vld [vmem:[%s6721_s1 + $0xa] sm:$0x3] }
 0x103   : > { %v5685_v45 = vld [vmem:[%s5753_s25 + $0xa0] ss:$0 sps:$4 sm:$0x77]  }
 0x104   : > { %5066 = vmatmul.mubr.msk.bf16.gmra.mrb[20].mxu1 %vm425_vm2, %v1261_v32  ;;  %v3007_v32 = vrot.slane %v6119_v9, 3  ;;  %v3009_v9 = vrot.slane %v6133_v1, 3 }
 0x105   : > { %5069 = vmatprep.mubr.msk.bf16.mxu1 %vm425_vm2, %v1263_v47  ;;  %v3552_v47 = vsel %vm292_vm1, %v3547_v42, %v3551_v3  ;;  %v3848_v42 = vshrl.u32 %v5680_v44, 16  ;;  %v3851_v3 = vshll.u32 %v5680_v44, 16 }
 0x106   : > { %v3008_v21 = vsel %vm3005_vm7, %v3006_v29, %v3007_v32  ;;  %v3010_v1 = vsel %vm3005_vm7, %v3007_v32, %v3009_v9  ;;  %v3012_v39 = vsel %vm3005_vm7, %v3009_v9, %v3011_v50 }
 0x107   : > { %5202 = vmatmul.mubr.msk.bf16.gmra.mrb[20].mxu0 %vm425_vm2, %v2718_v36  ;;  %v3672_v36 = vrot.slane %v4581_v49, 1  ;;  %v3850_v19 = vrot.slane %v3848_v42, 1  ;;  %v3853_v50 = vrot.slane %v3851_v3, 2  ;;  %v4175_v42 = vrot.slane %v5683_v15, 3 }
 0x108   : > { %5205 = vmatprep.mubr.msk.bf16.mxu0 %vm425_vm2, %v2727_v7  ;;  %v3016_v7 = vsel %vm3005_vm7, %v3013_v62, %v3015_v8  ;;  %v3924_v8 = vrot.slane %v6478_v5, 2 }
 0x10c   : > { %5070 = vmatmul.mubr.msk.bf16.gmra.mrb[24].mxu1 %vm425_vm2, %v1265_v51  ;;  %v4585_v51 = vcombine.low %v3739_v31, %v6465_v23  ;;  %v3991_v31 = vld [vmem:[%s5753_s25 + $0x94] sm:$0xf] }
 0x10d   : > { %5073 = vmatprep.mubr.msk.bf16.mxu1 %vm425_vm2, %v1267_v38  ;;  %v3759_v38 = vrot.slane %v6478_v5, 1 }
 0x10e   : > { %v3758_v60 = vrot.slane %v4585_v51, 1  ;;  %v3834_v26 = vshll.u32 %v4585_v51, 16 }
 0x10f   : > { %5206 = vmatmul.mubr.msk.bf16.gmra.mrb[24].mxu0 %vm425_vm2, %v2736_v58  ;;  %v3831_v58 = vshrl.u32 %v4585_v51, 16  ;;  %v3926_v51 = vrot.slane %v5680_v44, 2  ;;  %v4169_v44 = vld [vmem:[%s5753_s25 + $0x90] sm:$0x8] }
 0x110   : > { %5209 = vmatprep.mubr.msk.bf16.mxu0 %vm425_vm2, %v2745_v27  ;;  %v3760_v48 = vsel %vm841_vm5, %v3758_v60, %v3759_v38  ;;  %v3836_v25 = vrot.slane %v3834_v26, 2  ;;  %v4095_v26 = vrot.slane %v4093_v37, 3 }
 0x111   : > { %v3833_v14 = vrot.slane %v3831_v58, 1 }
 0x114   : > { %5074 = vmatmul.mubr.msk.bf16.gmra.mrb[28].mxu1 %vm425_vm2, %v1269_v40  ;;  %v3761_v40 = vrot.slane %v5679_v46, 1 }
 0x115   : > { %5249 = vmatprep.mubr.msk.bf16.mxu1 %vm425_vm2, %v3544_v41  ;;  %v3837_v41 = vor.u32 %v3836_v25, %v3833_v14  ;;  %v4099_v14 = vshrl.u32 %v5685_v45, 16  ;;  %v4102_v25 = vshll.u32 %v5685_v45, 16 }
 0x116   : > { %v3762_v32 = vsel %vm841_vm5, %v3759_v38, %v3761_v40  ;;  %v4608_v40 = vld [vmem:[%s6721_s1 + $0x10] sm:$0x3] }
 0x117   : > { %5210 = vmatmul.mubr.msk.bf16.gmra.mrb[28].mxu0 %vm425_vm2, %v2754_v13  ;;  %v3026_v13 = vsel %vm3005_vm7, %v3023_v53, %v3025_v0  ;;  %v5684_v53 = vld [vmem:[%s5753_s25 + $0xa0] ss:$0 sps:$4 sm:$0x33]  }
 0x118   : > { %5215 = vmatprep.mubr.msk.bf16.mxu0 %vm425_vm2, %v3008_v21  ;;  %v3863_v21 = vsel %vm474_vm0, %v4590_v54, 0 }
 0x11c   : > { %5250 = vmatmul.mubr.msk.bf16.vlgmr.msra.gmra.mrb[32].mxu1 %vm425_vm2, %v3552_v47  ;;  %v3028_v47 = vsel %vm3005_vm7, %v3025_v0, %v3027_v57  ;;  %v4101_v0 = vrot.slane %v4099_v14, 2 }
 0x11d   : > { %5254 = vmatpush3.bf16.msra.mxu1 %v3616_v56  ;;  %5255 = vmatprep.mubr.msk.bf16.mxu1 %vm425_vm2, %v6390_v52  ;;  %v3673_v52 = vrot.slane %v6403_v59, 1  ;;  %v3918_v56 = vld [vmem:[%s5753_s25 + $0x88] sm:$0xc] }
 0x11e   : > { %5600 = vmatprep.subr.msk.bf16.mxu1 %vm474_vm0, %v4580_v10  ;;  %v3029_v10 = vrot.slane %v6241_v18, 3  ;;  %v4595_v55 = vcombine.low %v3918_v56, %v6465_v23 }
 0x11f   : > { %5216 = vmatmul.mubr.msk.bf16.vlgmr.msra.gmra.mrb[0].mxu0 %vm425_vm2, %v3010_v1  ;;  %v3674_v43 = vsel %vm841_vm5, %v3672_v36, %v3673_v52  ;;  %v3031_v1 = vrot.slane %v6246_v16, 3  ;;  %v3033_v16 = vrot.slane %v6259_v34, 3 }
 0x120   : > { %5219 = vmatprep.mubr.msk.bf16.mxu0 %vm425_vm2, %v3012_v39  ;;  %v3854_v39 = vor.u32 %v3853_v50, %v3850_v19  ;;  %v3030_v49 = vsel %vm3005_vm7, %v3027_v57, %v3029_v10  ;;  %v3923_v62 = vrot.slane %v4595_v55, 2  ;;  %v4104_v57 = vrot.slane %v4102_v25, 3 }
 0x121   : > { %v3032_v36 = vsel %vm3005_vm7, %v3029_v10, %v3031_v1  ;;  %v3034_v23 = vsel %vm3005_vm7, %v3031_v1, %v3033_v16 }
 0x127   : > { %5220 = vmatmul.mubr.msk.bf16.gmra.mrb[4].mxu0 %vm425_vm2, %v3014_v61  ;;  %v3925_v61 = vsel %vm1923_vm4, %v3923_v62, %v3924_v8 }
 0x128   : > { %5256 = vmatmul.mubr.msk.bf16.vlgmr.msra.gmra.mrb[32].mxu1 %vm425_vm2, %v6403_v59  ;;  %5223 = vmatprep.mubr.msk.bf16.mxu0 %vm425_vm2, %v3016_v7  ;;  %v3675_v59 = vrot.slane %v6421_v17, 1  ;;  %v3839_v17 = vshrl.u32 %v6478_v5, 16  ;;  %v4598_v7 = vld [vmem:[%s6721_s1 + $0xc] sm:$0x3] }
 0x129   : > { %5260 = vmatpush3.bf16.msra.mxu1 %v3684_v4  ;;  %5261 = vmatprep.mubr.msk.bf16.mxu1 %vm425_vm2, %v3674_v43  ;;  %v3035_v4 = vrot.slane %v6263_v30, 3  ;;  %v3990_v43 = vld [vmem:[%s5753_s25 + $0x90] sm:$0xc]  ;;  %v3037_v30 = vrot.slane %v6398_v63, 3  ;;  %v4021_v60 = vsel %vm474_vm0, %v4598_v7, 0 }
 0x12a   : > { %5601 = vmatprep.subr.msk.bf16.mxu1 %vm474_vm0, %v4584_v12  ;;  %v3676_v11 = vsel %vm841_vm5, %v3673_v52, %v3675_v59  ;;  %v3841_v27 = vrot.slane %v3839_v17, 1  ;;  %v3935_v52 = vsel %vm474_vm0, %v4594_v2, 0  ;;  %v4599_v12 = vcombine.low %v3990_v43, %v3991_v31  ;;  %v4604_v63 = vld [vmem:[%s6721_s1 + $0xe] sm:$0x3] }
 0x12b   : > { %v3036_v34 = vsel %vm3005_vm7, %v3033_v16, %v3035_v4  ;;  %v3038_v59 = vsel %vm3005_vm7, %v3035_v4, %v3037_v30  ;;  %v4012_v17 = vrot.slane %v5684_v53, 2 }
 0x12c   : > { %v3845_v29 = vor.u32 %v3844_v35, %v3841_v27  ;;  %v4009_v5 = vrot.slane %v4599_v12, 2  ;;  %v4082_v38 = vshrl.u32 %v4599_v12, 16  ;;  %v4114_v27 = vsel %vm474_vm0, %v4604_v63, 0 }
 0x12e   : > { %v3846_v9 = vsel %vm1520_vm3, %v3837_v41, %v3845_v29  ;;  %v3855_v18 = vsel %vm1520_vm3, %v3845_v29, %v3854_v39  ;;  %v4609_v41 = vcombine.low %v4169_v44, %v3991_v31  ;;  %v4105_v29 = vor.u32 %v4104_v57, %v4101_v0 }
 0x12f   : > { %5224 = vmatmul.mubr.msk.bf16.gmra.mrb[8].mxu0 %vm425_vm2, %v3018_v33  ;;  %v3927_v33 = vsel %vm1923_vm4, %v3924_v8, %v3926_v51 }
 0x130   : > { %5227 = vmatprep.mubr.msk.bf16.mxu0 %vm425_vm2, %v3020_v22  ;;  %v4085_v22 = vshll.u32 %v4599_v12, 16 }
 0x134   : > { %5262 = vmatmul.mubr.msk.bf16.vlgmr.msra.gmra.mrb[32].mxu1 %vm425_vm2, %v3676_v11  ;;  %v4090_v11 = vshrl.u32 %v5683_v15, 16 }
 0x135   : > { %5266 = vmatpush3.bf16.msra.mxu1 %v3770_v6  ;;  %5267 = vmatprep.mubr.msk.bf16.mxu1 %vm425_vm2, %v3760_v48  ;;  %v4011_v6 = vsel %vm1923_vm4, %v4009_v5, %v4010_v20  ;;  %v4084_v48 = vrot.slane %v4082_v38, 2 }
 0x136   : > { %5602 = vmatprep.subr.msk.bf16.mxu1 %vm474_vm0, %v4590_v54  ;;  %v4087_v54 = vrot.slane %v4085_v22, 3  ;;  %v4092_v58 = vrot.slane %v4090_v11, 2  ;;  %v6631_v22 = vld [vmem:[%s6722_s2] ss:$0 sm:$0xff] }
 0x137   : > { %5228 = vmatmul.mubr.msk.bf16.gmra.mrb[12].mxu0 %vm425_vm2, %v3022_v28 }
 0x138   : > { %5231 = vmatprep.mubr.msk.bf16.mxu0 %vm425_vm2, %v3024_v24  ;;  %v4088_v46 = vor.u32 %v4087_v54, %v4084_v48  ;;  %v4096_v28 = vor.u32 %v4095_v26, %v4092_v58  ;;  %v4013_v24 = vsel %vm1923_vm4, %v4010_v20, %v4012_v17 }
 0x13a   : > { %v4097_v35 = vsel %vm2602_vm6, %v4088_v46, %v4096_v28  ;;  %v4106_v3 = vsel %vm2602_vm6, %v4096_v28, %v4105_v29 }
 0x13f   : > { %5232 = vmatmul.mubr.msk.bf16.gmra.mrb[16].mxu0 %vm425_vm2, %v3026_v13  ;;  %v4186_v13 = vsel %vm474_vm0, %v4608_v40, 0 }
 0x140   : > { %5268 = vmatmul.mubr.msk.bf16.vlgmr.msra.gmra.mrb[32].mxu1 %vm425_vm2, %v3762_v32  ;;  %5235 = vmatprep.mubr.msk.bf16.mxu0 %vm425_vm2, %v3028_v47  ;;  %v4174_v32 = vrot.slane %v4609_v41, 3  ;;  %v4177_v47 = vrot.slane %v5685_v45, 3 }
 0x141   : > { %5272 = vmatpush3.bf16.msra.mxu1 %v3863_v21  ;;  %5273 = vmatprep.mubr.msk.bf16.mxu1 %vm425_vm2, %v3846_v9 }
 0x142   : > { %5603 = vmatprep.subr.msk.bf16.mxu1 %vm474_vm0, %v4594_v2  ;;  %v4176_v21 = vsel %vm3005_vm7, %v4174_v32, %v4175_v42  ;;  %v4178_v9 = vsel %vm3005_vm7, %v4175_v42, %v4177_v47 }
 0x147   : > { %5236 = vmatmul.mubr.msk.bf16.gmra.mrb[20].mxu0 %vm425_vm2, %v3030_v49 }
 0x148   : > { %5239 = vmatprep.mubr.msk.bf16.mxu0 %vm425_vm2, %v3032_v36 }
 0x14c   : > { %5274 = vmatmul.mubr.msk.bf16.vlgmr.msra.gmra.mrb[32].mxu1 %vm425_vm2, %v3855_v18 }
 0x14d   : > { %5278 = vmatpush3.bf16.msra.mxu1 %v3935_v52  ;;  %5279 = vmatprep.mubr.msk.bf16.mxu1 %vm425_vm2, %v3925_v61 }
 0x14e   : > { %5604 = vmatprep.subr.msk.bf16.mxu1 %vm474_vm0, %v4598_v7 }
 0x14f   : > { %5240 = vmatmul.mubr.msk.bf16.gmra.mrb[24].mxu0 %vm425_vm2, %v3034_v23 }
 0x150   : > { %5243 = vmatprep.mubr.msk.bf16.mxu0 %vm425_vm2, %v3036_v34 }
 0x157   : > { %5244 = vmatmul.mubr.msk.bf16.gmra.mrb[28].mxu0 %vm425_vm2, %v3038_v59 }
 0x158   : > { %5280 = vmatmul.mubr.msk.bf16.vlgmr.msra.gmra.mrb[32].mxu1 %vm425_vm2, %v3927_v33 }
 0x159   : > { %5284 = vmatpush3.bf16.msra.mxu1 %v4021_v60  ;;  %5285 = vmatprep.mubr.msk.bf16.mxu1 %vm425_vm2, %v4011_v6 }
 0x15a   : > { %5605 = vmatprep.subr.msk.bf16.mxu1 %vm474_vm0, %v4604_v63 }
 0x164   : > { %5286 = vmatmul.mubr.msk.bf16.vlgmr.msra.gmra.mrb[32].mxu1 %vm425_vm2, %v4013_v24 }
 0x165   : > { %5290 = vmatpush3.bf16.msra.mxu1 %v4114_v27  ;;  %5291 = vmatprep.mubr.msk.bf16.mxu1 %vm425_vm2, %v4097_v35 }
 0x166   : > { %5606 = vmatprep.subr.msk.bf16.mxu1 %vm474_vm0, %v4608_v40 }
 0x170   : > { %5292 = vmatmul.mubr.msk.bf16.vlgmr.msra.gmra.mrb[32].mxu1 %vm425_vm2, %v4106_v3 }
 0x171   : > { %5296 = vmatpush3.bf16.msra.mxu1 %v4186_v13  ;;  %5297 = vmatprep.mubr.msk.bf16.mxu1 %vm425_vm2, %v4176_v21 }
 0x17c   : > { %5298 = vmatmul.mubr.msk.bf16.vlgmr.msra.gmra.mrb[32].mxu1 %vm425_vm2, %v4178_v9 }
 0x1af   : > { %v5047_v56 = vpop.f32.mrb[0].mxu1 }
 0x1b0   : > { %v1355_v2 = vpop.f32.mrb[1].mxu1 }
 0x1b1   : > { %v5048_v19 = vpop.f32.mrb[2].mxu1 }
 0x1b2   : > { %v1358_v50 = vpop.f32.mrb[3].mxu1 }
 0x1b7   : > { %v5051_v10 = vpop.f32.mrb[4].mxu1 }
 0x1b8   : > { %v1371_v55 = vpop.f32.mrb[5].mxu1 }
 0x1b9   : > { %v5052_v1 = vpop.f32.mrb[6].mxu1 }
 0x1ba   : > { %v1374_v39 = vpop.f32.mrb[7].mxu1 }
 0x1bf   : > { %v6580_v49 = vpop.f32.mrb[8].mxu1 }
 0x1c0   : > { %v6582_v62 = vpop.f32.mrb[9].mxu1 }
 0x1c1   : > { %v6584_v8 = vpop.f32.mrb[10].mxu1 }
 0x1c2   : > { %v6586_v36 = vpop.f32.mrb[11].mxu1 }
 0x1c7   : > { %v6588_v18 = vpop.f32.mrb[12].mxu1 }
 0x1c8   : > { %v6590_v16 = vpop.f32.mrb[13].mxu1 }
 0x1c9   : > { %v6592_v52 = vpop.f32.mrb[14].mxu1 }
 0x1ca   : > { %v6594_v61 = vpop.f32.mrb[15].mxu1 }
 0x1cf   : > { %v6596_v4 = vpop.f32.mrb[16].mxu1 }
 0x1d0   : > { %v6598_v7 = vpop.f32.mrb[17].mxu1 }
 0x1d1   : > { %v6600_v43 = vpop.f32.mrb[18].mxu1 }
 0x1d2   : > { %v6602_v31 = vpop.f32.mrb[19].mxu1 }
 0x1d7   : > { %v6604_v23 = vpop.f32.mrb[20].mxu1 }
 0x1d8   : > { %v6606_v34 = vpop.f32.mrb[21].mxu1 }
 0x1d9   : > { %v6608_v12 = vpop.f32.mrb[22].mxu1 }
 0x1da   : > { %v6610_v15 = vpop.f32.mrb[23].mxu1 }
 0x1df   : > { %v6612_v30 = vpop.f32.mrb[24].mxu1 }
 0x1e0   : > { %v6614_v51 = vpop.f32.mrb[25].mxu1 }
 0x1e1   : > { %v6616_v5 = vpop.f32.mrb[26].mxu1 }
 0x1e2   : > { %v6618_v20 = vpop.f32.mrb[27].mxu1 }
 0x1e7   : > { %v6620_v59 = vpop.f32.mrb[28].mxu1 }
 0x1e8   : > { %v6622_v33 = vpop.f32.mrb[29].mxu1 }
 0x1e9   : > { %v6624_v60 = vpop.f32.mrb[30].mxu1 }
 0x1ea   : > { %v6626_v38 = vpop.f32.mrb[31].mxu1 }
 0x1f2   : > { %v5217_v11 = vpop.f32.mrb[0].mxu0 }
 0x1f3   : > { %v5301_v37 = vadd.f32 %v5217_v11, %v5047_v56  ;;  %v3124_v6 = vpop.f32.mrb[1].mxu0 }
 0x1f4   : > { %v5302_v63 = vadd.f32 %v3124_v6, %v1355_v2  ;;  %v5218_v53 = vpop.f32.mrb[2].mxu0 }
 0x1f5   : > { %v3291_v48 = vadd.f32 %v5301_v37, %v6631_v22  ;;  %v5303_v54 = vadd.f32 %v5218_v53, %v5048_v19  ;;  %v3127_v58 = vpop.f32.mrb[3].mxu0 }
 0x1f6   : > { %v3289_v26 = vadd.f32 %v5302_v63, %v6631_v22  ;;  %v5304_v17 = vadd.f32 %v3127_v58, %v1358_v50 }
 0x1f7   : > { %v3292_v45 = vadd.f32 %v5303_v54, %v6631_v22  ;;  %v3323_v28 = vmax.f32 %v3291_v48, 0.0 }
 0x1f8   : > { %v3290_v46 = vadd.f32 %v5304_v17, %v6631_v22  ;;  %v3321_v14 = vmax.f32 %v3289_v26, 0.0 }
 0x1f9   : > { %v3324_v24 = vmax.f32 %v3292_v45, 0.0 }
 0x1fa   : > { %v3322_v25 = vmax.f32 %v3290_v46, 0.0  ;;  %v5221_v27 = vpop.f32.mrb[4].mxu0 }
 0x1fb   : > { %v4662_v35 = vpack.c.bf16 %v3324_v24, %v3323_v28  ;;  %v5305_v40 = vadd.f32 %v5221_v27, %v5051_v10  ;;  %v3140_v44 = vpop.f32.mrb[5].mxu0 }
 0x1fc   : > { %v4657_v0 = vpack.c.bf16 %v3322_v25, %v3321_v14  ;;  %v5306_v57 = vadd.f32 %v3140_v44, %v1371_v55  ;;  %v5222_v41 = vpop.f32.mrb[6].mxu0 }
 0x1fd   : > { %4744 = vst [vmem:[%s6641_s7 + $0x8] sm:$0xff] %v4662_v35   ;;  %v3295_v29 = vadd.f32 %v5305_v40, %v6631_v22  ;;  %v5307_v32 = vadd.f32 %v5222_v41, %v5052_v1  ;;  %v3143_v42 = vpop.f32.mrb[7].mxu0 }
 0x1fe   : > { %4658 = vst [vmem:[%s6641_s7] sm:$0xff] %v4657_v0   ;;  %v3293_v3 = vadd.f32 %v5306_v57, %v6631_v22  ;;  %v5308_v13 = vadd.f32 %v3143_v42, %v1374_v39 }
 0x1ff   : > { %v3296_v21 = vadd.f32 %v5307_v32, %v6631_v22  ;;  %v3327_v9 = vmax.f32 %v3295_v29, 0.0 }
 0x200   : > { %v3294_v47 = vadd.f32 %v5308_v13, %v6631_v22  ;;  %v3325_v2 = vmax.f32 %v3293_v3, 0.0 }
 0x201   : > { %v3328_v56 = vmax.f32 %v3296_v21, 0.0 }
 0x202   : > { %v3326_v19 = vmax.f32 %v3294_v47, 0.0  ;;  %v5225_v50 = vpop.f32.mrb[8].mxu0 }
 0x203   : > { %v4672_v10 = vpack.c.bf16 %v3328_v56, %v3327_v9  ;;  %v5309_v55 = vadd.f32 %v5225_v50, %v6580_v49  ;;  %v3156_v1 = vpop.f32.mrb[9].mxu0 }
 0x204   : > { %v4667_v11 = vpack.c.bf16 %v3326_v19, %v3325_v2  ;;  %v5310_v37 = vadd.f32 %v3156_v1, %v6582_v62  ;;  %v5226_v6 = vpop.f32.mrb[10].mxu0 }
 0x205   : > { %4746 = vst [vmem:[%s6641_s7 + $0x18] sm:$0xff] %v4672_v10   ;;  %v3299_v39 = vadd.f32 %v5309_v55, %v6631_v22  ;;  %v5311_v63 = vadd.f32 %v5226_v6, %v6584_v8  ;;  %v3159_v53 = vpop.f32.mrb[11].mxu0 }
 0x206   : > { %4745 = vst [vmem:[%s6641_s7 + $0x10] sm:$0xff] %v4667_v11   ;;  %v3297_v48 = vadd.f32 %v5310_v37, %v6631_v22  ;;  %v5312_v54 = vadd.f32 %v3159_v53, %v6586_v36 }
 0x207   : > { %v3300_v58 = vadd.f32 %v5311_v63, %v6631_v22  ;;  %v3331_v26 = vmax.f32 %v3299_v39, 0.0 }
 0x208   : > { %v3298_v49 = vadd.f32 %v5312_v54, %v6631_v22  ;;  %v3329_v17 = vmax.f32 %v3297_v48, 0.0 }
 0x209   : > { %v3332_v62 = vmax.f32 %v3300_v58, 0.0 }
 0x20a   : > { %v3330_v45 = vmax.f32 %v3298_v49, 0.0  ;;  %v5229_v46 = vpop.f32.mrb[12].mxu0 }
 0x20b   : > { %v4682_v28 = vpack.c.bf16 %v3332_v62, %v3331_v26  ;;  %v5313_v8 = vadd.f32 %v5229_v46, %v6588_v18  ;;  %v3172_v24 = vpop.f32.mrb[13].mxu0 }
 0x20c   : > { %v4677_v14 = vpack.c.bf16 %v3330_v45, %v3329_v17  ;;  %v5314_v25 = vadd.f32 %v3172_v24, %v6590_v16  ;;  %v5230_v27 = vpop.f32.mrb[14].mxu0 }
 0x20d   : > { %4748 = vst [vmem:[%s6641_s7 + $0x28] sm:$0xff] %v4682_v28   ;;  %v3303_v36 = vadd.f32 %v5313_v8, %v6631_v22  ;;  %v5315_v35 = vadd.f32 %v5230_v27, %v6592_v52  ;;  %v3175_v40 = vpop.f32.mrb[15].mxu0 }
 0x20e   : > { %4747 = vst [vmem:[%s6641_s7 + $0x20] sm:$0xff] %v4677_v14   ;;  %v3301_v44 = vadd.f32 %v5314_v25, %v6631_v22  ;;  %v5316_v0 = vadd.f32 %v3175_v40, %v6594_v61 }
 0x20f   : > { %v3304_v57 = vadd.f32 %v5315_v35, %v6631_v22  ;;  %v3335_v41 = vmax.f32 %v3303_v36, 0.0 }
 0x210   : > { %v3302_v18 = vadd.f32 %v5316_v0, %v6631_v22  ;;  %v3333_v29 = vmax.f32 %v3301_v44, 0.0 }
 0x211   : > { %v3336_v16 = vmax.f32 %v3304_v57, 0.0 }
 0x212   : > { %v3334_v32 = vmax.f32 %v3302_v18, 0.0  ;;  %v5233_v42 = vpop.f32.mrb[16].mxu0 }
 0x213   : > { %v4692_v3 = vpack.c.bf16 %v3336_v16, %v3335_v41  ;;  %v5317_v52 = vadd.f32 %v5233_v42, %v6596_v4  ;;  %v3188_v13 = vpop.f32.mrb[17].mxu0 }
 0x214   : > { %v4687_v21 = vpack.c.bf16 %v3334_v32, %v3333_v29  ;;  %v5318_v47 = vadd.f32 %v3188_v13, %v6598_v7  ;;  %v5234_v9 = vpop.f32.mrb[18].mxu0 }
 0x215   : > { %4750 = vst [vmem:[%s6641_s7 + $0x38] sm:$0xff] %v4692_v3   ;;  %v3307_v61 = vadd.f32 %v5317_v52, %v6631_v22  ;;  %v5319_v56 = vadd.f32 %v5234_v9, %v6600_v43  ;;  %v3191_v2 = vpop.f32.mrb[19].mxu0 }
 0x216   : > { %4749 = vst [vmem:[%s6641_s7 + $0x30] sm:$0xff] %v4687_v21   ;;  %v3305_v19 = vadd.f32 %v5318_v47, %v6631_v22  ;;  %v5320_v50 = vadd.f32 %v3191_v2, %v6602_v31 }
 0x217   : > { %v3308_v10 = vadd.f32 %v5319_v56, %v6631_v22  ;;  %v3339_v55 = vmax.f32 %v3307_v61, 0.0 }
 0x218   : > { %v3306_v4 = vadd.f32 %v5320_v50, %v6631_v22  ;;  %v3337_v1 = vmax.f32 %v3305_v19, 0.0 }
 0x219   : > { %v3340_v7 = vmax.f32 %v3308_v10, 0.0 }
 0x21a   : > { %v3338_v11 = vmax.f32 %v3306_v4, 0.0  ;;  %v5237_v37 = vpop.f32.mrb[20].mxu0 }
 0x21b   : > { %v4702_v6 = vpack.c.bf16 %v3340_v7, %v3339_v55  ;;  %v5321_v43 = vadd.f32 %v5237_v37, %v6604_v23  ;;  %v3204_v39 = vpop.f32.mrb[21].mxu0 }
 0x21c   : > { %v4697_v63 = vpack.c.bf16 %v3338_v11, %v3337_v1  ;;  %v5322_v53 = vadd.f32 %v3204_v39, %v6606_v34  ;;  %v5238_v48 = vpop.f32.mrb[22].mxu0 }
 0x21d   : > { %4752 = vst [vmem:[%s6641_s7 + $0x48] sm:$0xff] %v4702_v6   ;;  %v3311_v31 = vadd.f32 %v5321_v43, %v6631_v22  ;;  %v5323_v54 = vadd.f32 %v5238_v48, %v6608_v12  ;;  %v3207_v58 = vpop.f32.mrb[23].mxu0 }
 0x21e   : > { %4751 = vst [vmem:[%s6641_s7 + $0x40] sm:$0xff] %v4697_v63   ;;  %v3309_v49 = vadd.f32 %v5322_v53, %v6631_v22  ;;  %v5324_v26 = vadd.f32 %v3207_v58, %v6610_v15 }
 0x21f   : > { %v3312_v62 = vadd.f32 %v5323_v54, %v6631_v22  ;;  %v3343_v17 = vmax.f32 %v3311_v31, 0.0 }
 0x220   : > { %v3310_v23 = vadd.f32 %v5324_v26, %v6631_v22  ;;  %v3341_v45 = vmax.f32 %v3309_v49, 0.0 }
 0x221   : > { %v3344_v34 = vmax.f32 %v3312_v62, 0.0 }
 0x222   : > { %v3342_v46 = vmax.f32 %v3310_v23, 0.0  ;;  %v5241_v28 = vpop.f32.mrb[24].mxu0 }
 0x223   : > { %v4712_v8 = vpack.c.bf16 %v3344_v34, %v3343_v17  ;;  %v5325_v12 = vadd.f32 %v5241_v28, %v6612_v30  ;;  %v3220_v24 = vpop.f32.mrb[25].mxu0 }
 0x224   : > { %v4707_v14 = vpack.c.bf16 %v3342_v46, %v3341_v45  ;;  %v5326_v25 = vadd.f32 %v3220_v24, %v6614_v51  ;;  %v5242_v27 = vpop.f32.mrb[26].mxu0 }
 0x225   : > { %4754 = vst [vmem:[%s6641_s7 + $0x58] sm:$0xff] %v4712_v8   ;;  %v3315_v15 = vadd.f32 %v5325_v12, %v6631_v22  ;;  %v5327_v36 = vadd.f32 %v5242_v27, %v6616_v5  ;;  %v3223_v35 = vpop.f32.mrb[27].mxu0 }
 0x226   : > { %4753 = vst [vmem:[%s6641_s7 + $0x50] sm:$0xff] %v4707_v14   ;;  %v3313_v40 = vadd.f32 %v5326_v25, %v6631_v22  ;;  %v5328_v44 = vadd.f32 %v3223_v35, %v6618_v20 }
 0x227   : > { %v3316_v0 = vadd.f32 %v5327_v36, %v6631_v22  ;;  %v3347_v57 = vmax.f32 %v3315_v15, 0.0 }
 0x228   : > { %v3314_v30 = vadd.f32 %v5328_v44, %v6631_v22  ;;  %v3345_v18 = vmax.f32 %v3313_v40, 0.0 }
 0x229   : > { %v3348_v51 = vmax.f32 %v3316_v0, 0.0 }
 0x22a   : > { %v3346_v41 = vmax.f32 %v3314_v30, 0.0  ;;  %v5245_v16 = vpop.f32.mrb[28].mxu0 }
 0x22b   : > { %v4722_v29 = vpack.c.bf16 %v3348_v51, %v3347_v57  ;;  %v5329_v5 = vadd.f32 %v5245_v16, %v6620_v59  ;;  %v3236_v32 = vpop.f32.mrb[29].mxu0 }
 0x22c   : > { %v4717_v42 = vpack.c.bf16 %v3346_v41, %v3345_v18  ;;  %v5330_v3 = vadd.f32 %v3236_v32, %v6622_v33  ;;  %v5246_v52 = vpop.f32.mrb[30].mxu0 }
 0x22d   : > { %4756 = vst [vmem:[%s6641_s7 + $0x68] sm:$0xff] %v4722_v29   ;;  %v3319_v20 = vadd.f32 %v5329_v5, %v6631_v22  ;;  %v5331_v13 = vadd.f32 %v5246_v52, %v6624_v60  ;;  %v3239_v21 = vpop.f32.mrb[31].mxu0 }
 0x22e   : > { %4755 = vst [vmem:[%s6641_s7 + $0x60] sm:$0xff] %v4717_v42   ;;  %v3317_v47 = vadd.f32 %v5330_v3, %v6631_v22  ;;  %v5332_v9 = vadd.f32 %v3239_v21, %v6626_v38 }
 0x22f   : > { %v3320_v59 = vadd.f32 %v5331_v13, %v6631_v22  ;;  %v3351_v56 = vmax.f32 %v3319_v20, 0.0 }
 0x230   : > { %v3318_v61 = vadd.f32 %v5332_v9, %v6631_v22  ;;  %v3349_v2 = vmax.f32 %v3317_v47, 0.0 }
 0x231   : > { %v3352_v33 = vmax.f32 %v3320_v59, 0.0 }
 0x232   : > { %v3350_v19 = vmax.f32 %v3318_v61, 0.0 }
 0x233   : > { %v4732_v50 = vpack.c.bf16 %v3352_v33, %v3351_v56 }
 0x234   : > { %v4727_v10 = vpack.c.bf16 %v3350_v19, %v3349_v2 }
 0x235   : > { %4758 = vst [vmem:[%s6641_s7 + $0x78] sm:$0xff] %v4732_v50  }
 0x236   : > { %4757 = vst [vmem:[%s6641_s7 + $0x70] sm:$0xff] %v4727_v10  }
 0x24f   : > { %v5299_v60 = vpop.f32.mrb[32].mxu1 }
 0x250   : > { %v4243_v4 = vadd.f32 %v5299_v60, %v6631_v22  ;;  %v4222_v55 = vpop.f32.mrb[33].mxu1 }
 0x251   : > { %v4241_v38 = vadd.f32 %v6631_v22, %v4222_v55  ;;  %v5300_v7 = vpop.f32.mrb[34].mxu1 }
 0x252   : > { %v4244_v1 = vadd.f32 %v5300_v7, %v6631_v22  ;;  %v4225_v11 = vpop.f32.mrb[35].mxu1  ;;  %v4247_v6 = vmax.f32 %v4243_v4, 0.0 }
 0x253   : > { %v4242_v37 = vadd.f32 %v6631_v22, %v4225_v11  ;;  %v4245_v39 = vmax.f32 %v4241_v38, 0.0 }
 0x254   : > { %v4248_v43 = vmax.f32 %v4244_v1, 0.0 }
 0x255   : > { %v4246_v63 = vmax.f32 %v4242_v37, 0.0 }
 0x256   : > { %v4742_v53 = vpack.c.bf16 %v4248_v43, %v4247_v6 }
 0x257   : > { %v4737_v48 = vpack.c.bf16 %v4246_v63, %v4245_v39 }
 0x258   : > { %4760 = vst [vmem:[%s6641_s7 + $0x88] sm:$0xff] %v4742_v53  }
 0x259   : > { %4759 = vst [vmem:[%s6641_s7 + $0x80] sm:$0xff] %v4737_v48  }
 0x25a PF: > { %s13_s12 = sadd.s32 1, %s5699_s12  }
 0x25b   : > { %p10_p4 = scmp.ge.s32.totalorder %s13_s12, 4  }
 0x25d   :  { %12 = sbr.rel (!%p10_p4) target bundleno = 1 (0x1), region = 70 }

// kernel: basic_block_forward.5
= control target key start
LH: loop header
LB: loop body
LE: loop exit
PB: predicated region body
PF: predicated region fallthrough
CT: control target
= control target key end

     0   :  { %s5661_s15 = smov 0   ;;  %s6711_s0 = inlined_call_operand.vmem [shape: bf16[2,326,8], index: 0, kind: input, shape index: {}]   ;;  %s6712_s1 = inlined_call_operand.vmem [shape: bf16[9,8,128], index: 1, kind: input, shape index: {}]   ;;  %s6713_s2 = inlined_call_operand.vmem [shape: f32[1,128], index: 2, kind: input, shape index: {}]   ;;  %s6714_s3 = inlined_call_operand.vmem [shape: bf16[2,288,128], index: 3, kind: input, shape index: {}]   ;;  %s6715_s4 = inlined_call_operand.vmem [shape: f32[2,288,128], index: 4, kind: output, shape index: {}]  }
   0x1 LB: > { %s4347_s16 = sadd.s32 4294967295, %s5634_s15   ;;  %p4351_p0 = scmp.ge.s32.totalorder %s5634_s15, 1  ;;  %s5634_s15 = sphi %s5661_s15, %s14_s15  }
   0x2   : > { %p172_p1 = scmp.lt.s32.totalorder %s5634_s15, 3 }
   0x4   : > { %p173_p2 = pnand %p4351_p0, %p172_p1 }
   0x5   : > { %v4355_v0 = vld [vmem:[%s6712_s1 + $0x4] sm:$0xf] (!%p173_p2)  ;;  %vm521_vm0 = vcmask (!%p173_p2), 1043456   ;;  %v4457_v1 = vld [vmem:[%s6712_s1 + $0x10] sm:$0xf] (!%p173_p2)  ;;  %p203_p3 = scmp.lt.s32.totalorder (!%p173_p2), %s4347_s16, 1 }
   0x6   : > { %176 = sbr.rel (%p173_p2) target bundleno = 602 (0x25a), region = 36  ;;  %5523 = vmatprep.subr.msk.bf16.mxu1 (!%p173_p2), %vm521_vm0, %v4355_v0  ;;  %v523_v2 = vsel (!%p173_p2), %vm521_vm0, %v4355_v0, 0  ;;  %5527 = vmatprep.subr.msk.bf16.mxu0 (!%p173_p2), %vm521_vm0, %v4457_v1  ;;  %v1769_v3 = vsel (!%p173_p2), %vm521_vm0, %v4457_v1, 0  ;;  %v252_v4 = vld [vmem:[%s6712_s1] sm:$0xf] (!%p173_p2)  ;;  %vm472_vm2 = vcmask (!%p173_p2), 64512  }
   0x7   : > { %4876 = vmatpush3.bf16.msra.mxu1 (!%p173_p2), %v523_v2  ;;  %5012 = vmatpush3.bf16.msra.mxu0 (!%p173_p2), %v1769_v3  ;;  %v4475_v5 = vld [vmem:[%s6712_s1 + $0x14] sm:$0xf] (!%p173_p2)  ;;  %vm339_vm1 = vsmask.f32 (!%p173_p2), 7424  ;;  %v719_v6 = vsel (!%p173_p2), %vm521_vm0, %v252_v4, 0  ;;  %vm1970_vm4 = vcmask (!%p173_p2), 1045504  }
   0x8   : > { %5524 = vmatprep.subr.msk.bf16.mxu1 (!%p173_p2), %vm521_vm0, %v252_v4  ;;  %5528 = vmatprep.subr.msk.bf16.mxu0 (!%p173_p2), %vm521_vm0, %v4475_v5  ;;  %vm1567_vm3 = vsmask.f32 (!%p173_p2), 6400  ;;  %v5708_v12 = vsel (!%p173_p2), %vm521_vm0, %v4475_v5, 0  ;;  %v5744_v39 = vld [vmem:[%s6712_s1 + $0x8] sm:$0xf] (!%p173_p2)  ;;  %vm888_vm5 = vcmask (!%p173_p2), 1046528  }
   0x9   : > { %v5780_v1 = vld [vmem:[%s6712_s1 + $0x18] sm:$0xf] (!%p173_p2)  ;;  %vm2649_vm6 = vsmask.f32 (!%p173_p2), 5376  ;;  %vm3052_vm7 = vcmask (!%p173_p2), 1044480  }
   0xd   : > { %s6717_s16 = smov (!%p203_p3, %s4347_s16), 1 }
   0xe   : > { %s5541_s25 = smul.u32 164, %s6717_s16 }
   0xf   : > { %s5543_s13 = smul.u32 288, %s6717_s16 }
  0x10   : > { %s5693_s28 = scalar_lea.vmem %s6711_s0, %s5541_s25 }
  0x11   : > { %v220_v7 = vld [vmem:[%s5693_s28] sm:$0xf]  ;;  %v5698_v8 = vld [vmem:[%s5693_s28 + $0x4] sm:$0xf]  ;;  %v5704_v10 = vld [vmem:[%s5693_s28 + $0x8] sm:$0xff]  }
  0x12   : > { %v5701_v9 = vcombine.low %v220_v7, %v5698_v8  ;;  %v1166_v11 = vld [vmem:[%s5693_s28 + $0x8] sm:$0xe]  ;;  %v5711_v13 = vld [vmem:[%s5693_s28 + $0xc] sm:$0xf]  ;;  %v348_v16 = vshll.u32 %v5704_v10, 16  ;;  %v352_v17 = vshrl.u32 %v5704_v10, 16 }
  0x13   : > { %v5718_v18 = vld [vmem:[%s5693_s28 + $0x10] sm:$0xff]   ;;  %v5724_v20 = vcombine.low %v1166_v11, %v5711_v13  ;;  %v5732_v28 = vld [vmem:[%s5693_s28 + $0x18] sm:$0xff]   ;;  %v5738_v34 = vld [vmem:[%s5693_s28 + $0x20] sm:$0xff]  }
  0x14   : > { %v341_v14 = vshrl.u32 %v5701_v9, 16  ;;  %v343_v15 = vshll.u32 %v5701_v9, 16  ;;  %v5721_v19 = vld [vmem:[%s5693_s28 + $0x10] sm:$0xff]   ;;  %v350_v22 = vrot.slane %v348_v16, 1  ;;  %v1577_v23 = vshrl.u32 %v5718_v18, 16  ;;  %v5735_v33 = vld [vmem:[%s5693_s28 + $0x18] sm:$0xff]  }
  0x15   : > { %v1580_v24 = vshll.u32 %v5718_v18, 16  ;;  %v1569_v25 = vshrl.u32 %v5724_v20, 16  ;;  %v1572_v26 = vshll.u32 %v5724_v20, 16  ;;  %v356_v27 = vshll.u32 %v5721_v19, 16  ;;  %v5753_v48 = vld [vmem:[%s5693_s28 + $0x20] sm:$0xff]   ;;  %v5756_v49 = vld [vmem:[%s5693_s28 + $0x28] sm:$0xff]  }
  0x16   : > { %v345_v21 = vrot.slane %v343_v15, 1  ;;  %v354_v30 = vor.u32 %v352_v17, %v350_v22  ;;  %v1579_v31 = vrot.slane %v1577_v23, 1  ;;  %v1586_v38 = vshrl.u32 %v5732_v28, 16  ;;  %v5762_v54 = vld [vmem:[%s5693_s28 + $0x28] sm:$0xff]   ;;  %v5768_v59 = vld [vmem:[%s5693_s28 + $0x30] sm:$0xff]  }
  0x17   : > { %v1582_v32 = vrot.slane %v1580_v24, 2  ;;  %v1571_v35 = vrot.slane %v1569_v25, 1  ;;  %v1574_v36 = vrot.slane %v1572_v26, 2  ;;  %v358_v37 = vrot.slane %v356_v27, 1  ;;  %v5773_v0 = vld [vmem:[%s5693_s28 + $0x30] sm:$0xff]  }
  0x18   : > { %v346_v29 = vor.u32 %v345_v21, %v341_v14  ;;  %v1589_v42 = vshll.u32 %v5732_v28, 16  ;;  %v360_v43 = vshrl.u32 %v5721_v19, 16  ;;  %v1588_v46 = vrot.slane %v1586_v38, 1 }
  0x19   : > { %v1583_v41 = vor.u32 %v1582_v32, %v1579_v31  ;;  %v1575_v44 = vor.u32 %v1574_v36, %v1571_v35  ;;  %v359_v45 = vsel %vm339_vm1, %v354_v30, %v358_v37  ;;  %v364_v47 = vshll.u32 %v5735_v33, 16  ;;  %v5801_v32 = vld [vmem:[%s5693_s28 + $0x38] sm:$0xff]  }
  0x1a   : > { %v351_v40 = vsel %vm339_vm1, %v346_v29, %v350_v22  ;;  %v1591_v50 = vrot.slane %v1589_v42, 2  ;;  %v362_v51 = vor.u32 %v360_v43, %v358_v37  ;;  %v1595_v52 = vshrl.u32 %v5738_v34, 16  ;;  %v5792_v22 = vld [vmem:[%s5693_s28 + $0x38] sm:$0xff]   ;;  %v5812_v43 = vld [vmem:[%s5693_s28 + $0x40] sm:$0xff]  }
  0x1b   : > { %4877 = vmatprep.mubr.msk.bf16.mxu1 %vm472_vm2, %v351_v40  ;;  %v1598_v53 = vshll.u32 %v5738_v34, 16  ;;  %v1584_v55 = vsel %vm1567_vm3, %v1575_v44, %v1583_v41  ;;  %v366_v56 = vrot.slane %v364_v47, 1  ;;  %v368_v57 = vshrl.u32 %v5735_v33, 16 }
  0x1c   : > { %4878 = vmatmul.mubr.msk.bf16.vlgmr.msra.gmra.mrb[0].mxu1 %vm472_vm2, %v359_v45  ;;  %v372_v58 = vshll.u32 %v5753_v48, 16  ;;  %5013 = vmatprep.mubr.msk.bf16.mxu0 %vm472_vm2, %v1584_v55  ;;  %v1592_v60 = vor.u32 %v1591_v50, %v1588_v46  ;;  %v1597_v61 = vrot.slane %v1595_v52, 1  ;;  %v1604_v63 = vshrl.u32 %v5756_v49, 16  ;;  %v5817_v50 = vld [vmem:[%s5693_s28 + $0x40] sm:$0xff]  }
  0x1d   : > { %4910 = vmatpush3.bf16.msra.mxu1 %v719_v6  ;;  %v1600_v62 = vrot.slane %v1598_v53, 2  ;;  %v367_v2 = vsel %vm339_vm1, %v362_v51, %v366_v56  ;;  %v370_v3 = vor.u32 %v368_v57, %v366_v56  ;;  %v1607_v5 = vshll.u32 %v5756_v49, 16 }
  0x1e   : > { %5525 = vmatprep.subr.msk.bf16.mxu1 %vm521_vm0, %v5744_v39  ;;  %v374_v4 = vrot.slane %v372_v58, 1  ;;  %v1593_v6 = vsel %vm1567_vm3, %v1583_v41, %v1592_v60  ;;  %4881 = vmatprep.mubr.msk.bf16.mxu1 %vm472_vm2, %v367_v2  ;;  %v1606_v11 = vrot.slane %v1604_v63, 1  ;;  %v376_v14 = vshrl.u32 %v5753_v48, 16 }
  0x1f   : > { %v1601_v7 = vor.u32 %v1600_v62, %v1597_v61  ;;  %5014 = vmatmul.mubr.msk.bf16.vlgmr.msra.gmra.mrb[0].mxu0 %vm472_vm2, %v1593_v6  ;;  %v1609_v16 = vrot.slane %v1607_v5, 2  ;;  %v380_v17 = vshll.u32 %v5762_v54, 16  ;;  %v1613_v21 = vshrl.u32 %v5768_v59, 16  ;;  %v5825_v61 = vld [vmem:[%s5693_s28 + $0x48] sm:$0xff]  }
  0x20   : > { %v375_v15 = vsel %vm339_vm1, %v370_v3, %v374_v4  ;;  %v378_v24 = vor.u32 %v376_v14, %v374_v4  ;;  %v1616_v25 = vshll.u32 %v5768_v59, 16  ;;  %v384_v26 = vshrl.u32 %v5762_v54, 16  ;;  %5046 = vmatpush3.bf16.msra.mxu0 %v5708_v12  ;;  %v5828_v62 = vld [vmem:[%s5693_s28 + $0x48] sm:$0xff]  }
  0x21   : > { %v1602_v23 = vsel %vm1567_vm3, %v1592_v60, %v1601_v7  ;;  %v1610_v27 = vor.u32 %v1609_v16, %v1606_v11  ;;  %v382_v29 = vrot.slane %v380_v17, 1  ;;  %v1615_v30 = vrot.slane %v1613_v21, 1  ;;  %5529 = vmatprep.subr.msk.bf16.mxu0 %vm521_vm0, %v5780_v1 }
  0x22   : > { %5017 = vmatprep.mubr.msk.bf16.mxu0 %vm472_vm2, %v1602_v23  ;;  %v388_v31 = vshll.u32 %v5773_v0, 16  ;;  %v1618_v35 = vrot.slane %v1616_v25, 2  ;;  %v1622_v36 = vshrl.u32 %v5792_v22, 16  ;;  %v1625_v12 = vshll.u32 %v5792_v22, 16  ;;  %v5845_v23 = vld [vmem:[%s5693_s28 + $0x50] sm:$0xff]  }
  0x23   : > { %v392_v37 = vshrl.u32 %v5773_v0, 16  ;;  %v1611_v38 = vsel %vm1567_vm3, %v1601_v7, %v1610_v27  ;;  %v383_v40 = vsel %vm339_vm1, %v378_v24, %v382_v29  ;;  %v386_v41 = vor.u32 %v384_v26, %v382_v29  ;;  %v5837_v7 = vld [vmem:[%s5693_s28 + $0x50] sm:$0xff]   ;;  %v5850_v26 = vld [vmem:[%s5693_s28 + $0x58] sm:$0xff]  }
  0x24   : > { %4882 = vmatmul.mubr.msk.bf16.gmra.mrb[4].mxu1 %vm472_vm2, %v375_v15  ;;  %v390_v42 = vrot.slane %v388_v31, 1  ;;  %v1619_v44 = vor.u32 %v1618_v35, %v1615_v30  ;;  %v1624_v45 = vrot.slane %v1622_v36, 1  ;;  %v1627_v46 = vrot.slane %v1625_v12, 2 }
  0x25   : > { %4885 = vmatprep.mubr.msk.bf16.mxu1 %vm472_vm2, %v383_v40  ;;  %v396_v47 = vshll.u32 %v5801_v32, 16  ;;  %v1631_v53 = vshrl.u32 %v5812_v43, 16  ;;  %v1634_v55 = vshll.u32 %v5812_v43, 16  ;;  %v400_v60 = vshrl.u32 %v5801_v32, 16 }
  0x26   : > { %v391_v51 = vsel %vm339_vm1, %v386_v41, %v390_v42  ;;  %v394_v52 = vor.u32 %v392_v37, %v390_v42  ;;  %v1620_v56 = vsel %vm1567_vm3, %v1610_v27, %v1619_v44  ;;  %v1628_v57 = vor.u32 %v1627_v46, %v1624_v45  ;;  %v5863_v45 = vld [vmem:[%s5693_s28 + $0x60] sm:$0xff]  }
  0x27   : > { %v398_v58 = vrot.slane %v396_v47, 1  ;;  %5018 = vmatmul.mubr.msk.bf16.gmra.mrb[4].mxu0 %vm472_vm2, %v1611_v38  ;;  %v1633_v63 = vrot.slane %v1631_v53, 1  ;;  %v1636_v2 = vrot.slane %v1634_v55, 2  ;;  %v404_v3 = vshll.u32 %v5817_v50, 16  ;;  %v5855_v38 = vld [vmem:[%s5693_s28 + $0x58] sm:$0xff]  }
  0x28   : > { %v408_v4 = vshrl.u32 %v5817_v50, 16  ;;  %5021 = vmatprep.mubr.msk.bf16.mxu0 %vm472_vm2, %v1620_v56  ;;  %v1640_v6 = vshrl.u32 %v5825_v61, 16  ;;  %v1643_v14 = vshll.u32 %v5825_v61, 16  ;;  %v412_v15 = vshll.u32 %v5828_v62, 16 }
  0x29   : > { %v399_v5 = vsel %vm339_vm1, %v394_v52, %v398_v58  ;;  %v1637_v11 = vor.u32 %v1636_v2, %v1633_v63  ;;  %v406_v16 = vrot.slane %v404_v3, 1  ;;  %v1649_v17 = vshrl.u32 %v5837_v7, 16  ;;  %v5877_v3 = vld [vmem:[%s5693_s28 + $0x68] sm:$0xff]  }
  0x2a   : > { %v1652_v21 = vshll.u32 %v5837_v7, 16  ;;  %v1629_v24 = vsel %vm1567_vm3, %v1619_v44, %v1628_v57  ;;  %v402_v25 = vor.u32 %v400_v60, %v398_v58  ;;  %v1642_v27 = vrot.slane %v1640_v6, 1  ;;  %v5873_v58 = vld [vmem:[%s5693_s28 + $0x60] sm:$0xff]  }
  0x2b   : > { %v1645_v29 = vrot.slane %v1643_v14, 2  ;;  %v410_v30 = vor.u32 %v408_v4, %v406_v16  ;;  %v414_v31 = vrot.slane %v412_v15, 1  ;;  %v1638_v35 = vsel %vm1567_vm3, %v1628_v57, %v1637_v11  ;;  %v5881_v14 = vld [vmem:[%s5693_s28 + $0x68] sm:$0xff]  }
  0x2c   : > { %4886 = vmatmul.mubr.msk.bf16.gmra.mrb[8].mxu1 %vm472_vm2, %v391_v51  ;;  %v1651_v36 = vrot.slane %v1649_v17, 1  ;;  %v1654_v12 = vrot.slane %v1652_v21, 2  ;;  %v420_v37 = vshll.u32 %v5845_v23, 16  ;;  %v407_v40 = vsel %vm339_vm1, %v402_v25, %v406_v16  ;;  %v5885_v21 = vld [vmem:[%s5693_s28 + $0x70] sm:$0xff]  }
  0x2d   : > { %4889 = vmatprep.mubr.msk.bf16.mxu1 %vm472_vm2, %v399_v5  ;;  %v416_v41 = vshrl.u32 %v5828_v62, 16  ;;  %v1658_v42 = vshrl.u32 %v5850_v26, 16  ;;  %v1661_v44 = vshll.u32 %v5850_v26, 16  ;;  %v1646_v46 = vor.u32 %v1645_v29, %v1642_v27 }
  0x2e   : > { %v415_v47 = vsel %vm339_vm1, %v410_v30, %v414_v31  ;;  %v424_v51 = vshrl.u32 %v5845_v23, 16  ;;  %v428_v52 = vshll.u32 %v5855_v38, 16  ;;  %v1655_v53 = vor.u32 %v1654_v12, %v1651_v36 }
  0x2f   : > { %5022 = vmatmul.mubr.msk.bf16.gmra.mrb[8].mxu0 %vm472_vm2, %v1629_v24  ;;  %v1667_v55 = vshrl.u32 %v5863_v45, 16  ;;  %v1670_v56 = vshll.u32 %v5863_v45, 16  ;;  %v422_v57 = vrot.slane %v420_v37, 1  ;;  %v418_v60 = vor.u32 %v416_v41, %v414_v31 }
  0x30   : > { %5025 = vmatprep.mubr.msk.bf16.mxu0 %vm472_vm2, %v1638_v35  ;;  %v1660_v63 = vrot.slane %v1658_v42, 1  ;;  %v1663_v2 = vrot.slane %v1661_v44, 2  ;;  %v1647_v4 = vsel %vm1567_vm3, %v1637_v11, %v1646_v46  ;;  %v430_v6 = vrot.slane %v428_v52, 1  ;;  %v5901_v44 = vld [vmem:[%s5693_s28 + $0x70] sm:$0xff]  }
  0x31   : > { %v426_v5 = vor.u32 %v424_v51, %v422_v57  ;;  %v1656_v15 = vsel %vm1567_vm3, %v1646_v46, %v1655_v53  ;;  %v1669_v16 = vrot.slane %v1667_v55, 1  ;;  %v1672_v17 = vrot.slane %v1670_v56, 2  ;;  %v5905_v51 = vld [vmem:[%s5693_s28 + $0x78] sm:$0xff]  }
  0x32   : > { %v432_v24 = vshrl.u32 %v5855_v38, 16  ;;  %v436_v25 = vshll.u32 %v5873_v58, 16  ;;  %v423_v27 = vsel %vm339_vm1, %v418_v60, %v422_v57  ;;  %v1676_v11 = vshrl.u32 %v5877_v3, 16  ;;  %v5909_v57 = vld [vmem:[%s5693_s28 + $0x78] sm:$0xff]   ;;  %v5912_v60 = vld [vmem:[%s5693_s28 + $0x80] sm:$0xff]  }
  0x33   : > { %v1679_v29 = vshll.u32 %v5877_v3, 16  ;;  %v1664_v30 = vor.u32 %v1663_v2, %v1660_v63  ;;  %v431_v31 = vsel %vm339_vm1, %v426_v5, %v430_v6  ;;  %v440_v35 = vshrl.u32 %v5873_v58, 16 }
  0x34   : > { %4890 = vmatmul.mubr.msk.bf16.gmra.mrb[12].mxu1 %vm472_vm2, %v407_v40  ;;  %v444_v36 = vshll.u32 %v5881_v14, 16  ;;  %v1673_v12 = vor.u32 %v1672_v17, %v1669_v16  ;;  %v1685_v37 = vshrl.u32 %v5885_v21, 16  ;;  %v1688_v40 = vshll.u32 %v5885_v21, 16 }
  0x35   : > { %4893 = vmatprep.mubr.msk.bf16.mxu1 %vm472_vm2, %v415_v47  ;;  %v434_v41 = vor.u32 %v432_v24, %v430_v6  ;;  %v438_v42 = vrot.slane %v436_v25, 1  ;;  %v1678_v46 = vrot.slane %v1676_v11, 1  ;;  %v1681_v47 = vrot.slane %v1679_v29, 2 }
  0x36   : > { %v1665_v52 = vsel %vm1567_vm3, %v1655_v53, %v1664_v30  ;;  %v446_v56 = vrot.slane %v444_v36, 1  ;;  %v1674_v63 = vsel %vm1567_vm3, %v1664_v30, %v1673_v12  ;;  %v1687_v2 = vrot.slane %v1685_v37, 1  ;;  %v5932_v36 = vld [vmem:[%s5693_s28 + $0x88] ss:$0 sps:$4 sm:$0x33]  }
  0x37   : > { %5026 = vmatmul.mubr.msk.bf16.gmra.mrb[12].mxu0 %vm472_vm2, %v1647_v4  ;;  %v442_v55 = vor.u32 %v440_v35, %v438_v42  ;;  %v1690_v4 = vrot.slane %v1688_v40, 2  ;;  %v439_v5 = vsel %vm339_vm1, %v434_v41, %v438_v42  ;;  %v452_v6 = vshll.u32 %v5901_v44, 16 }
  0x38   : > { %5029 = vmatprep.mubr.msk.bf16.mxu0 %vm472_vm2, %v1656_v15  ;;  %v1682_v15 = vor.u32 %v1681_v47, %v1678_v46  ;;  %v448_v53 = vshrl.u32 %v5881_v14, 16  ;;  %v1694_v16 = vshrl.u32 %v5905_v51, 16  ;;  %v1697_v17 = vshll.u32 %v5905_v51, 16 }
  0x39   : > { %v447_v24 = vsel %vm339_vm1, %v442_v55, %v446_v56  ;;  %v456_v25 = vshrl.u32 %v5901_v44, 16  ;;  %v1703_v11 = vshrl.u32 %v5912_v60, 16  ;;  %v1691_v29 = vor.u32 %v1690_v4, %v1687_v2 }
  0x3a   : > { %v1706_v30 = vshll.u32 %v5912_v60, 16  ;;  %v454_v35 = vrot.slane %v452_v6, 1  ;;  %v450_v37 = vor.u32 %v448_v53, %v446_v56  ;;  %v1696_v40 = vrot.slane %v1694_v16, 1  ;;  %v1964_v16 = vld [vmem:[%s5693_s28 + $0x8] sm:$0xc] }
  0x3b   : > { %v1683_v41 = vsel %vm1567_vm3, %v1673_v12, %v1682_v15  ;;  %v1699_v42 = vrot.slane %v1697_v17, 2  ;;  %v1705_v55 = vrot.slane %v1703_v11, 1  ;;  %v464_v4 = vshrl.u32 %v5909_v57, 16 }
  0x3c   : > { %4894 = vmatmul.mubr.msk.bf16.gmra.mrb[16].mxu1 %vm472_vm2, %v423_v27  ;;  %v460_v27 = vshll.u32 %v5909_v57, 16  ;;  %v458_v46 = vor.u32 %v456_v25, %v454_v35  ;;  %v455_v2 = vsel %vm339_vm1, %v450_v37, %v454_v35  ;;  %v1712_v6 = vshrl.u32 %v5932_v36, 16 }
  0x3d   : > { %4897 = vmatprep.mubr.msk.bf16.mxu1 %vm472_vm2, %v431_v31  ;;  %v5928_v31 = vld [vmem:[%s5693_s28 + $0x80] ss:$0 sps:$4 sm:$0x11]   ;;  %v1700_v56 = vor.u32 %v1699_v42, %v1696_v40  ;;  %v1715_v53 = vshll.u32 %v5932_v36, 16  ;;  %v4476_v35 = vcombine.low %v1964_v16, %v5711_v13  ;;  %v1972_v42 = vrot.slane %v5718_v18, 2 }
  0x3e   : > { %v462_v47 = vrot.slane %v460_v27, 1  ;;  %v1714_v27 = vrot.slane %v1712_v6, 1  ;;  %v5968_v18 = vld [vmem:[%s6712_s1 + $0xc] sm:$0xf] }
  0x3f   : > { %5030 = vmatmul.mubr.msk.bf16.gmra.mrb[16].mxu0 %vm472_vm2, %v1665_v52  ;;  %v1692_v52 = vsel %vm1567_vm3, %v1682_v15, %v1691_v29  ;;  %v1701_v25 = vsel %vm1567_vm3, %v1691_v29, %v1700_v56  ;;  %v1717_v11 = vrot.slane %v1715_v53, 2  ;;  %v1990_v53 = vrot.slane %v5850_v26, 2 }
  0x40   : > { %5033 = vmatprep.mubr.msk.bf16.mxu0 %vm472_vm2, %v1674_v63  ;;  %v1708_v63 = vrot.slane %v1706_v30, 2  ;;  %v463_v12 = vsel %vm339_vm1, %v458_v46, %v462_v47  ;;  %v466_v17 = vor.u32 %v464_v4, %v462_v47  ;;  %v971_v46 = vsel %vm521_vm0, %v5744_v39, 0 }
  0x41   : > { %v1718_v40 = vor.u32 %v1717_v11, %v1714_v27  ;;  %v1974_v47 = vrot.slane %v5732_v28, 2  ;;  %v2448_v39 = vsel %vm521_vm0, %v5780_v1, 0 }
  0x42   : > { %v1709_v15 = vor.u32 %v1708_v63, %v1705_v55  ;;  %v1978_v55 = vrot.slane %v5756_v49, 2  ;;  %v1980_v63 = vrot.slane %v5768_v59, 2  ;;  %v1982_v49 = vrot.slane %v5792_v22, 2 }
  0x43   : > { %v1984_v59 = vrot.slane %v5812_v43, 2  ;;  %v1988_v22 = vrot.slane %v5837_v7, 2 }
  0x44   : > { %4898 = vmatmul.mubr.msk.bf16.gmra.mrb[20].mxu1 %vm472_vm2, %v439_v5  ;;  %v468_v5 = vshll.u32 %v5928_v31, 16  ;;  %v1710_v30 = vsel %vm1567_vm3, %v1700_v56, %v1709_v15  ;;  %v1719_v29 = vsel %vm1567_vm3, %v1709_v15, %v1718_v40  ;;  %v1983_v4 = vsel %vm1970_vm4, %v1980_v63, %v1982_v49 }
  0x45   : > { %4901 = vmatprep.mubr.msk.bf16.mxu1 %vm472_vm2, %v447_v24  ;;  %v1986_v56 = vrot.slane %v5825_v61, 2  ;;  %v1992_v15 = vrot.slane %v5863_v45, 2  ;;  %v1991_v16 = vsel %vm1970_vm4, %v1988_v22, %v1990_v53  ;;  %v2000_v40 = vrot.slane %v5912_v60, 2 }
  0x46   : > { %v470_v24 = vrot.slane %v468_v5, 1  ;;  %v1985_v5 = vsel %vm1970_vm4, %v1982_v49, %v1984_v59  ;;  %v6078_v49 = vld [vmem:[%s5693_s28 + $0x28] sm:$0xff]  }
  0x47   : > { %5034 = vmatmul.mubr.msk.bf16.gmra.mrb[20].mxu0 %vm472_vm2, %v1683_v41  ;;  %v1971_v41 = vrot.slane %v4476_v35, 2  ;;  %v1989_v6 = vsel %vm1970_vm4, %v1986_v56, %v1988_v22  ;;  %v1998_v35 = vrot.slane %v5905_v51, 2  ;;  %v896_v22 = vrot.slane %v5753_v48, 1 }
  0x48   : > { %5037 = vmatprep.mubr.msk.bf16.mxu0 %vm472_vm2, %v1692_v52  ;;  %v471_v37 = vsel %vm339_vm1, %v466_v17, %v470_v24  ;;  %v1975_v52 = vsel %vm1970_vm4, %v1972_v42, %v1974_v47  ;;  %v1993_v17 = vsel %vm1970_vm4, %v1990_v53, %v1992_v15  ;;  %v1994_v24 = vrot.slane %v5877_v3, 2 }
  0x49   : > { %v1973_v13 = vsel %vm1970_vm4, %v1971_v41, %v1972_v42  ;;  %v2248_v41 = vld [vmem:[%s5693_s28 + $0x10] sm:$0xc]  ;;  %v6048_v42 = vld [vmem:[%s5693_s28 + $0x14] sm:$0xf] }
  0x4a   : > { %v1995_v27 = vsel %vm1970_vm4, %v1992_v15, %v1994_v24  ;;  %v6105_v15 = vld [vmem:[%s5693_s28 + $0x38] sm:$0xff]  }
  0x4c   : > { %4902 = vmatmul.mubr.msk.bf16.gmra.mrb[24].mxu1 %vm472_vm2, %v455_v2  ;;  %v1981_v2 = vsel %vm1970_vm4, %v1978_v55, %v1980_v63 }
  0x4d   : > { %4905 = vmatprep.mubr.msk.bf16.mxu1 %vm472_vm2, %v463_v12  ;;  %v1987_v12 = vsel %vm1970_vm4, %v1984_v59, %v1986_v56  ;;  %v6091_v56 = vld [vmem:[%s6712_s1 + $0x4] sm:$0xf] }
  0x4f   : > { %5038 = vmatmul.mubr.msk.bf16.gmra.mrb[24].mxu0 %vm472_vm2, %v1701_v25  ;;  %v1996_v25 = vrot.slane %v5885_v21, 2 }
  0x50   : > { %5041 = vmatprep.mubr.msk.bf16.mxu0 %vm472_vm2, %v1710_v30  ;;  %v882_v30 = vld [vmem:[%s5693_s28] sm:$0xe] }
  0x51   : > { %v1997_v11 = vsel %vm1970_vm4, %v1994_v24, %v1996_v25 }
  0x54   : > { %4906 = vmatmul.mubr.msk.bf16.gmra.mrb[28].mxu1 %vm472_vm2, %v471_v37  ;;  %v4406_v37 = vcombine.low %v882_v30, %v5698_v8  ;;  %v6056_v8 = vcombine.low %v2248_v41, %v6048_v42  ;;  %v902_v30 = vrot.slane %v5801_v32, 1 }
  0x55   : > { %4911 = vmatprep.mubr.msk.bf16.mxu1 %vm472_vm2, %v5701_v9  ;;  %v1976_v9 = vrot.slane %v5738_v34, 2  ;;  %v5984_v34 = vld [vmem:[%s6712_s1 + $0x1c] sm:$0xf] }
  0x57   : > { %5042 = vmatmul.mubr.msk.bf16.gmra.mrb[28].mxu0 %vm472_vm2, %v1719_v29  ;;  %v1977_v28 = vsel %vm1970_vm4, %v1974_v47, %v1976_v9  ;;  %v1979_v1 = vsel %vm1970_vm4, %v1976_v9, %v1978_v55  ;;  %v1999_v29 = vsel %vm1970_vm4, %v1996_v25, %v1998_v35  ;;  %v2001_v47 = vsel %vm1970_vm4, %v1998_v35, %v2000_v40  ;;  %v6059_v9 = vld [vmem:[%s5693_s28 + $0x18] sm:$0xff]  }
  0x58   : > { %5047 = vmatprep.mubr.msk.bf16.mxu0 %vm472_vm2, %v1973_v13  ;;  %v889_v13 = vrot.slane %v4406_v37, 1  ;;  %v892_v55 = vrot.slane %v5721_v19, 1  ;;  %v2375_v25 = vrot.slane %v6105_v15, 2  ;;  %v6132_v37 = vld [vmem:[%s5693_s28 + $0x48] sm:$0xff]  }
  0x5c   : > { %4912 = vmatmul.mubr.msk.bf16.vlgmr.msra.gmra.mrb[0].mxu1 %vm472_vm2, %v5704_v10 }
  0x5d   : > { %4944 = vmatpush3.bf16.msra.mxu1 %v971_v46  ;;  %4915 = vmatprep.mubr.msk.bf16.mxu1 %vm472_vm2, %v5721_v19  ;;  %v890_v46 = vrot.slane %v5704_v10, 1  ;;  %v2367_v10 = vrot.slane %v6059_v9, 2  ;;  %v1366_v19 = vsel %vm521_vm0, %v5968_v18, 0 }
  0x5e   : > { %5526 = vmatprep.subr.msk.bf16.mxu1 %vm521_vm0, %v5968_v18 }
  0x5f   : > { %5048 = vmatmul.mubr.msk.bf16.vlgmr.msra.gmra.mrb[0].mxu0 %vm472_vm2, %v1975_v52  ;;  %v2002_v52 = vrot.slane %v5932_v36, 2  ;;  %v893_v59 = vsel %vm888_vm5, %v890_v46, %v892_v55 }
  0x60   : > { %5051 = vmatprep.mubr.msk.bf16.mxu0 %vm472_vm2, %v1977_v28  ;;  %5080 = vmatpush3.bf16.msra.mxu0 %v2448_v39  ;;  %v891_v28 = vsel %vm888_vm5, %v889_v13, %v890_v46  ;;  %v2366_v39 = vrot.slane %v6056_v8, 2  ;;  %v6145_v46 = vld [vmem:[%s5693_s28 + $0x50] sm:$0xff]  }
  0x61   : > { %5530 = vmatprep.subr.msk.bf16.mxu0 %vm521_vm0, %v5984_v34  ;;  %v2003_v63 = vsel %vm1970_vm4, %v2000_v40, %v2002_v52 }
  0x62   : > { %v2368_v36 = vsel %vm1970_vm4, %v2366_v39, %v2367_v10 }
  0x64   : > { %4916 = vmatmul.mubr.msk.bf16.gmra.mrb[4].mxu1 %vm472_vm2, %v5735_v33 }
  0x65   : > { %4919 = vmatprep.mubr.msk.bf16.mxu1 %vm472_vm2, %v5753_v48  ;;  %v6112_v48 = vld [vmem:[%s6712_s1 + $0x20] sm:$0xf] }
  0x67   : > { %5052 = vmatmul.mubr.msk.bf16.gmra.mrb[4].mxu0 %vm472_vm2, %v1979_v1  ;;  %v6073_v1 = vld [vmem:[%s5693_s28 + $0x20] sm:$0xff]  }
  0x68   : > { %5055 = vmatprep.mubr.msk.bf16.mxu0 %vm472_vm2, %v1981_v2  ;;  %v894_v2 = vrot.slane %v5735_v33, 1  ;;  %v2371_v33 = vrot.slane %v6078_v49, 2 }
  0x6c   : > { %4920 = vmatmul.mubr.msk.bf16.gmra.mrb[8].mxu1 %vm472_vm2, %v5762_v54 }
  0x6d   : > { %4923 = vmatprep.mubr.msk.bf16.mxu1 %vm472_vm2, %v5773_v0 }
  0x6f   : > { %5056 = vmatmul.mubr.msk.bf16.gmra.mrb[8].mxu0 %vm472_vm2, %v1983_v4  ;;  %v2369_v4 = vrot.slane %v6073_v1, 2 }
  0x70   : > { %5059 = vmatprep.mubr.msk.bf16.mxu0 %vm472_vm2, %v1985_v5  ;;  %v895_v5 = vsel %vm888_vm5, %v892_v55, %v894_v2 }
  0x71   : > { %v2370_v18 = vsel %vm1970_vm4, %v2367_v10, %v2369_v4  ;;  %v2372_v53 = vsel %vm1970_vm4, %v2369_v4, %v2371_v33 }
  0x74   : > { %4924 = vmatmul.mubr.msk.bf16.gmra.mrb[12].mxu1 %vm472_vm2, %v5801_v32  ;;  %v904_v32 = vrot.slane %v5817_v50, 1 }
  0x75   : > { %4927 = vmatprep.mubr.msk.bf16.mxu1 %vm472_vm2, %v5817_v50  ;;  %v2381_v50 = vrot.slane %v6145_v46, 2 }
  0x76   : > { %v905_v39 = vsel %vm888_vm5, %v902_v30, %v904_v32 }
  0x77   : > { %5060 = vmatmul.mubr.msk.bf16.gmra.mrb[12].mxu0 %vm472_vm2, %v1987_v12  ;;  %v6098_v12 = vld [vmem:[%s5693_s28 + $0x30] sm:$0xff]  }
  0x78   : > { %5063 = vmatprep.mubr.msk.bf16.mxu0 %vm472_vm2, %v1989_v6  ;;  %v898_v6 = vrot.slane %v5762_v54, 1  ;;  %v897_v54 = vsel %vm888_vm5, %v894_v2, %v896_v22  ;;  %v6163_v2 = vld [vmem:[%s5693_s28 + $0x60] sm:$0xff]  }
  0x7a   : > { %v899_v24 = vsel %vm888_vm5, %v896_v22, %v898_v6 }
  0x7c   : > { %4928 = vmatmul.mubr.msk.bf16.gmra.mrb[16].mxu1 %vm472_vm2, %v5828_v62 }
  0x7d   : > { %4931 = vmatprep.mubr.msk.bf16.mxu1 %vm472_vm2, %v5845_v23 }
  0x7f   : > { %5064 = vmatmul.mubr.msk.bf16.gmra.mrb[16].mxu0 %vm472_vm2, %v1991_v16  ;;  %v2851_v16 = vsel %vm521_vm0, %v5984_v34, 0  ;;  %v900_v34 = vrot.slane %v5773_v0, 1 }
  0x80   : > { %5067 = vmatprep.mubr.msk.bf16.mxu0 %vm472_vm2, %v1993_v17  ;;  %v2373_v17 = vrot.slane %v6098_v12, 2 }
  0x81   : > { %v901_v40 = vsel %vm888_vm5, %v898_v6, %v900_v34  ;;  %v903_v41 = vsel %vm888_vm5, %v900_v34, %v902_v30  ;;  %v914_v6 = vrot.slane %v5881_v14, 1  ;;  %v6199_v34 = vld [vmem:[%s5693_s28 + $0x80] sm:$0xff]   ;;  %v6203_v30 = vld [vmem:[%s5693_s28 + $0x88] sm:$0xff]  }
  0x82   : > { %v2376_v35 = vsel %vm1970_vm4, %v2373_v17, %v2375_v25 }
  0x84   : > { %4932 = vmatmul.mubr.msk.bf16.gmra.mrb[20].mxu1 %vm472_vm2, %v5855_v38 }
  0x85   : > { %4935 = vmatprep.mubr.msk.bf16.mxu1 %vm472_vm2, %v5873_v58 }
  0x87   : > { %5068 = vmatmul.mubr.msk.bf16.gmra.mrb[20].mxu0 %vm472_vm2, %v1995_v27  ;;  %v2374_v27 = vsel %vm1970_vm4, %v2371_v33, %v2373_v17 }
  0x88   : > { %5071 = vmatprep.mubr.msk.bf16.mxu0 %vm472_vm2, %v1997_v11  ;;  %v6127_v11 = vld [vmem:[%s5693_s28 + $0x40] sm:$0xff]  }
  0x89   : > { %v2377_v0 = vrot.slane %v6127_v11, 2 }
  0x8b   : > { %v2378_v13 = vsel %vm1970_vm4, %v2375_v25, %v2377_v0 }
  0x8c   : > { %4936 = vmatmul.mubr.msk.bf16.gmra.mrb[24].mxu1 %vm472_vm2, %v5881_v14  ;;  %v916_v14 = vrot.slane %v5901_v44, 1 }
  0x8d   : > { %4939 = vmatprep.mubr.msk.bf16.mxu1 %vm472_vm2, %v5901_v44  ;;  %v2393_v44 = vrot.slane %v6199_v34, 2 }
  0x8f   : > { %5072 = vmatmul.mubr.msk.bf16.gmra.mrb[24].mxu0 %vm472_vm2, %v1999_v29  ;;  %v2379_v29 = vrot.slane %v6132_v37, 2 }
  0x90   : > { %5075 = vmatprep.mubr.msk.bf16.mxu0 %vm472_vm2, %v2001_v47  ;;  %v906_v47 = vrot.slane %v5828_v62, 1  ;;  %v908_v62 = vrot.slane %v5845_v23, 1  ;;  %v2385_v23 = vrot.slane %v6163_v2, 2 }
  0x91   : > { %v2380_v52 = vsel %vm1970_vm4, %v2377_v0, %v2379_v29 }
  0x92   : > { %v907_v10 = vsel %vm888_vm5, %v904_v32, %v906_v47  ;;  %v909_v4 = vsel %vm888_vm5, %v906_v47, %v908_v62  ;;  %v2659_v32 = vshrl.u32 %v6059_v9, 16  ;;  %v920_v47 = vrot.slane %v5928_v31, 1 }
  0x94   : > { %4940 = vmatmul.mubr.msk.bf16.gmra.mrb[28].mxu1 %vm472_vm2, %v5909_v57 }
  0x95   : > { %4945 = vmatprep.mubr.msk.bf16.mxu1 %vm472_vm2, %v891_v28  ;;  %v6150_v28 = vld [vmem:[%s5693_s28 + $0x58] sm:$0xff]  }
  0x96   : > { %v2383_v55 = vrot.slane %v6150_v28, 2 }
  0x97   : > { %5076 = vmatmul.mubr.msk.bf16.gmra.mrb[28].mxu0 %vm472_vm2, %v2003_v63  ;;  %v2382_v63 = vsel %vm1970_vm4, %v2379_v29, %v2381_v50  ;;  %v2654_v29 = vshll.u32 %v6056_v8, 16 }
  0x98   : > { %5081 = vmatprep.mubr.msk.bf16.mxu0 %vm472_vm2, %v2368_v36  ;;  %v910_v36 = vrot.slane %v5855_v38, 1  ;;  %v912_v38 = vrot.slane %v5873_v58, 1  ;;  %v2386_v22 = vsel %vm1970_vm4, %v2383_v55, %v2385_v23 }
  0x9a   : > { %v915_v17 = vsel %vm888_vm5, %v912_v38, %v914_v6 }
  0x9c   : > { %4946 = vmatmul.mubr.msk.bf16.vlgmr.msra.gmra.mrb[0].mxu1 %vm472_vm2, %v893_v59  ;;  %v2384_v59 = vsel %vm1970_vm4, %v2381_v50, %v2383_v55  ;;  %v5604_v50 = vld [vmem:[%s5693_s28 + $0x90] ss:$0 sps:$4 sm:$0x33]  }
  0x9d   : > { %4978 = vmatpush3.bf16.msra.mxu1 %v1366_v19  ;;  %4949 = vmatprep.mubr.msk.bf16.mxu1 %vm472_vm2, %v895_v5  ;;  %v6168_v19 = vld [vmem:[%s5693_s28 + $0x68] sm:$0xff]   ;;  %v911_v5 = vsel %vm888_vm5, %v908_v62, %v910_v36  ;;  %v5622_v55 = vld [vmem:[%s5693_s28 + $0x10] sm:$0xff]   ;;  %v2397_v31 = vrot.slane %v5604_v50, 2 }
  0x9e   : > { %5532 = vmatprep.subr.msk.bf16.mxu1 %vm521_vm0, %v6091_v56  ;;  %v2387_v33 = vrot.slane %v6168_v19, 2  ;;  %v1285_v62 = vrot.slane %v5622_v55, 1 }
  0x9f   : > { %5082 = vmatmul.mubr.msk.bf16.vlgmr.msra.gmra.mrb[0].mxu0 %vm472_vm2, %v2370_v18  ;;  %v6181_v18 = vld [vmem:[%s5693_s28 + $0x70] sm:$0xff]  }
  0xa0   : > { %5085 = vmatprep.mubr.msk.bf16.mxu0 %vm472_vm2, %v2372_v53  ;;  %5114 = vmatpush3.bf16.msra.mxu0 %v2851_v16  ;;  %v2388_v53 = vsel %vm1970_vm4, %v2385_v23, %v2387_v33  ;;  %v6186_v16 = vld [vmem:[%s5693_s28 + $0x78] sm:$0xff]   ;;  %v2389_v58 = vrot.slane %v6181_v18, 2 }
  0xa1   : > { %5531 = vmatprep.subr.msk.bf16.mxu0 %vm521_vm0, %v6112_v48 }
  0xa2   : > { %v2390_v25 = vsel %vm1970_vm4, %v2387_v33, %v2389_v58 }
  0xa4   : > { %4950 = vmatmul.mubr.msk.bf16.gmra.mrb[4].mxu1 %vm472_vm2, %v897_v54  ;;  %v913_v54 = vsel %vm888_vm5, %v910_v36, %v912_v38  ;;  %v2661_v36 = vrot.slane %v2659_v32, 2  ;;  %v2689_v32 = vshll.u32 %v6098_v12, 16 }
  0xa5   : > { %4953 = vmatprep.mubr.msk.bf16.mxu1 %vm472_vm2, %v899_v24  ;;  %v2391_v24 = vrot.slane %v6186_v16, 2 }
  0xa7   : > { %5086 = vmatmul.mubr.msk.bf16.gmra.mrb[4].mxu0 %vm472_vm2, %v2374_v27  ;;  %v918_v27 = vrot.slane %v5909_v57, 1  ;;  %v2651_v57 = vshrl.u32 %v6056_v8, 16 }
  0xa8   : > { %5089 = vmatprep.mubr.msk.bf16.mxu0 %vm472_vm2, %v2376_v35  ;;  %v2392_v35 = vsel %vm1970_vm4, %v2389_v58, %v2391_v24 }
  0xa9   : > { %v919_v0 = vsel %vm888_vm5, %v916_v14, %v918_v27  ;;  %v2653_v8 = vrot.slane %v2651_v57, 2 }
  0xac   : > { %4954 = vmatmul.mubr.msk.bf16.gmra.mrb[8].mxu1 %vm472_vm2, %v901_v40  ;;  %v917_v40 = vsel %vm888_vm5, %v914_v6, %v916_v14  ;;  %v2680_v6 = vshll.u32 %v6078_v49, 16  ;;  %v5624_v14 = vld [vmem:[%s5693_s28 + $0x20] sm:$0xff]  }
  0xad   : > { %4957 = vmatprep.mubr.msk.bf16.mxu1 %vm472_vm2, %v903_v41  ;;  %v2395_v41 = vrot.slane %v6203_v30, 2 }
  0xaf   : > { %5090 = vmatmul.mubr.msk.bf16.gmra.mrb[8].mxu0 %vm472_vm2, %v2378_v13  ;;  %v2662_v13 = vshll.u32 %v6059_v9, 16  ;;  %v2398_v58 = vsel %vm1970_vm4, %v2395_v41, %v2397_v31  ;;  %v3135_v31 = vsel %vm521_vm0, %v6112_v48, 0  ;;  %v5627_v48 = vld [vmem:[%s5693_s28 + $0x38] sm:$0xff]  }
  0xb0   : > { %5093 = vmatprep.mubr.msk.bf16.mxu0 %vm472_vm2, %v2380_v52  ;;  %v2394_v52 = vsel %vm1970_vm4, %v2391_v24, %v2393_v44 }
  0xb4   : > { %4958 = vmatmul.mubr.msk.bf16.gmra.mrb[12].mxu1 %vm472_vm2, %v905_v39  ;;  %v2396_v39 = vsel %vm1970_vm4, %v2393_v44, %v2395_v41 }
  0xb5   : > { %4961 = vmatprep.mubr.msk.bf16.mxu1 %vm472_vm2, %v907_v10  ;;  %v1284_v10 = vrot.slane %v5724_v20, 1  ;;  %v2671_v20 = vshll.u32 %v6073_v1, 16 }
  0xb7   : > { %5094 = vmatmul.mubr.msk.bf16.gmra.mrb[12].mxu0 %vm472_vm2, %v2382_v63  ;;  %v2656_v63 = vrot.slane %v2654_v29, 3  ;;  %v1286_v23 = vsel %vm888_vm5, %v1284_v10, %v1285_v62  ;;  %v2673_v24 = vrot.slane %v2671_v20, 3  ;;  %v2686_v29 = vshrl.u32 %v6098_v12, 16 }
  0xb8   : > { %5097 = vmatprep.mubr.msk.bf16.mxu0 %vm472_vm2, %v2384_v59  ;;  %v2664_v59 = vrot.slane %v2662_v13, 3 }
  0xb9   : > { %v2657_v33 = vor.u32 %v2656_v63, %v2653_v8  ;;  %v2688_v55 = vrot.slane %v2686_v29, 2  ;;  %v5626_v8 = vld [vmem:[%s5693_s28 + $0x30] sm:$0xff]  }
  0xba   : > { %v2665_v38 = vor.u32 %v2664_v59, %v2661_v36  ;;  %v1293_v63 = vrot.slane %v5626_v8, 1 }
  0xbc   : > { %4962 = vmatmul.mubr.msk.bf16.gmra.mrb[16].mxu1 %vm472_vm2, %v909_v4  ;;  %v921_v4 = vsel %vm888_vm5, %v918_v27, %v920_v47  ;;  %v2666_v27 = vsel %vm2649_vm6, %v2657_v33, %v2665_v38  ;;  %v2695_v47 = vshrl.u32 %v6105_v15, 16  ;;  %v2704_v33 = vshrl.u32 %v6127_v11, 16 }
  0xbd   : > { %4965 = vmatprep.mubr.msk.bf16.mxu1 %vm472_vm2, %v911_v5  ;;  %v2668_v5 = vshrl.u32 %v6073_v1, 16 }
  0xbe   : > { %v2697_v59 = vrot.slane %v2695_v47, 2 }
  0xbf   : > { %5098 = vmatmul.mubr.msk.bf16.gmra.mrb[16].mxu0 %vm472_vm2, %v2386_v22  ;;  %v2677_v22 = vshrl.u32 %v6078_v49, 16 }
  0xc0   : > { %5101 = vmatprep.mubr.msk.bf16.mxu0 %vm472_vm2, %v2388_v53  ;;  %v5623_v53 = vld [vmem:[%s5693_s28 + $0x18] sm:$0xff]  }
  0xc4   : > { %4966 = vmatmul.mubr.msk.bf16.gmra.mrb[20].mxu1 %vm472_vm2, %v913_v54  ;;  %v1287_v54 = vrot.slane %v5623_v53, 1  ;;  %v2716_v53 = vshll.u32 %v6132_v37, 16 }
  0xc5   : > { %4969 = vmatprep.mubr.msk.bf16.mxu1 %vm472_vm2, %v915_v17  ;;  %v2670_v17 = vrot.slane %v2668_v5, 2 }
  0xc6   : > { %v1288_v44 = vsel %vm888_vm5, %v1285_v62, %v1287_v54  ;;  %v2691_v62 = vrot.slane %v2689_v32, 3  ;;  %v2734_v32 = vshll.u32 %v6150_v28, 16 }
  0xc7   : > { %5102 = vmatmul.mubr.msk.bf16.gmra.mrb[20].mxu0 %vm472_vm2, %v2390_v25  ;;  %v1289_v25 = vrot.slane %v5624_v14, 1  ;;  %v2674_v57 = vor.u32 %v2673_v24, %v2670_v17  ;;  %v2706_v17 = vrot.slane %v2704_v33, 2  ;;  %v1297_v14 = vrot.slane %v5812_v43, 1 }
  0xc8   : > { %5105 = vmatprep.mubr.msk.bf16.mxu0 %vm472_vm2, %v2392_v35  ;;  %v2679_v35 = vrot.slane %v2677_v22, 2  ;;  %v2692_v5 = vor.u32 %v2691_v62, %v2688_v55  ;;  %v2731_v43 = vshrl.u32 %v6150_v28, 16  ;;  %v2736_v62 = vrot.slane %v2734_v32, 3 }
  0xc9   : > { %v1290_v41 = vsel %vm888_vm5, %v1287_v54, %v1289_v25  ;;  %v2675_v10 = vsel %vm2649_vm6, %v2665_v38, %v2674_v57  ;;  %v2707_v38 = vshll.u32 %v6127_v11, 16  ;;  %v1295_v54 = vrot.slane %v5627_v48, 1 }
  0xca   : > { %v2733_v55 = vrot.slane %v2731_v43, 2  ;;  %v6321_v43 = vld [vmem:[%s5693_s28 + $0x84] sm:$0xf] }
  0xcb   : > { %v2709_v24 = vrot.slane %v2707_v38, 3  ;;  %v1305_v38 = vrot.slane %v5863_v45, 1 }
  0xcc   : > { %4970 = vmatmul.mubr.msk.bf16.gmra.mrb[24].mxu1 %vm472_vm2, %v917_v40  ;;  %v2682_v40 = vrot.slane %v2680_v6, 3  ;;  %v2713_v6 = vshrl.u32 %v6132_v37, 16 }
  0xcd   : > { %4973 = vmatprep.mubr.msk.bf16.mxu1 %vm472_vm2, %v919_v0  ;;  %v3575_v0 = vsel %vm521_vm0, %v6091_v56, 0  ;;  %v5625_v56 = vld [vmem:[%s5693_s28 + $0x28] sm:$0xff]  }
  0xce   : > { %v2683_v13 = vor.u32 %v2682_v40, %v2679_v35  ;;  %v1291_v50 = vrot.slane %v5625_v56, 1  ;;  %v2718_v35 = vrot.slane %v2716_v53, 3  ;;  %v1296_v40 = vsel %vm888_vm5, %v1293_v63, %v1295_v54 }
  0xcf   : > { %5106 = vmatmul.mubr.msk.bf16.gmra.mrb[24].mxu0 %vm472_vm2, %v2394_v52  ;;  %v2698_v52 = vshll.u32 %v6105_v15, 16 }
  0xd0   : > { %5109 = vmatprep.mubr.msk.bf16.mxu0 %vm472_vm2, %v2396_v39  ;;  %v6251_v39 = vld [vmem:[%s6712_s1] sm:$0xf]  ;;  %v2684_v36 = vsel %vm2649_vm6, %v2674_v57, %v2683_v13  ;;  %v1294_v20 = vsel %vm888_vm5, %v1291_v50, %v1293_v63  ;;  %v2722_v57 = vshrl.u32 %v6145_v46, 16 }
  0xd4   : > { %4974 = vmatmul.mubr.msk.bf16.gmra.mrb[28].mxu1 %vm472_vm2, %v921_v4  ;;  %v2700_v4 = vrot.slane %v2698_v52, 3  ;;  %v2724_v52 = vrot.slane %v2722_v57, 2 }
  0xd5   : > { %4979 = vmatprep.mubr.msk.bf16.mxu1 %vm472_vm2, %v1286_v23  ;;  %v1292_v23 = vsel %vm888_vm5, %v1289_v25, %v1291_v50  ;;  %v1301_v50 = vrot.slane %v5837_v7, 1  ;;  %v2749_v7 = vshrl.u32 %v6168_v19, 16 }
  0xd6   : > { %v2701_v22 = vor.u32 %v2700_v4, %v2697_v59  ;;  %v2743_v59 = vshll.u32 %v6163_v2, 16  ;;  %v2737_v4 = vor.u32 %v2736_v62, %v2733_v55  ;;  %v1311_v55 = vrot.slane %v5905_v51, 1 }
  0xd7   : > { %5110 = vmatmul.mubr.msk.bf16.gmra.mrb[28].mxu0 %vm472_vm2, %v2398_v58  ;;  %v2693_v58 = vsel %vm2649_vm6, %v2683_v13, %v2692_v5  ;;  %v1299_v13 = vrot.slane %v5825_v61, 1  ;;  %v2740_v61 = vshrl.u32 %v6163_v2, 16 }
  0xd8   : > { %5115 = vmatprep.mubr.msk.bf16.mxu0 %vm472_vm2, %v2666_v27  ;;  %v2702_v25 = vsel %vm2649_vm6, %v2692_v5, %v2701_v22  ;;  %v2715_v27 = vrot.slane %v2713_v6, 2  ;;  %v2745_v33 = vrot.slane %v2743_v59, 3  ;;  %v2751_v6 = vrot.slane %v2749_v7, 2  ;;  %v6343_v59 = vld [vmem:[%s5693_s28 + $0x88] sm:$0xff]  }
  0xd9   : > { %v1300_v8 = vsel %vm888_vm5, %v1297_v14, %v1299_v13 }
  0xda   : > { %v2719_v29 = vor.u32 %v2718_v35, %v2715_v27 }
  0xdc   : > { %4980 = vmatmul.mubr.msk.bf16.vlgmr.msra.gmra.mrb[0].mxu1 %vm472_vm2, %v1288_v44  ;;  %v2710_v44 = vor.u32 %v2709_v24, %v2706_v17  ;;  %v2761_v17 = vshll.u32 %v6181_v18, 16  ;;  %v2767_v24 = vshrl.u32 %v6186_v16, 16 }
  0xdd   : > { %5182 = vmatpush3.bf16.msra.mxu1 %v3575_v0  ;;  %4983 = vmatprep.mubr.msk.bf16.mxu1 %vm472_vm2, %v1290_v41  ;;  %v1298_v0 = vsel %vm888_vm5, %v1295_v54, %v1297_v14  ;;  %v2725_v41 = vshll.u32 %v6145_v46, 16  ;;  %v2770_v14 = vshll.u32 %v6186_v16, 16 }
  0xde   : > { %5533 = vmatprep.subr.msk.bf16.mxu1 %vm521_vm0, %v6251_v39  ;;  %v2711_v47 = vsel %vm2649_vm6, %v2701_v22, %v2710_v44  ;;  %v2769_v57 = vrot.slane %v2767_v24, 2 }
  0xdf   : > { %5116 = vmatmul.mubr.msk.bf16.vlgmr.msra.gmra.mrb[0].mxu0 %vm472_vm2, %v2675_v10  ;;  %v2727_v56 = vrot.slane %v2725_v41, 3  ;;  %v2720_v10 = vsel %vm2649_vm6, %v2710_v44, %v2719_v29  ;;  %v1309_v44 = vrot.slane %v5885_v21, 1  ;;  %v2772_v41 = vrot.slane %v2770_v14, 3 }
  0xe0   : > { %5119 = vmatprep.mubr.msk.bf16.mxu0 %vm472_vm2, %v2684_v36  ;;  %5148 = vmatpush3.bf16.msra.mxu0 %v3135_v31  ;;  %v1302_v36 = vsel %vm888_vm5, %v1299_v13, %v1301_v50  ;;  %v2752_v31 = vshll.u32 %v6168_v19, 16  ;;  %v2779_v13 = vshll.u32 %v6199_v34, 16 }
  0xe1   : > { %v2728_v63 = vor.u32 %v2727_v56, %v2724_v52  ;;  %v2773_v56 = vor.u32 %v2772_v41, %v2769_v57  ;;  %v1312_v51 = vsel %vm888_vm5, %v1309_v44, %v1311_v55 }
  0xe2   : > { %v2754_v53 = vrot.slane %v2752_v31, 3 }
  0xe3   : > { %v2729_v5 = vsel %vm2649_vm6, %v2719_v29, %v2728_v63  ;;  %v2738_v22 = vsel %vm2649_vm6, %v2728_v63, %v2737_v4  ;;  %v3528_v29 = vld [vmem:[%s5693_s28 + $0x80] sm:$0xf]  ;;  %v6338_v63 = vld [vmem:[%s5693_s28 + $0x90] ss:$0 sps:$4 sm:$0x77]  }
  0xe4   : > { %4984 = vmatmul.mubr.msk.bf16.gmra.mrb[4].mxu1 %vm472_vm2, %v1292_v23  ;;  %v1303_v23 = vrot.slane %v5850_v26, 1  ;;  %v2758_v26 = vshrl.u32 %v6181_v18, 16  ;;  %v2755_v45 = vor.u32 %v2754_v53, %v2751_v6  ;;  %v6330_v52 = vcombine.low %v3528_v29, %v6321_v43 }
  0xe5   : > { %4987 = vmatprep.mubr.msk.bf16.mxu1 %vm472_vm2, %v1294_v20  ;;  %v2742_v20 = vrot.slane %v2740_v61, 2  ;;  %v1313_v61 = vrot.slane %v5912_v60, 1  ;;  %v2797_v60 = vshll.u32 %v6338_v63, 16  ;;  %v3556_v53 = vshll.u32 %v6343_v59, 16 }
  0xe6   : > { %v1304_v48 = vsel %vm888_vm5, %v1301_v50, %v1303_v23  ;;  %v2760_v35 = vrot.slane %v2758_v26, 2  ;;  %v2785_v50 = vshrl.u32 %v6203_v30, 16 }
  0xe7   : > { %5120 = vmatmul.mubr.msk.bf16.gmra.mrb[4].mxu0 %vm472_vm2, %v2693_v58  ;;  %v2746_v54 = vor.u32 %v2745_v33, %v2742_v20  ;;  %v1306_v58 = vsel %vm888_vm5, %v1303_v23, %v1305_v38  ;;  %v5605_v20 = vld [vmem:[%s5693_s28 + $0x88] ss:$0 sps:$4 sm:$0x11]   ;;  %v2794_v33 = vshrl.u32 %v6338_v63, 16  ;;  %v2799_v24 = vrot.slane %v2797_v60, 3 }
  0xe8   : > { %5123 = vmatprep.mubr.msk.bf16.mxu0 %vm472_vm2, %v2702_v25  ;;  %v1307_v25 = vrot.slane %v5877_v3, 1  ;;  %v2776_v3 = vshrl.u32 %v6199_v34, 16  ;;  %v2787_v31 = vrot.slane %v2785_v50, 2  ;;  %v1315_v26 = vrot.slane %v5605_v20, 1 }
  0xe9   : > { %v2747_v27 = vsel %vm2649_vm6, %v2737_v4, %v2746_v54  ;;  %v3551_v4 = vshll.u32 %v6330_v52, 16  ;;  %v3058_v50 = vrot.slane %v6078_v49, 3  ;;  %v3066_v20 = vrot.slane %v6132_v37, 3 }
  0xea   : > { %v1308_v32 = vsel %vm888_vm5, %v1305_v38, %v1307_v25  ;;  %v2778_v62 = vrot.slane %v2776_v3, 2  ;;  %v1314_v38 = vsel %vm888_vm5, %v1311_v55, %v1313_v61  ;;  %v3682_v55 = vld [vmem:[%s5693_s28 + $0x80] sm:$0xe]  ;;  %v3068_v37 = vrot.slane %v6145_v46, 3 }
  0xeb   : > { %v3553_v6 = vrot.slane %v3551_v4, 1  ;;  %v4573_v49 = vcombine.low %v3682_v55, %v6321_v43  ;;  %v5614_v46 = vld [vmem:[%s5693_s28 + $0x98] ss:$0 sps:$4 sm:$0x11]  }
  0xec   : > { %4988 = vmatmul.mubr.msk.bf16.gmra.mrb[8].mxu1 %vm472_vm2, %v1296_v40  ;;  %v2763_v40 = vrot.slane %v2761_v17, 3  ;;  %v6361_v17 = vld [vmem:[%s5693_s28 + $0x90] ss:$0 sps:$4 sm:$0x11]  }
  0xed   : > { %4991 = vmatprep.mubr.msk.bf16.mxu1 %vm472_vm2, %v1298_v0  ;;  %v2756_v0 = vsel %vm2649_vm6, %v2746_v54, %v2755_v45  ;;  %v3046_v54 = vld [vmem:[%s5693_s28 + $0x10] sm:$0x8] }
  0xee   : > { %v2764_v21 = vor.u32 %v2763_v40, %v2760_v35  ;;  %v4546_v35 = vcombine.low %v3046_v54, %v6048_v42  ;;  %v1316_v40 = vsel %vm888_vm5, %v1313_v61, %v1315_v26  ;;  %v4582_v54 = vld [vmem:[%s6712_s1 + $0x10] sm:$0xf] }
  0xef   : > { %5124 = vmatmul.mubr.msk.bf16.gmra.mrb[8].mxu0 %vm472_vm2, %v2711_v47  ;;  %v1310_v47 = vsel %vm888_vm5, %v1307_v25, %v1309_v44  ;;  %v3558_v25 = vrot.slane %v3556_v53, 1  ;;  %v3560_v44 = vshrl.u32 %v6343_v59, 16  ;;  %v3070_v53 = vrot.slane %v6150_v28, 3 }
  0xf0   : > { %5127 = vmatprep.mubr.msk.bf16.mxu0 %vm472_vm2, %v2720_v10  ;;  %v2788_v10 = vshll.u32 %v6203_v30, 16  ;;  %v2774_v7 = vsel %vm2649_vm6, %v2764_v21, %v2773_v56  ;;  %v3053_v29 = vrot.slane %v4546_v35, 3  ;;  %v3069_v28 = vsel %vm3052_vm7, %v3066_v20, %v3068_v37 }
  0xf1   : > { %v3562_v42 = vor.u32 %v3560_v44, %v3558_v25  ;;  %v5615_v44 = vld [vmem:[%s5693_s28 + $0x98] ss:$0 sps:$4 sm:$0x33]  }
  0xf2   : > { %v2790_v23 = vrot.slane %v2788_v10, 3  ;;  %v4572_v10 = vld [vmem:[%s6712_s1 + $0x8] sm:$0xf] }
  0xf3   : > { %v3699_v4 = vsel %vm521_vm0, %v4572_v10, 0 }
  0xf4   : > { %4992 = vmatmul.mubr.msk.bf16.gmra.mrb[12].mxu1 %vm472_vm2, %v1300_v8  ;;  %v2781_v8 = vrot.slane %v2779_v13, 3 }
  0xf5   : > { %4995 = vmatprep.mubr.msk.bf16.mxu1 %vm472_vm2, %v1302_v36  ;;  %v2765_v36 = vsel %vm2649_vm6, %v2755_v45, %v2764_v21  ;;  %v2796_v45 = vrot.slane %v2794_v33, 2 }
  0xf7   : > { %5128 = vmatmul.mubr.msk.bf16.gmra.mrb[12].mxu0 %vm472_vm2, %v2729_v5  ;;  %v2782_v5 = vor.u32 %v2781_v8, %v2778_v62  ;;  %v2800_v57 = vor.u32 %v2799_v24, %v2796_v45  ;;  %v3060_v62 = vrot.slane %v6098_v12, 3  ;;  %v3062_v8 = vrot.slane %v6105_v15, 3  ;;  %v4576_v12 = vld [vmem:[%s6712_s1 + $0xc] sm:$0xf] }
  0xf8   : > { %5131 = vmatprep.mubr.msk.bf16.mxu0 %vm472_vm2, %v2738_v22  ;;  %v3549_v22 = vshrl.u32 %v6330_v52, 16  ;;  %v3064_v15 = vrot.slane %v6127_v11, 3  ;;  %v3071_v24 = vsel %vm3052_vm7, %v3068_v37, %v3070_v53 }
  0xf9   : > { %v3061_v61 = vsel %vm3052_vm7, %v3058_v50, %v3060_v62 }
  0xfa   : > { %v3554_v14 = vor.u32 %v3553_v6, %v3549_v22  ;;  %v3065_v33 = vsel %vm3052_vm7, %v3062_v8, %v3064_v15  ;;  %v3067_v22 = vsel %vm3052_vm7, %v3064_v15, %v3066_v20  ;;  %v3785_v6 = vsel %vm521_vm0, %v4576_v12, 0  ;;  %v5618_v15 = vld [vmem:[%s5693_s28 + $0x98] sm:$0xff]  }
  0xfb   : > { %v4025_v20 = vrot.slane %v5618_v15, 2  ;;  %v4108_v37 = vshll.u32 %v5618_v15, 16 }
  0xfc   : > { %4996 = vmatmul.mubr.msk.bf16.gmra.mrb[16].mxu1 %vm472_vm2, %v1304_v48  ;;  %v2791_v48 = vor.u32 %v2790_v23, %v2787_v31  ;;  %v3559_v41 = vsel %vm339_vm1, %v3554_v14, %v3558_v25  ;;  %v3754_v31 = vld [vmem:[%s5693_s28 + $0x88] sm:$0xe]  ;;  %v6405_v23 = vld [vmem:[%s5693_s28 + $0x8c] sm:$0xf] }
  0xfd   : > { %4999 = vmatprep.mubr.msk.bf16.mxu1 %vm472_vm2, %v1306_v58  ;;  %v2783_v58 = vsel %vm2649_vm6, %v2773_v56, %v2782_v5  ;;  %v3631_v56 = vsel %vm521_vm0, %v6251_v39, 0 }
  0xfe   : > { %v2801_v13 = vsel %vm2649_vm6, %v2791_v48, %v2800_v57  ;;  %v3074_v57 = vrot.slane %v6168_v19, 3 }
  0xff   : > { %5132 = vmatmul.mubr.msk.bf16.gmra.mrb[16].mxu0 %vm472_vm2, %v2747_v27  ;;  %v2792_v27 = vsel %vm2649_vm6, %v2782_v5, %v2791_v48  ;;  %v6418_v5 = vld [vmem:[%s5693_s28 + $0x90] sm:$0xff]  }
 0x100   : > { %5135 = vmatprep.mubr.msk.bf16.mxu0 %vm472_vm2, %v2756_v0  ;;  %v3564_v0 = vshll.u32 %v6361_v17, 16  ;;  %v3857_v45 = vshll.u32 %v6418_v5, 16 }
 0x102   : > { %v3566_v3 = vrot.slane %v3564_v0, 1  ;;  %v3859_v35 = vrot.slane %v3857_v45, 2  ;;  %v3072_v0 = vrot.slane %v6163_v2, 3  ;;  %v4586_v2 = vld [vmem:[%s6712_s1 + $0x14] sm:$0xf] }
 0x103   : > { %v5620_v45 = vld [vmem:[%s5693_s28 + $0xa0] ss:$0 sps:$4 sm:$0x77]  }
 0x104   : > { %5000 = vmatmul.mubr.msk.bf16.gmra.mrb[20].mxu1 %vm472_vm2, %v1308_v32  ;;  %v3054_v32 = vrot.slane %v6059_v9, 3  ;;  %v3056_v9 = vrot.slane %v6073_v1, 3 }
 0x105   : > { %5003 = vmatprep.mubr.msk.bf16.mxu1 %vm472_vm2, %v1310_v47  ;;  %v3567_v47 = vsel %vm339_vm1, %v3562_v42, %v3566_v3  ;;  %v3863_v42 = vshrl.u32 %v5615_v44, 16  ;;  %v3866_v3 = vshll.u32 %v5615_v44, 16 }
 0x106   : > { %v3055_v21 = vsel %vm3052_vm7, %v3053_v29, %v3054_v32  ;;  %v3057_v1 = vsel %vm3052_vm7, %v3054_v32, %v3056_v9  ;;  %v3059_v39 = vsel %vm3052_vm7, %v3056_v9, %v3058_v50 }
 0x107   : > { %5136 = vmatmul.mubr.msk.bf16.gmra.mrb[20].mxu0 %vm472_vm2, %v2765_v36  ;;  %v3687_v36 = vrot.slane %v4573_v49, 1  ;;  %v3865_v19 = vrot.slane %v3863_v42, 1  ;;  %v3868_v50 = vrot.slane %v3866_v3, 2  ;;  %v4190_v42 = vrot.slane %v5618_v15, 3 }
 0x108   : > { %5139 = vmatprep.mubr.msk.bf16.mxu0 %vm472_vm2, %v2774_v7  ;;  %v3063_v7 = vsel %vm3052_vm7, %v3060_v62, %v3062_v8  ;;  %v3939_v8 = vrot.slane %v6418_v5, 2 }
 0x10c   : > { %5004 = vmatmul.mubr.msk.bf16.gmra.mrb[24].mxu1 %vm472_vm2, %v1312_v51  ;;  %v4577_v51 = vcombine.low %v3754_v31, %v6405_v23  ;;  %v4006_v31 = vld [vmem:[%s5693_s28 + $0x94] sm:$0xf] }
 0x10d   : > { %5007 = vmatprep.mubr.msk.bf16.mxu1 %vm472_vm2, %v1314_v38  ;;  %v3774_v38 = vrot.slane %v6418_v5, 1 }
 0x10e   : > { %v3773_v60 = vrot.slane %v4577_v51, 1  ;;  %v3849_v26 = vshll.u32 %v4577_v51, 16 }
 0x10f   : > { %5140 = vmatmul.mubr.msk.bf16.gmra.mrb[24].mxu0 %vm472_vm2, %v2783_v58  ;;  %v3846_v58 = vshrl.u32 %v4577_v51, 16  ;;  %v3941_v51 = vrot.slane %v5615_v44, 2  ;;  %v4184_v44 = vld [vmem:[%s5693_s28 + $0x90] sm:$0x8] }
 0x110   : > { %5143 = vmatprep.mubr.msk.bf16.mxu0 %vm472_vm2, %v2792_v27  ;;  %v3775_v48 = vsel %vm888_vm5, %v3773_v60, %v3774_v38  ;;  %v3851_v25 = vrot.slane %v3849_v26, 2  ;;  %v4110_v26 = vrot.slane %v4108_v37, 3  ;;  %v6585_v37 = vld [vmem:[%s6713_s2] ss:$0 sm:$0xff] }
 0x111   : > { %v3848_v14 = vrot.slane %v3846_v58, 1 }
 0x114   : > { %5008 = vmatmul.mubr.msk.bf16.gmra.mrb[28].mxu1 %vm472_vm2, %v1316_v40  ;;  %v3776_v40 = vrot.slane %v5614_v46, 1 }
 0x115   : > { %5183 = vmatprep.mubr.msk.bf16.mxu1 %vm472_vm2, %v3559_v41  ;;  %v3852_v41 = vor.u32 %v3851_v25, %v3848_v14  ;;  %v4114_v14 = vshrl.u32 %v5620_v45, 16  ;;  %v4117_v25 = vshll.u32 %v5620_v45, 16 }
 0x116   : > { %v3777_v32 = vsel %vm888_vm5, %v3774_v38, %v3776_v40  ;;  %v4600_v40 = vld [vmem:[%s6712_s1 + $0x20] sm:$0xf] }
 0x117   : > { %5144 = vmatmul.mubr.msk.bf16.gmra.mrb[28].mxu0 %vm472_vm2, %v2801_v13  ;;  %v3073_v13 = vsel %vm3052_vm7, %v3070_v53, %v3072_v0  ;;  %v5619_v53 = vld [vmem:[%s5693_s28 + $0xa0] ss:$0 sps:$4 sm:$0x33]  }
 0x118   : > { %5149 = vmatprep.mubr.msk.bf16.mxu0 %vm472_vm2, %v3055_v21  ;;  %v3878_v21 = vsel %vm521_vm0, %v4582_v54, 0 }
 0x11c   : > { %5184 = vmatmul.mubr.msk.bf16.vlgmr.msra.gmra.mrb[32].mxu1 %vm472_vm2, %v3567_v47  ;;  %v3075_v47 = vsel %vm3052_vm7, %v3072_v0, %v3074_v57  ;;  %v4116_v0 = vrot.slane %v4114_v14, 2 }
 0x11d   : > { %5188 = vmatpush3.bf16.msra.mxu1 %v3631_v56  ;;  %5189 = vmatprep.mubr.msk.bf16.mxu1 %vm472_vm2, %v6330_v52  ;;  %v3688_v52 = vrot.slane %v6343_v59, 1  ;;  %v3933_v56 = vld [vmem:[%s5693_s28 + $0x88] sm:$0xc] }
 0x11e   : > { %5534 = vmatprep.subr.msk.bf16.mxu1 %vm521_vm0, %v4572_v10  ;;  %v3076_v10 = vrot.slane %v6181_v18, 3  ;;  %v4587_v55 = vcombine.low %v3933_v56, %v6405_v23 }
 0x11f   : > { %5150 = vmatmul.mubr.msk.bf16.vlgmr.msra.gmra.mrb[0].mxu0 %vm472_vm2, %v3057_v1  ;;  %v3689_v43 = vsel %vm888_vm5, %v3687_v36, %v3688_v52  ;;  %v3078_v1 = vrot.slane %v6186_v16, 3  ;;  %v3080_v16 = vrot.slane %v6199_v34, 3 }
 0x120   : > { %5153 = vmatprep.mubr.msk.bf16.mxu0 %vm472_vm2, %v3059_v39  ;;  %v3869_v39 = vor.u32 %v3868_v50, %v3865_v19  ;;  %v3077_v49 = vsel %vm3052_vm7, %v3074_v57, %v3076_v10  ;;  %v3938_v62 = vrot.slane %v4587_v55, 2  ;;  %v4119_v57 = vrot.slane %v4117_v25, 3 }
 0x121   : > { %v3079_v36 = vsel %vm3052_vm7, %v3076_v10, %v3078_v1  ;;  %v3081_v23 = vsel %vm3052_vm7, %v3078_v1, %v3080_v16 }
 0x127   : > { %5154 = vmatmul.mubr.msk.bf16.gmra.mrb[4].mxu0 %vm472_vm2, %v3061_v61  ;;  %v3940_v61 = vsel %vm1970_vm4, %v3938_v62, %v3939_v8 }
 0x128   : > { %5190 = vmatmul.mubr.msk.bf16.vlgmr.msra.gmra.mrb[32].mxu1 %vm472_vm2, %v6343_v59  ;;  %5157 = vmatprep.mubr.msk.bf16.mxu0 %vm472_vm2, %v3063_v7  ;;  %v3690_v59 = vrot.slane %v6361_v17, 1  ;;  %v3854_v17 = vshrl.u32 %v6418_v5, 16  ;;  %v4590_v7 = vld [vmem:[%s6712_s1 + $0x18] sm:$0xf] }
 0x129   : > { %5194 = vmatpush3.bf16.msra.mxu1 %v3699_v4  ;;  %5195 = vmatprep.mubr.msk.bf16.mxu1 %vm472_vm2, %v3689_v43  ;;  %v3082_v4 = vrot.slane %v6203_v30, 3  ;;  %v4005_v43 = vld [vmem:[%s5693_s28 + $0x90] sm:$0xc]  ;;  %v3084_v30 = vrot.slane %v6338_v63, 3  ;;  %v4036_v60 = vsel %vm521_vm0, %v4590_v7, 0  ;;  %s5542_s28 = smul.u32 144, %s6717_s16  ;;  %s6594_s16 = scalar_lea.vmem %s6715_s4, %s5543_s13 }
 0x12a   : > { %5535 = vmatprep.subr.msk.bf16.mxu1 %vm521_vm0, %v4576_v12  ;;  %v3691_v11 = vsel %vm888_vm5, %v3688_v52, %v3690_v59  ;;  %v3856_v27 = vrot.slane %v3854_v17, 1  ;;  %v3950_v52 = vsel %vm521_vm0, %v4586_v2, 0  ;;  %v4591_v12 = vcombine.low %v4005_v43, %v4006_v31  ;;  %v4596_v63 = vld [vmem:[%s6712_s1 + $0x1c] sm:$0xf] }
 0x12b   : > { %v3083_v34 = vsel %vm3052_vm7, %v3080_v16, %v3082_v4  ;;  %v3085_v59 = vsel %vm3052_vm7, %v3082_v4, %v3084_v30  ;;  %v4027_v17 = vrot.slane %v5619_v53, 2  ;;  %s6578_s10 = scalar_lea.vmem %s6714_s3, %s5542_s28 }
 0x12c   : > { %v3860_v29 = vor.u32 %v3859_v35, %v3856_v27  ;;  %v4024_v5 = vrot.slane %v4591_v12, 2  ;;  %v4097_v38 = vshrl.u32 %v4591_v12, 16  ;;  %v4129_v27 = vsel %vm521_vm0, %v4596_v63, 0 }
 0x12e   : > { %v3861_v9 = vsel %vm1567_vm3, %v3852_v41, %v3860_v29  ;;  %v3870_v18 = vsel %vm1567_vm3, %v3860_v29, %v3869_v39  ;;  %v4601_v41 = vcombine.low %v4184_v44, %v4006_v31  ;;  %v4120_v29 = vor.u32 %v4119_v57, %v4116_v0  ;;  %v4680_v0 = vld [vmem:[%s6578_s10 + $0x18] sm:$0xff]  }
 0x12f   : > { %5158 = vmatmul.mubr.msk.bf16.gmra.mrb[8].mxu0 %vm472_vm2, %v3065_v33  ;;  %v3942_v33 = vsel %vm1970_vm4, %v3939_v8, %v3941_v51 }
 0x130   : > { %5161 = vmatprep.mubr.msk.bf16.mxu0 %vm472_vm2, %v3067_v22  ;;  %v4100_v22 = vshll.u32 %v4591_v12, 16 }
 0x134   : > { %5196 = vmatmul.mubr.msk.bf16.vlgmr.msra.gmra.mrb[32].mxu1 %vm472_vm2, %v3691_v11  ;;  %v4105_v11 = vshrl.u32 %v5618_v15, 16 }
 0x135   : > { %5200 = vmatpush3.bf16.msra.mxu1 %v3785_v6  ;;  %5201 = vmatprep.mubr.msk.bf16.mxu1 %vm472_vm2, %v3775_v48  ;;  %v4026_v6 = vsel %vm1970_vm4, %v4024_v5, %v4025_v20  ;;  %v4099_v48 = vrot.slane %v4097_v38, 2 }
 0x136   : > { %5536 = vmatprep.subr.msk.bf16.mxu1 %vm521_vm0, %v4582_v54  ;;  %v4102_v54 = vrot.slane %v4100_v22, 3  ;;  %v4107_v58 = vrot.slane %v4105_v11, 2  ;;  %v4678_v22 = vld [vmem:[%s6578_s10 + $0x8] sm:$0xff]   ;;  %v4607_v11 = vld [vmem:[%s6578_s10] sm:$0xff]  }
 0x137   : > { %5162 = vmatmul.mubr.msk.bf16.gmra.mrb[12].mxu0 %vm472_vm2, %v3069_v28  ;;  %v4612_v53 = vunpack.c.l.bf16 %v4678_v22  ;;  %v4609_v25 = vunpack.c.h.bf16 %v4607_v11 }
 0x138   : > { %5165 = vmatprep.mubr.msk.bf16.mxu0 %vm472_vm2, %v3071_v24  ;;  %v4103_v46 = vor.u32 %v4102_v54, %v4099_v48  ;;  %v4111_v28 = vor.u32 %v4110_v26, %v4107_v58  ;;  %v4028_v24 = vsel %vm1970_vm4, %v4025_v20, %v4027_v17  ;;  %v4608_v58 = vunpack.c.l.bf16 %v4607_v11 }
 0x13a   : > { %v4112_v35 = vsel %vm2649_vm6, %v4103_v46, %v4111_v28  ;;  %v4121_v3 = vsel %vm2649_vm6, %v4111_v28, %v4120_v29  ;;  %v4613_v46 = vunpack.c.h.bf16 %v4678_v22  ;;  %v4679_v29 = vld [vmem:[%s6578_s10 + $0x10] sm:$0xff]  }
 0x13f   : > { %5166 = vmatmul.mubr.msk.bf16.gmra.mrb[16].mxu0 %vm472_vm2, %v3073_v13  ;;  %v4201_v13 = vsel %vm521_vm0, %v4600_v40, 0 }
 0x140   : > { %5202 = vmatmul.mubr.msk.bf16.vlgmr.msra.gmra.mrb[32].mxu1 %vm472_vm2, %v3777_v32  ;;  %5169 = vmatprep.mubr.msk.bf16.mxu0 %vm472_vm2, %v3075_v47  ;;  %v4189_v32 = vrot.slane %v4601_v41, 3  ;;  %v4192_v47 = vrot.slane %v5620_v45, 3 }
 0x141   : > { %5206 = vmatpush3.bf16.msra.mxu1 %v3878_v21  ;;  %5207 = vmatprep.mubr.msk.bf16.mxu1 %vm472_vm2, %v3861_v9 }
 0x142   : > { %5537 = vmatprep.subr.msk.bf16.mxu1 %vm521_vm0, %v4586_v2  ;;  %v4191_v21 = vsel %vm3052_vm7, %v4189_v32, %v4190_v42  ;;  %v4193_v9 = vsel %vm3052_vm7, %v4190_v42, %v4192_v47  ;;  %v4620_v47 = vunpack.c.l.bf16 %v4680_v0 }
 0x147   : > { %5170 = vmatmul.mubr.msk.bf16.gmra.mrb[20].mxu0 %vm472_vm2, %v3077_v49 }
 0x148   : > { %5173 = vmatprep.mubr.msk.bf16.mxu0 %vm472_vm2, %v3079_v36 }
 0x14c   : > { %5208 = vmatmul.mubr.msk.bf16.vlgmr.msra.gmra.mrb[32].mxu1 %vm472_vm2, %v3870_v18 }
 0x14d   : > { %5212 = vmatpush3.bf16.msra.mxu1 %v3950_v52  ;;  %5213 = vmatprep.mubr.msk.bf16.mxu1 %vm472_vm2, %v3940_v61 }
 0x14e   : > { %5538 = vmatprep.subr.msk.bf16.mxu1 %vm521_vm0, %v4590_v7 }
 0x14f   : > { %5174 = vmatmul.mubr.msk.bf16.gmra.mrb[24].mxu0 %vm472_vm2, %v3081_v23 }
 0x150   : > { %5177 = vmatprep.mubr.msk.bf16.mxu0 %vm472_vm2, %v3083_v34 }
 0x157   : > { %5178 = vmatmul.mubr.msk.bf16.gmra.mrb[28].mxu0 %vm472_vm2, %v3085_v59 }
 0x158   : > { %5214 = vmatmul.mubr.msk.bf16.vlgmr.msra.gmra.mrb[32].mxu1 %vm472_vm2, %v3942_v33 }
 0x159   : > { %5218 = vmatpush3.bf16.msra.mxu1 %v4036_v60  ;;  %5219 = vmatprep.mubr.msk.bf16.mxu1 %vm472_vm2, %v4026_v6 }
 0x15a   : > { %5539 = vmatprep.subr.msk.bf16.mxu1 %vm521_vm0, %v4596_v63 }
 0x164   : > { %5220 = vmatmul.mubr.msk.bf16.vlgmr.msra.gmra.mrb[32].mxu1 %vm472_vm2, %v4028_v24 }
 0x165   : > { %5224 = vmatpush3.bf16.msra.mxu1 %v4129_v27  ;;  %5225 = vmatprep.mubr.msk.bf16.mxu1 %vm472_vm2, %v4112_v35 }
 0x166   : > { %5540 = vmatprep.subr.msk.bf16.mxu1 %vm521_vm0, %v4600_v40 }
 0x170   : > { %5226 = vmatmul.mubr.msk.bf16.vlgmr.msra.gmra.mrb[32].mxu1 %vm472_vm2, %v4121_v3 }
 0x171   : > { %5230 = vmatpush3.bf16.msra.mxu1 %v4201_v13  ;;  %5231 = vmatprep.mubr.msk.bf16.mxu1 %vm472_vm2, %v4191_v21 }
 0x17c   : > { %5232 = vmatmul.mubr.msk.bf16.vlgmr.msra.gmra.mrb[32].mxu1 %vm472_vm2, %v4193_v9 }
 0x1af   : > { %v4981_v56 = vpop.f32.mrb[0].mxu1 }
 0x1b0   : > { %v1402_v2 = vpop.f32.mrb[1].mxu1 }
 0x1b1   : > { %v4982_v19 = vpop.f32.mrb[2].mxu1 }
 0x1b2   : > { %v1405_v50 = vpop.f32.mrb[3].mxu1 }
 0x1b7   : > { %v4985_v10 = vpop.f32.mrb[4].mxu1 }
 0x1b8   : > { %v6520_v55 = vpop.f32.mrb[5].mxu1 }
 0x1b9   : > { %v6522_v1 = vpop.f32.mrb[6].mxu1 }
 0x1ba   : > { %v6524_v39 = vpop.f32.mrb[7].mxu1 }
 0x1bf   : > { %v6526_v49 = vpop.f32.mrb[8].mxu1 }
 0x1c0   : > { %v6528_v62 = vpop.f32.mrb[9].mxu1 }
 0x1c1   : > { %v6530_v8 = vpop.f32.mrb[10].mxu1 }
 0x1c2   : > { %v6532_v36 = vpop.f32.mrb[11].mxu1 }
 0x1c7   : > { %v6534_v18 = vpop.f32.mrb[12].mxu1 }
 0x1c8   : > { %v6536_v16 = vpop.f32.mrb[13].mxu1 }
 0x1c9   : > { %v6538_v52 = vpop.f32.mrb[14].mxu1 }
 0x1ca   : > { %v6540_v61 = vpop.f32.mrb[15].mxu1 }
 0x1cf   : > { %v6542_v4 = vpop.f32.mrb[16].mxu1 }
 0x1d0   : > { %v6544_v7 = vpop.f32.mrb[17].mxu1 }
 0x1d1   : > { %v6546_v43 = vpop.f32.mrb[18].mxu1 }
 0x1d2   : > { %v6548_v31 = vpop.f32.mrb[19].mxu1 }
 0x1d7   : > { %v6550_v23 = vpop.f32.mrb[20].mxu1 }
 0x1d8   : > { %v6552_v34 = vpop.f32.mrb[21].mxu1 }
 0x1d9   : > { %v6554_v12 = vpop.f32.mrb[22].mxu1 }
 0x1da   : > { %v6556_v15 = vpop.f32.mrb[23].mxu1 }
 0x1df   : > { %v6558_v30 = vpop.f32.mrb[24].mxu1 }
 0x1e0   : > { %v6560_v51 = vpop.f32.mrb[25].mxu1 }
 0x1e1   : > { %v6562_v5 = vpop.f32.mrb[26].mxu1 }
 0x1e2   : > { %v6564_v20 = vpop.f32.mrb[27].mxu1 }
 0x1e7   : > { %v6566_v59 = vpop.f32.mrb[28].mxu1 }
 0x1e8   : > { %v6568_v33 = vpop.f32.mrb[29].mxu1 }
 0x1e9   : > { %v6570_v60 = vpop.f32.mrb[30].mxu1 }
 0x1ea   : > { %v6572_v38 = vpop.f32.mrb[31].mxu1 }
 0x1f2   : > { %v5151_v6 = vpop.f32.mrb[0].mxu0 }
 0x1f3   : > { %v5235_v63 = vadd.f32 %v5151_v6, %v4981_v56  ;;  %v3171_v48 = vpop.f32.mrb[1].mxu0  ;;  %v4621_v6 = vunpack.c.h.bf16 %v4680_v0 }
 0x1f4   : > { %v5236_v54 = vadd.f32 %v3171_v48, %v1402_v2  ;;  %v5152_v26 = vpop.f32.mrb[2].mxu0  ;;  %v4617_v48 = vunpack.c.h.bf16 %v4679_v29 }
 0x1f5   : > { %v3338_v17 = vadd.f32 %v5235_v63, %v6585_v37  ;;  %v5237_v45 = vadd.f32 %v5152_v26, %v4982_v19  ;;  %v3174_v28 = vpop.f32.mrb[3].mxu0  ;;  %v4616_v19 = vunpack.c.l.bf16 %v4679_v29 }
 0x1f6   : > { %v3336_v24 = vadd.f32 %v5236_v54, %v6585_v37  ;;  %v5238_v14 = vadd.f32 %v3174_v28, %v1405_v50 }
 0x1f7   : > { %v3434_v27 = vadd.f32 %v4612_v53, %v3338_v17  ;;  %v3339_v35 = vadd.f32 %v5237_v45, %v6585_v37  ;;  %v4682_v17 = vld [vmem:[%s6578_s10 + $0x28] sm:$0xff]  }
 0x1f8   : > { %v3432_v40 = vadd.f32 %v4608_v58, %v3336_v24  ;;  %v3337_v44 = vadd.f32 %v5238_v14, %v6585_v37 }
 0x1f9   : > { %v3466_v57 = vmax.f32 %v3434_v27, 0.0  ;;  %v3435_v41 = vadd.f32 %v4613_v46, %v3339_v35  ;;  %v4681_v46 = vld [vmem:[%s6578_s10 + $0x20] sm:$0xff]   ;;  %v4628_v27 = vunpack.c.l.bf16 %v4682_v17 }
 0x1fa   : > { %v3464_v32 = vmax.f32 %v3432_v40, 0.0  ;;  %v3433_v42 = vadd.f32 %v4609_v25, %v3337_v44  ;;  %v5155_v3 = vpop.f32.mrb[4].mxu0  ;;  %v4624_v0 = vunpack.c.l.bf16 %v4681_v46 }
 0x1fb   : > { %3498 = vst [vmem:[%s6594_s16 + $0x10] sm:$0xff] %v3466_v57  ;;  %v3467_v13 = vmax.f32 %v3435_v41, 0.0  ;;  %v5239_v21 = vadd.f32 %v5155_v3, %v4985_v10  ;;  %v3187_v9 = vpop.f32.mrb[5].mxu0 }
 0x1fc   : > { %3496 = vst [vmem:[%s6594_s16] sm:$0xff] %v3464_v32  ;;  %v3465_v56 = vmax.f32 %v3433_v42, 0.0  ;;  %v5240_v2 = vadd.f32 %v3187_v9, %v6520_v55  ;;  %v5156_v50 = vpop.f32.mrb[6].mxu0  ;;  %v4629_v32 = vunpack.c.h.bf16 %v4682_v17 }
 0x1fd   : > { %3499 = vst [vmem:[%s6594_s16 + $0x18] sm:$0xff] %v3467_v13  ;;  %v3342_v22 = vadd.f32 %v5239_v21, %v6585_v37  ;;  %v5241_v11 = vadd.f32 %v5156_v50, %v6522_v1  ;;  %v3190_v63 = vpop.f32.mrb[7].mxu0  ;;  %v4625_v13 = vunpack.c.h.bf16 %v4681_v46 }
 0x1fe   : > { %3497 = vst [vmem:[%s6594_s16 + $0x8] sm:$0xff] %v3465_v56  ;;  %v3340_v10 = vadd.f32 %v5240_v2, %v6585_v37  ;;  %v5242_v53 = vadd.f32 %v3190_v63, %v6524_v39  ;;  %v4684_v56 = vld [vmem:[%s6578_s10 + $0x38] sm:$0xff]  }
 0x1ff   : > { %v3438_v54 = vadd.f32 %v4620_v47, %v3342_v22  ;;  %v3343_v55 = vadd.f32 %v5241_v11, %v6585_v37  ;;  %v4636_v63 = vunpack.c.l.bf16 %v4684_v56  ;;  %v4637_v17 = vunpack.c.h.bf16 %v4684_v56 }
 0x200   : > { %v3436_v58 = vadd.f32 %v4616_v19, %v3340_v10  ;;  %v3341_v26 = vadd.f32 %v5242_v53, %v6585_v37  ;;  %v4683_v19 = vld [vmem:[%s6578_s10 + $0x30] sm:$0xff]  }
 0x201   : > { %v3470_v45 = vmax.f32 %v3438_v54, 0.0  ;;  %v3439_v1 = vadd.f32 %v4621_v6, %v3343_v55  ;;  %v4632_v54 = vunpack.c.l.bf16 %v4683_v19  ;;  %v4633_v46 = vunpack.c.h.bf16 %v4683_v19  ;;  %v4688_v19 = vld [vmem:[%s6578_s10 + $0x58] sm:$0xff]  }
 0x202   : > { %v3468_v28 = vmax.f32 %v3436_v58, 0.0  ;;  %v3437_v24 = vadd.f32 %v4617_v48, %v3341_v26  ;;  %v5159_v14 = vpop.f32.mrb[8].mxu0 }
 0x203   : > { %3502 = vst [vmem:[%s6594_s16 + $0x30] sm:$0xff] %v3470_v45  ;;  %v3471_v25 = vmax.f32 %v3439_v1, 0.0  ;;  %v5243_v39 = vadd.f32 %v5159_v14, %v6526_v49  ;;  %v3203_v35 = vpop.f32.mrb[9].mxu0 }
 0x204   : > { %3500 = vst [vmem:[%s6594_s16 + $0x20] sm:$0xff] %v3468_v28  ;;  %v3469_v40 = vmax.f32 %v3437_v24, 0.0  ;;  %v5244_v44 = vadd.f32 %v3203_v35, %v6528_v62  ;;  %v5160_v57 = vpop.f32.mrb[10].mxu0 }
 0x205   : > { %3503 = vst [vmem:[%s6594_s16 + $0x38] sm:$0xff] %v3471_v25  ;;  %v3346_v41 = vadd.f32 %v5243_v39, %v6585_v37  ;;  %v5245_v29 = vadd.f32 %v5160_v57, %v6530_v8  ;;  %v3206_v42 = vpop.f32.mrb[11].mxu0  ;;  %v4686_v25 = vld [vmem:[%s6578_s10 + $0x48] sm:$0xff]  }
 0x206   : > { %3501 = vst [vmem:[%s6594_s16 + $0x28] sm:$0xff] %v3469_v40  ;;  %v3344_v49 = vadd.f32 %v5244_v44, %v6585_v37  ;;  %v5246_v3 = vadd.f32 %v3206_v42, %v6532_v36  ;;  %v4644_v57 = vunpack.c.l.bf16 %v4686_v25 }
 0x207   : > { %v3442_v21 = vadd.f32 %v4628_v27, %v3346_v41  ;;  %v3347_v62 = vadd.f32 %v5245_v29, %v6585_v37  ;;  %v4685_v27 = vld [vmem:[%s6578_s10 + $0x40] sm:$0xff]  }
 0x208   : > { %v3440_v47 = vadd.f32 %v4624_v0, %v3344_v49  ;;  %v3345_v9 = vadd.f32 %v5246_v3, %v6585_v37  ;;  %v4640_v42 = vunpack.c.l.bf16 %v4685_v27 }
 0x209   : > { %v3474_v2 = vmax.f32 %v3442_v21, 0.0  ;;  %v3443_v8 = vadd.f32 %v4629_v32, %v3347_v62  ;;  %v4645_v21 = vunpack.c.h.bf16 %v4686_v25 }
 0x20a   : > { %v3472_v50 = vmax.f32 %v3440_v47, 0.0  ;;  %v3441_v22 = vadd.f32 %v4625_v13, %v3345_v9  ;;  %v5163_v11 = vpop.f32.mrb[12].mxu0  ;;  %v4641_v9 = vunpack.c.h.bf16 %v4685_v27 }
 0x20b   : > { %3506 = vst [vmem:[%s6594_s16 + $0x50] sm:$0xff] %v3474_v2  ;;  %v3475_v6 = vmax.f32 %v3443_v8, 0.0  ;;  %v5247_v36 = vadd.f32 %v5163_v11, %v6534_v18  ;;  %v3219_v10 = vpop.f32.mrb[13].mxu0 }
 0x20c   : > { %3504 = vst [vmem:[%s6594_s16 + $0x40] sm:$0xff] %v3472_v50  ;;  %v3473_v53 = vmax.f32 %v3441_v22, 0.0  ;;  %v5248_v48 = vadd.f32 %v3219_v10, %v6536_v16  ;;  %v5164_v55 = vpop.f32.mrb[14].mxu0  ;;  %v4687_v22 = vld [vmem:[%s6578_s10 + $0x50] sm:$0xff]   ;;  %v4652_v10 = vunpack.c.l.bf16 %v4688_v19 }
 0x20d   : > { %3507 = vst [vmem:[%s6594_s16 + $0x58] sm:$0xff] %v3475_v6  ;;  %v3350_v58 = vadd.f32 %v5247_v36, %v6585_v37  ;;  %v5249_v26 = vadd.f32 %v5164_v55, %v6538_v52  ;;  %v3222_v45 = vpop.f32.mrb[15].mxu0  ;;  %v4648_v55 = vunpack.c.l.bf16 %v4687_v22 }
 0x20e   : > { %3505 = vst [vmem:[%s6594_s16 + $0x48] sm:$0xff] %v3473_v53  ;;  %v3348_v18 = vadd.f32 %v5248_v48, %v6585_v37  ;;  %v5250_v1 = vadd.f32 %v3222_v45, %v6540_v61  ;;  %v4653_v45 = vunpack.c.h.bf16 %v4688_v19 }
 0x20f   : > { %v3446_v28 = vadd.f32 %v4636_v63, %v3350_v58  ;;  %v3351_v16 = vadd.f32 %v5249_v26, %v6585_v37 }
 0x210   : > { %v3444_v24 = vadd.f32 %v4632_v54, %v3348_v18  ;;  %v3349_v14 = vadd.f32 %v5250_v1, %v6585_v37 }
 0x211   : > { %v3478_v39 = vmax.f32 %v3446_v28, 0.0  ;;  %v3447_v52 = vadd.f32 %v4637_v17, %v3351_v16 }
 0x212   : > { %v3476_v35 = vmax.f32 %v3444_v24, 0.0  ;;  %v3445_v40 = vadd.f32 %v4633_v46, %v3349_v14  ;;  %v5167_v44 = vpop.f32.mrb[16].mxu0  ;;  %v4649_v46 = vunpack.c.h.bf16 %v4687_v22  ;;  %v4690_v14 = vld [vmem:[%s6578_s10 + $0x68] sm:$0xff]  }
 0x213   : > { %3510 = vst [vmem:[%s6594_s16 + $0x70] sm:$0xff] %v3478_v39  ;;  %v3479_v0 = vmax.f32 %v3447_v52, 0.0  ;;  %v5251_v61 = vadd.f32 %v5167_v44, %v6542_v4  ;;  %v3235_v41 = vpop.f32.mrb[17].mxu0  ;;  %v4689_v39 = vld [vmem:[%s6578_s10 + $0x60] sm:$0xff]   ;;  %v4660_v44 = vunpack.c.l.bf16 %v4690_v14 }
 0x214   : > { %3508 = vst [vmem:[%s6594_s16 + $0x60] sm:$0xff] %v3476_v35  ;;  %v3477_v29 = vmax.f32 %v3445_v40, 0.0  ;;  %v5252_v32 = vadd.f32 %v3235_v41, %v6544_v7  ;;  %v5168_v49 = vpop.f32.mrb[18].mxu0  ;;  %v4656_v41 = vunpack.c.l.bf16 %v4689_v39 }
 0x215   : > { %3511 = vst [vmem:[%s6594_s16 + $0x78] sm:$0xff] %v3479_v0  ;;  %v3354_v3 = vadd.f32 %v5251_v61, %v6585_v37  ;;  %v5253_v13 = vadd.f32 %v5168_v49, %v6546_v43  ;;  %v3238_v62 = vpop.f32.mrb[19].mxu0  ;;  %v4661_v49 = vunpack.c.h.bf16 %v4690_v14 }
 0x216   : > { %3509 = vst [vmem:[%s6594_s16 + $0x68] sm:$0xff] %v3477_v29  ;;  %v3352_v4 = vadd.f32 %v5252_v32, %v6585_v37  ;;  %v5254_v47 = vadd.f32 %v3238_v62, %v6548_v31 }
 0x217   : > { %v3450_v56 = vadd.f32 %v4644_v57, %v3354_v3  ;;  %v3355_v7 = vadd.f32 %v5253_v13, %v6585_v37 }
 0x218   : > { %v3448_v2 = vadd.f32 %v4640_v42, %v3352_v4  ;;  %v3353_v8 = vadd.f32 %v5254_v47, %v6585_v37 }
 0x219   : > { %v3482_v50 = vmax.f32 %v3450_v56, 0.0  ;;  %v3451_v43 = vadd.f32 %v4645_v21, %v3355_v7  ;;  %v4657_v21 = vunpack.c.h.bf16 %v4689_v39  ;;  %v4691_v7 = vld [vmem:[%s6578_s10 + $0x70] sm:$0xff]  }
 0x21a   : > { %v3480_v11 = vmax.f32 %v3448_v2, 0.0  ;;  %v3449_v6 = vadd.f32 %v4641_v9, %v3353_v8  ;;  %v5171_v36 = vpop.f32.mrb[20].mxu0  ;;  %v4692_v9 = vld [vmem:[%s6578_s10 + $0x78] sm:$0xff]  }
 0x21b   : > { %3514 = vst [vmem:[%s6594_s16 + $0x90] sm:$0xff] %v3482_v50  ;;  %v3483_v63 = vmax.f32 %v3451_v43, 0.0  ;;  %v5255_v31 = vadd.f32 %v5171_v36, %v6550_v23  ;;  %v3251_v53 = vpop.f32.mrb[21].mxu0  ;;  %v4668_v43 = vunpack.c.l.bf16 %v4692_v9  ;;  %v4664_v36 = vunpack.c.l.bf16 %v4691_v7 }
 0x21c   : > { %3512 = vst [vmem:[%s6594_s16 + $0x80] sm:$0xff] %v3480_v11  ;;  %v3481_v48 = vmax.f32 %v3449_v6, 0.0  ;;  %v5256_v54 = vadd.f32 %v3251_v53, %v6552_v34  ;;  %v5172_v58 = vpop.f32.mrb[22].mxu0  ;;  %v4669_v53 = vunpack.c.h.bf16 %v4692_v9 }
 0x21d   : > { %3515 = vst [vmem:[%s6594_s16 + $0x98] sm:$0xff] %v3483_v63  ;;  %v3358_v26 = vadd.f32 %v5255_v31, %v6585_v37  ;;  %v5257_v17 = vadd.f32 %v5172_v58, %v6554_v12  ;;  %v3254_v18 = vpop.f32.mrb[23].mxu0 }
 0x21e   : > { %3513 = vst [vmem:[%s6594_s16 + $0x88] sm:$0xff] %v3481_v48  ;;  %v3356_v23 = vadd.f32 %v5256_v54, %v6585_v37  ;;  %v5258_v1 = vadd.f32 %v3254_v18, %v6556_v15 }
 0x21f   : > { %v3454_v28 = vadd.f32 %v4652_v10, %v3358_v26  ;;  %v3359_v34 = vadd.f32 %v5257_v17, %v6585_v37 }
 0x220   : > { %v3452_v16 = vadd.f32 %v4648_v55, %v3356_v23  ;;  %v3357_v24 = vadd.f32 %v5258_v1, %v6585_v37 }
 0x221   : > { %v3486_v25 = vmax.f32 %v3454_v28, 0.0  ;;  %v3455_v12 = vadd.f32 %v4653_v45, %v3359_v34  ;;  %v4693_v28 = vld [vmem:[%s6578_s10 + $0x80] sm:$0xff]  }
 0x222   : > { %v3484_v52 = vmax.f32 %v3452_v16, 0.0  ;;  %v3453_v27 = vadd.f32 %v4649_v46, %v3357_v24  ;;  %v5175_v35 = vpop.f32.mrb[24].mxu0  ;;  %v4672_v24 = vunpack.c.l.bf16 %v4693_v28 }
 0x223   : > { %3518 = vst [vmem:[%s6594_s16 + $0xb0] sm:$0xff] %v3486_v25  ;;  %v3487_v40 = vmax.f32 %v3455_v12, 0.0  ;;  %v5259_v15 = vadd.f32 %v5175_v35, %v6558_v30  ;;  %v3267_v0 = vpop.f32.mrb[25].mxu0 }
 0x224   : > { %3516 = vst [vmem:[%s6594_s16 + $0xa0] sm:$0xff] %v3484_v52  ;;  %v3485_v61 = vmax.f32 %v3453_v27, 0.0  ;;  %v5260_v57 = vadd.f32 %v3267_v0, %v6560_v51  ;;  %v5176_v29 = vpop.f32.mrb[26].mxu0  ;;  %v4673_v27 = vunpack.c.h.bf16 %v4693_v28 }
 0x225   : > { %3519 = vst [vmem:[%s6594_s16 + $0xb8] sm:$0xff] %v3487_v40  ;;  %v3362_v32 = vadd.f32 %v5259_v15, %v6585_v37  ;;  %v5261_v42 = vadd.f32 %v5176_v29, %v6562_v5  ;;  %v3270_v3 = vpop.f32.mrb[27].mxu0 }
 0x226   : > { %3517 = vst [vmem:[%s6594_s16 + $0xa8] sm:$0xff] %v3485_v61  ;;  %v3360_v30 = vadd.f32 %v5260_v57, %v6585_v37  ;;  %v5262_v13 = vadd.f32 %v3270_v3, %v6564_v20 }
 0x227   : > { %v3458_v62 = vadd.f32 %v4660_v44, %v3362_v32  ;;  %v3363_v51 = vadd.f32 %v5261_v42, %v6585_v37 }
 0x228   : > { %v3456_v4 = vadd.f32 %v4656_v41, %v3360_v30  ;;  %v3361_v47 = vadd.f32 %v5262_v13, %v6585_v37 }
 0x229   : > { %v3490_v56 = vmax.f32 %v3458_v62, 0.0  ;;  %v3459_v5 = vadd.f32 %v4661_v49, %v3363_v51 }
 0x22a   : > { %v3488_v2 = vmax.f32 %v3456_v4, 0.0  ;;  %v3457_v8 = vadd.f32 %v4657_v21, %v3361_v47  ;;  %v5179_v19 = vpop.f32.mrb[28].mxu0 }
 0x22b   : > { %3522 = vst [vmem:[%s6594_s16 + $0xd0] sm:$0xff] %v3490_v56  ;;  %v3491_v50 = vmax.f32 %v3459_v5, 0.0  ;;  %v5263_v20 = vadd.f32 %v5179_v19, %v6566_v59  ;;  %v3283_v22 = vpop.f32.mrb[29].mxu0 }
 0x22c   : > { %3520 = vst [vmem:[%s6594_s16 + $0xc0] sm:$0xff] %v3488_v2  ;;  %v3489_v11 = vmax.f32 %v3457_v8, 0.0  ;;  %v5264_v6 = vadd.f32 %v3283_v22, %v6568_v33  ;;  %v5180_v63 = vpop.f32.mrb[30].mxu0  ;;  %v4665_v33 = vunpack.c.h.bf16 %v4691_v7 }
 0x22d   : > { %3523 = vst [vmem:[%s6594_s16 + $0xd8] sm:$0xff] %v3491_v50  ;;  %v3366_v31 = vadd.f32 %v5263_v20, %v6585_v37  ;;  %v5265_v10 = vadd.f32 %v5180_v63, %v6570_v60  ;;  %v3286_v48 = vpop.f32.mrb[31].mxu0 }
 0x22e   : > { %3521 = vst [vmem:[%s6594_s16 + $0xc8] sm:$0xff] %v3489_v11  ;;  %v3364_v59 = vadd.f32 %v5264_v6, %v6585_v37  ;;  %v5266_v54 = vadd.f32 %v3286_v48, %v6572_v38  ;;  %v4694_v38 = vld [vmem:[%s6578_s10 + $0x88] sm:$0xff]  }
 0x22f   : > { %v3462_v55 = vadd.f32 %v4668_v43, %v3366_v31  ;;  %v3367_v58 = vadd.f32 %v5265_v10, %v6585_v37  ;;  %v4676_v34 = vunpack.c.l.bf16 %v4694_v38  ;;  %v4677_v12 = vunpack.c.h.bf16 %v4694_v38 }
 0x230   : > { %v3460_v26 = vadd.f32 %v4664_v36, %v3364_v59  ;;  %v3365_v17 = vadd.f32 %v5266_v54, %v6585_v37 }
 0x231   : > { %v3494_v60 = vmax.f32 %v3462_v55, 0.0  ;;  %v3463_v45 = vadd.f32 %v4669_v53, %v3367_v58 }
 0x232   : > { %v3492_v18 = vmax.f32 %v3460_v26, 0.0  ;;  %v3461_v23 = vadd.f32 %v4665_v33, %v3365_v17 }
 0x233   : > { %3526 = vst [vmem:[%s6594_s16 + $0xf0] sm:$0xff] %v3494_v60  ;;  %v3495_v1 = vmax.f32 %v3463_v45, 0.0 }
 0x234   : > { %3524 = vst [vmem:[%s6594_s16 + $0xe0] sm:$0xff] %v3492_v18  ;;  %v3493_v46 = vmax.f32 %v3461_v23, 0.0 }
 0x235   : > { %3527 = vst [vmem:[%s6594_s16 + $0xf8] sm:$0xff] %v3495_v1 }
 0x236   : > { %3525 = vst [vmem:[%s6594_s16 + $0xe8] sm:$0xff] %v3493_v46 }
 0x24f   : > { %v5233_v16 = vpop.f32.mrb[32].mxu1 }
 0x250   : > { %v4258_v14 = vadd.f32 %v5233_v16, %v6585_v37  ;;  %v4237_v25 = vpop.f32.mrb[33].mxu1 }
 0x251   : > { %v4256_v39 = vadd.f32 %v6585_v37, %v4237_v25  ;;  %v5234_v52 = vpop.f32.mrb[34].mxu1 }
 0x252   : > { %v4270_v35 = vadd.f32 %v4676_v34, %v4258_v14  ;;  %v4259_v40 = vadd.f32 %v5234_v52, %v6585_v37  ;;  %v4240_v15 = vpop.f32.mrb[35].mxu1 }
 0x253   : > { %v4268_v44 = vadd.f32 %v4672_v24, %v4256_v39  ;;  %v4257_v0 = vadd.f32 %v6585_v37, %v4240_v15 }
 0x254   : > { %v4274_v61 = vmax.f32 %v4270_v35, 0.0  ;;  %v4271_v57 = vadd.f32 %v4677_v12, %v4259_v40 }
 0x255   : > { %v4272_v41 = vmax.f32 %v4268_v44, 0.0  ;;  %v4269_v29 = vadd.f32 %v4673_v27, %v4257_v0 }
 0x256   : > { %4278 = vst [vmem:[%s6594_s16 + $0x110] sm:$0xff] %v4274_v61  ;;  %v4275_v32 = vmax.f32 %v4271_v57, 0.0 }
 0x257   : > { %4276 = vst [vmem:[%s6594_s16 + $0x100] sm:$0xff] %v4272_v41  ;;  %v4273_v42 = vmax.f32 %v4269_v29, 0.0 }
 0x258   : > { %4279 = vst [vmem:[%s6594_s16 + $0x118] sm:$0xff] %v4275_v32 }
 0x259   : > { %4277 = vst [vmem:[%s6594_s16 + $0x108] sm:$0xff] %v4273_v42 }
 0x25a PF: > { %s14_s15 = sadd.s32 1, %s5634_s15  }
 0x25b   : > { %p11_p4 = scmp.ge.s32.totalorder %s14_s15, 4  }
 0x25d   :  { %13 = sbr.rel (!%p11_p4) target bundleno = 1 (0x1), region = 77 }

</bundles_post_ra>
